<compile_context>
chip_gen: v7x
topology: tpu7x:2x2x1
jax: 0.10.0
libtpu: 0.0.40
codegen_flags: <defaults>
</compile_context>

<pallas_src>
import functools

import jax
import jax.numpy as jnp
import numpy as np
from jax.experimental import pallas as pl
from jax.experimental.pallas import tpu as pltpu

LARGE_NUMBER = 1.0e10
BN_EPS = 1e-5


# --------------------------------------------------------------------------
# Pallas kernel: BLOCK_GRAPHS graphs (one [Bblk*Nmax, D] row slab) per grid step.
# --------------------------------------------------------------------------
def transformer_layer_kernel(
    x_ref,        # [Bblk, Nmax, D]  f32 node features
    kp_ref,       # [1, 1, Bblk*Nmax] f32, 1.0 where key position is padding
    diag_ref,     # [rows, rows]     f32 cross-graph bias (0 same graph, LARGE otherwise)
    wqkv_ref,     # [D, 3D]          bf16 fused q|k|v weights (head-major cols, q pre-scaled)
    wo_ref,       # [D, D]           bf16 output projection (head-major input rows)
    w1_ref,       # [D, 2D]          bf16
    w2_ref,       # [2D, D]          bf16
    vec_ref,      # [1, 11D]         f32 packed biases + BN affine params
    out_ref,      # [Bblk, Nmax, D]  f32
    *, num_heads, head_dim, nmax, bblk):
    D = num_heads * head_dim
    rows = bblk * nmax
    f32 = jnp.float32
    bf16 = jnp.bfloat16

    x = x_ref[...].reshape(rows, D)          # f32, kept for the residual
    x_bf = x.astype(bf16)                    # matmul operand
    kp = kp_ref[0]                           # [1, rows]

    # ---- unpack bias / BN slab (static, 128-aligned lane slices) ----------
    b_qkv = vec_ref[:, 0:3 * D]
    b_o   = vec_ref[:, 3 * D:4 * D]
    b_1   = vec_ref[:, 4 * D:6 * D]
    b_2   = vec_ref[:, 6 * D:7 * D]
    bn1_s = vec_ref[:, 7 * D:8 * D]
    bn1_b = vec_ref[:, 8 * D:9 * D]
    bn2_s = vec_ref[:, 9 * D:10 * D]
    bn2_b = vec_ref[:, 10 * D:11 * D]

    # ---- fused QKV projection (bf16 MXU, f32 accumulate) -------------------
    qkv = jnp.dot(x_bf, wqkv_ref[...], preferred_element_type=f32) + b_qkv
    qkv_bf = qkv.astype(bf16)

    # head split: 128-lane-aligned 32-wide slices (columns are head-major),
    # on bf16 data so the relayout moves half the bytes of the f32 version
    def take_heads(base):
        return jnp.stack(
            [qkv_bf[:, base + h * head_dim: base + (h + 1) * head_dim]
             for h in range(num_heads)], axis=0)

    q_h = take_heads(0)        # [H, rows, hd]
    k_h = take_heads(D)
    v_h = take_heads(2 * D)

    # ---- attention mask: hoisted constant cross-graph bias + key-pad bias ---
    neg_bias = diag_ref[...] + kp * LARGE_NUMBER       # [rows, rows], f32

    # ---- attention: heads as one batched dot_general (scale folded into Wq) -
    # score[h, n, m] = k[h, n, :] . q[h, m, :]  (matches einsum 'bnfh,bmfh->bnmh')
    s = jnp.einsum('hnf,hmf->hnm', k_h, q_h, preferred_element_type=f32)
    s = s - neg_bias[None, :, :]
    s = s - jnp.max(s, axis=2, keepdims=True)           # stable softmax over m (f32)
    p = jnp.exp(s)
    p = p * pl.reciprocal(jnp.sum(p, axis=2, keepdims=True), approx=True)

    o_h = jnp.einsum('hnm,hmf->hnf', p.astype(bf16), v_h,
                     preferred_element_type=f32)         # [H, rows, hd] f32

    # concatenate heads back to lanes -> one K=128 output projection matmul
    o_cat = jnp.concatenate([o_h[h] for h in range(num_heads)],
                            axis=1).astype(bf16)         # [rows, D]
    attn = jnp.dot(o_cat, wo_ref[...], preferred_element_type=f32) + b_o

    # ---- residual + BatchNorm1d (eval, default running stats), f32 ----------
    h1 = (x + attn) * bn1_s + bn1_b

    # ---- feed-forward block: Linear -> relu -> Linear (bf16 MXU) ------------
    ff = jnp.maximum(
        jnp.dot(h1.astype(bf16), w1_ref[...], preferred_element_type=f32) + b_1, 0.0)
    ff = jnp.dot(ff.astype(bf16), w2_ref[...], preferred_element_type=f32) + b_2

    # ---- residual + BatchNorm1d (eval) ---------------------------------------
    h2 = (h1 + ff) * bn2_s + bn2_b
    out_ref[...] = h2.reshape(bblk, nmax, D)             # leading-dim unfold


# --------------------------------------------------------------------------
# Wrapper: builds grid / BlockSpecs and calls pallas_call.
# --------------------------------------------------------------------------
def pallas_transformer_layer(h_dense, key_pad_flat, diag_bias, W, *,
                             num_heads, block_graphs):
    Bpad, Nmax, D = h_dense.shape
    assert D % 128 == 0, "dim_h must be a multiple of 128 (lane-dense I/O, vec slices)"
    assert Nmax % 8 == 0, "Nmax must be sublane-aligned"
    assert Bpad % block_graphs == 0
    num_blocks = Bpad // block_graphs
    rows = block_graphs * Nmax
    head_dim = D // num_heads

    kern = functools.partial(
        transformer_layer_kernel,
        num_heads=num_heads, head_dim=head_dim, nmax=Nmax, bblk=block_graphs)

    def const_spec(arr):
        nz = (0,) * arr.ndim
        return pl.BlockSpec(arr.shape, lambda i, _nz=nz: _nz)

    in_specs = [
        pl.BlockSpec((block_graphs, Nmax, D), lambda i: (i, 0, 0)),   # node features
        pl.BlockSpec((1, 1, rows), lambda i: (i, 0, 0)),              # key-pad mask
        const_spec(diag_bias),
        const_spec(W["w_qkv"]),
        const_spec(W["w_o"]),
        const_spec(W["w1"]),
        const_spec(W["w2"]),
        const_spec(W["vec"]),
    ]
    out_spec = pl.BlockSpec((block_graphs, Nmax, D), lambda i: (i, 0, 0))

    f = pl.pallas_call(
        kern,
        out_shape=jax.ShapeDtypeStruct((Bpad, Nmax, D), jnp.float32),
        grid_spec=pltpu.PrefetchScalarGridSpec(
            num_scalar_prefetch=0,
            grid=(num_blocks,),
            in_specs=in_specs,
            out_specs=out_spec,
        ),
        compiler_params=pltpu.CompilerParams(
            dimension_semantics=("parallel",)),   # even #steps -> both v7x TCs busy
    )
    return f(h_dense, key_pad_flat, diag_bias,
             W["w_qkv"], W["w_o"], W["w1"], W["w2"], W["vec"])


# --------------------------------------------------------------------------
# Deterministic parameter initialization (PyTorch Linear-style init).
# --------------------------------------------------------------------------
def init_params(key, dim_h):
    ks = jax.random.split(key, 12)

    def linear(kw, kb, fan_in, fan_out):
        bound = 1.0 / np.sqrt(fan_in)
        Wm = jax.random.uniform(kw, (fan_out, fan_in), jnp.float32, -bound, bound)
        b = jax.random.uniform(kb, (fan_out,), jnp.float32, -bound, bound)
        return Wm, b

    p = {}
    p["Wq"], p["bq"] = linear(ks[0], ks[1], dim_h, dim_h)
    p["Wk"], p["bk"] = linear(ks[2], ks[3], dim_h, dim_h)
    p["Wv"], p["bv"] = linear(ks[4], ks[5], dim_h, dim_h)
    p["Wo"], p["bo"] = linear(ks[6], ks[7], dim_h, dim_h)
    p["W1"], p["b1"] = linear(ks[8], ks[9], dim_h, 2 * dim_h)
    p["W2"], p["b2"] = linear(ks[10], ks[11], 2 * dim_h, dim_h)
    return p


def kernel_weights(p, dim_h, num_heads):
    """Pack / pre-permute parameters for the kernel.

    q/k/v columns are re-ordered head-major (h*hd + f) so each head occupies a
    contiguous lane slice; 1/sqrt(head_dim) is folded into the q columns/bias;
    w_o's input rows are permuted to the same head-major order so the output
    projection is a single [rows, D] x [D, D] matmul after concatenating heads.
    Matmul weight slabs are stored bf16 (MXU-native), biases/BN stay f32."""
    D = dim_h
    hd = D // num_heads
    H = num_heads
    inv_sqrt_d = 1.0 / np.sqrt(hd)

    def perm_qkv_w(Wm, scale=1.0):
        A = Wm.T * scale                              # [in, out], out index = f*H + h
        return A.reshape(D, hd, H).transpose(0, 2, 1).reshape(D, D)

    def perm_qkv_b(b, scale=1.0):
        return (b * scale).reshape(hd, H).T.reshape(D)

    w_qkv = jnp.concatenate(
        [perm_qkv_w(p["Wq"], inv_sqrt_d), perm_qkv_w(p["Wk"]), perm_qkv_w(p["Wv"])],
        axis=1).astype(jnp.bfloat16)
    b_qkv = jnp.concatenate(
        [perm_qkv_b(p["bq"], inv_sqrt_d), perm_qkv_b(p["bk"]), perm_qkv_b(p["bv"])],
        axis=0)

    # output projection: input rows re-ordered head-major (h*hd + f)
    w_o = (p["Wo"].T.reshape(hd, H, D).transpose(1, 0, 2)
           .reshape(D, D).astype(jnp.bfloat16))

    w1 = p["W1"].T.astype(jnp.bfloat16)               # [D, 2D]
    w2 = p["W2"].T.astype(jnp.bfloat16)               # [2D, D]

    bn_scale = jnp.full((D,), 1.0 / np.sqrt(1.0 + BN_EPS), jnp.float32)
    bn_shift = jnp.zeros((D,), jnp.float32)

    vec = jnp.concatenate(
        [b_qkv, p["bo"], p["b1"], p["b2"],
         bn_scale, bn_shift, bn_scale, bn_shift], axis=0).reshape(1, 11 * D)

    return dict(w_qkv=w_qkv, w_o=w_o, w1=w1, w2=w2, vec=vec)


# --------------------------------------------------------------------------
# Pure-JAX reference (mirrors the PyTorch forward, eval mode).
# --------------------------------------------------------------------------
def ref_forward(h, batch_j, pos, h_dense, key_pad_bool, p, num_heads):
    B, Nmax, D = h_dense.shape
    hd = D // num_heads
    x = h_dense
    hp = jax.lax.Precision.HIGHEST
    q = jnp.matmul(x, p["Wq"].T, precision=hp) + p["bq"]
    k = jnp.matmul(x, p["Wk"].T, precision=hp) + p["bk"]
    v = jnp.matmul(x, p["Wv"].T, precision=hp) + p["bv"]
    q = q.reshape(B, Nmax, hd, num_heads)
    k = k.reshape(B, Nmax, hd, num_heads)
    v = v.reshape(B, Nmax, hd, num_heads)
    score = jnp.einsum("bnfh,bmfh->bnmh", k, q, precision=hp) / np.sqrt(hd)
    score = score - key_pad_bool[:, None, :, None].astype(jnp.float32) * LARGE_NUMBER
    A = jax.nn.softmax(score, axis=2)
    vout = jnp.einsum("bnmh,bmfh->bnfh", A, v, precision=hp).reshape(B, Nmax, D)
    attn = jnp.matmul(vout, p["Wo"].T, precision=hp) + p["bo"]
    attn_sparse = attn[batch_j, pos]
    h1 = (h + attn_sparse) / np.sqrt(1.0 + BN_EPS)
    ff = jnp.maximum(jnp.matmul(h1, p["W1"].T, precision=hp) + p["b1"], 0.0)
    ff = jnp.matmul(ff, p["W2"].T, precision=hp) + p["b2"]
    return (h1 + ff) / np.sqrt(1.0 + BN_EPS)


# --------------------------------------------------------------------------
if __name__ == "__main__":
    dim_h, num_heads = 128, 4                 # head_dim = 32; D = 128 keeps lanes dense
    BLOCK_GRAPHS = 8                          # 8 graphs * 16 rows = 128 rows per grid step
    graph_sizes = [5, 16, 9, 12, 3, 8, 14, 7, 11, 6,
                   10, 4, 13, 2, 15, 8, 6, 9, 16, 5]   # 20 graphs, N_total = 179
    B = len(graph_sizes)
    batch_vec = np.concatenate(
        [np.full(s, i, np.int32) for i, s in enumerate(graph_sizes)])
    N = int(batch_vec.shape[0])

    Nmax = ((max(graph_sizes) + 7) // 8) * 8          # sublane-aligned dense width
    num_blocks = -(-B // BLOCK_GRAPHS)
    num_blocks += num_blocks % 2                      # even grid -> balanced v7x cores
    Bpad = num_blocks * BLOCK_GRAPHS                  # pad with empty (fully masked) graphs
    rows = BLOCK_GRAPHS * Nmax

    key = jax.random.PRNGKey(0)
    k_h, k_p = jax.random.split(key)
    h = jax.random.normal(k_h, (N, dim_h), jnp.float32)
    params = init_params(k_p, dim_h)

    # to_dense_batch (glue, plain JAX/numpy): [N_total, D] -> [Bpad, Nmax, D], mask [Bpad, Nmax]
    counts = np.bincount(batch_vec, minlength=B)
    offsets = np.concatenate([[0], np.cumsum(counts)[:-1]]).astype(np.int32)
    pos_np = np.arange(N, dtype=np.int32) - offsets[batch_vec]
    batch_j = jnp.asarray(batch_vec)
    pos = jnp.asarray(pos_np)
    h_dense = jnp.zeros((Bpad, Nmax, dim_h), jnp.float32).at[batch_j, pos].set(h)
    mask = jnp.zeros((Bpad, Nmax), bool).at[batch_j, pos].set(True)
    key_pad_bool = ~mask
    key_pad_flat = key_pad_bool.astype(jnp.float32).reshape(num_blocks, 1, rows)

    # constant block-diagonal cross-graph bias, hoisted out of the kernel (shared by all steps)
    gid = np.arange(rows, dtype=np.int32) // Nmax
    diag_bias = jnp.asarray(
        np.where(gid[:, None] == gid[None, :], 0.0, LARGE_NUMBER).astype(np.float32))

    W = kernel_weights(params, dim_h, num_heads)

    out_dense = pallas_transformer_layer(
        h_dense, key_pad_flat, diag_bias, W,
        num_heads=num_heads, block_graphs=BLOCK_GRAPHS)
    out = out_dense[batch_j, pos]                 # gather valid nodes back
    out = jax.block_until_ready(out)

    ref = ref_forward(h, batch_j, pos, h_dense, key_pad_bool, params, num_heads)
    np.testing.assert_allclose(np.asarray(out), np.asarray(ref),
                               rtol=1e-2, atol=1e-2)
    print("KERNEL_OK")
</pallas_src>

<mosaic_0001>
module attributes {stable_mosaic.version = 11 : i64} {
  func.func @transformer_layer_kernel(%arg0: i32, %arg1: memref<8x16x128xf32, #tpu.memory_space<vmem>>, %arg2: memref<1x1x128xf32, #tpu.memory_space<vmem>>, %arg3: memref<128x128xf32, #tpu.memory_space<vmem>>, %arg4: memref<128x384xbf16, #tpu.memory_space<vmem>>, %arg5: memref<128x128xbf16, #tpu.memory_space<vmem>>, %arg6: memref<128x256xbf16, #tpu.memory_space<vmem>>, %arg7: memref<256x128xbf16, #tpu.memory_space<vmem>>, %arg8: memref<1x1408xf32, #tpu.memory_space<vmem>>, %arg9: memref<8x16x128xf32, #tpu.memory_space<vmem>>) attributes {dimension_semantics = [#tpu.dimension_semantics<parallel>], iteration_bounds = array<i64: 4>, scalar_prefetch = 0 : i64, scratch_operands = 0 : i64, tpu.core_type = #tpu.core_type<tc>, window_params = [{transform_indices = @transform_0, window_bounds = array<i64: 8, 16, 128>}, {transform_indices = @transform_1, window_bounds = array<i64: 1, 1, 128>}, {pipeline_mode = #tpu.pipeline_mode<synchronous>, transform_indices = @transform_2, window_bounds = array<i64: 128, 128>}, {pipeline_mode = #tpu.pipeline_mode<synchronous>, transform_indices = @transform_3, window_bounds = array<i64: 128, 384>}, {pipeline_mode = #tpu.pipeline_mode<synchronous>, transform_indices = @transform_4, window_bounds = array<i64: 128, 128>}, {pipeline_mode = #tpu.pipeline_mode<synchronous>, transform_indices = @transform_5, window_bounds = array<i64: 128, 256>}, {pipeline_mode = #tpu.pipeline_mode<synchronous>, transform_indices = @transform_6, window_bounds = array<i64: 256, 128>}, {pipeline_mode = #tpu.pipeline_mode<synchronous>, transform_indices = @transform_7, window_bounds = array<i64: 1, 1408>}, {transform_indices = @transform_8, window_bounds = array<i64: 8, 16, 128>}]} {
    %c0 = arith.constant 0 : index
    %c0_0 = arith.constant 0 : index
    %c0_1 = arith.constant 0 : index
    %0 = vector.load %arg1[%c0, %c0_0, %c0_1] : memref<8x16x128xf32, #tpu.memory_space<vmem>>, vector<8x16x128xf32>
    %1 = vector.shape_cast %0 : vector<8x16x128xf32> to vector<128x128xf32>
    %2 = arith.truncf %1 : vector<128x128xf32> to vector<128x128xbf16>
    %c0_2 = arith.constant 0 : index
    %c0_3 = arith.constant 0 : index
    %c0_4 = arith.constant 0 : index
    %3 = vector.load %arg2[%c0_2, %c0_3, %c0_4] : memref<1x1x128xf32, #tpu.memory_space<vmem>>, vector<1x1x128xf32>
    %4 = vector.shape_cast %3 : vector<1x1x128xf32> to vector<1x128xf32>
    %c0_5 = arith.constant 0 : index
    %c0_6 = arith.constant 0 : index
    %5 = vector.load %arg8[%c0_5, %c0_6] : memref<1x1408xf32, #tpu.memory_space<vmem>>, vector<1x384xf32>
    %c0_7 = arith.constant 0 : index
    %c384 = arith.constant 384 : index
    %6 = vector.load %arg8[%c0_7, %c384] : memref<1x1408xf32, #tpu.memory_space<vmem>>, vector<1x128xf32>
    %c0_8 = arith.constant 0 : index
    %c512 = arith.constant 512 : index
    %7 = vector.load %arg8[%c0_8, %c512] : memref<1x1408xf32, #tpu.memory_space<vmem>>, vector<1x256xf32>
    %c0_9 = arith.constant 0 : index
    %c768 = arith.constant 768 : index
    %8 = vector.load %arg8[%c0_9, %c768] : memref<1x1408xf32, #tpu.memory_space<vmem>>, vector<1x128xf32>
    %c0_10 = arith.constant 0 : index
    %c896 = arith.constant 896 : index
    %9 = vector.load %arg8[%c0_10, %c896] : memref<1x1408xf32, #tpu.memory_space<vmem>>, vector<1x128xf32>
    %c0_11 = arith.constant 0 : index
    %c1024 = arith.constant 1024 : index
    %10 = vector.load %arg8[%c0_11, %c1024] : memref<1x1408xf32, #tpu.memory_space<vmem>>, vector<1x128xf32>
    %c0_12 = arith.constant 0 : index
    %c1152 = arith.constant 1152 : index
    %11 = vector.load %arg8[%c0_12, %c1152] : memref<1x1408xf32, #tpu.memory_space<vmem>>, vector<1x128xf32>
    %c0_13 = arith.constant 0 : index
    %c1280 = arith.constant 1280 : index
    %12 = vector.load %arg8[%c0_13, %c1280] : memref<1x1408xf32, #tpu.memory_space<vmem>>, vector<1x128xf32>
    %c0_14 = arith.constant 0 : index
    %c0_15 = arith.constant 0 : index
    %13 = vector.load %arg4[%c0_14, %c0_15] : memref<128x384xbf16, #tpu.memory_space<vmem>>, vector<128x384xbf16>
    %cst = arith.constant dense<0.000000e+00> : vector<128x384xf32>
    %14 = tpu.matmul %2, %13, %cst {dimension_numbers = #tpu.dot_dimension_numbers<[1], [0], [0], [1], [0, 0, 1, 1], [], []>} : vector<128x128xbf16>, vector<128x384xbf16>, vector<128x384xf32> -> vector<128x384xf32>
    %15 = vector.broadcast %5 : vector<1x384xf32> to vector<128x384xf32>
    %16 = arith.addf %14, %15 : vector<128x384xf32>
    %17 = arith.truncf %16 : vector<128x384xf32> to vector<128x384xbf16>
    %18 = vector.extract_strided_slice %17 {offsets = [0, 0], sizes = [128, 32], strides = [1, 1]} : vector<128x384xbf16> to vector<128x32xbf16>
    %19 = vector.extract_strided_slice %17 {offsets = [0, 32], sizes = [128, 32], strides = [1, 1]} : vector<128x384xbf16> to vector<128x32xbf16>
    %20 = vector.extract_strided_slice %17 {offsets = [0, 64], sizes = [128, 32], strides = [1, 1]} : vector<128x384xbf16> to vector<128x32xbf16>
    %21 = vector.extract_strided_slice %17 {offsets = [0, 96], sizes = [128, 32], strides = [1, 1]} : vector<128x384xbf16> to vector<128x32xbf16>
    %22 = vector.shape_cast %18 : vector<128x32xbf16> to vector<1x128x32xbf16>
    %23 = vector.shape_cast %19 : vector<128x32xbf16> to vector<1x128x32xbf16>
    %24 = vector.shape_cast %20 : vector<128x32xbf16> to vector<1x128x32xbf16>
    %25 = vector.shape_cast %21 : vector<128x32xbf16> to vector<1x128x32xbf16>
    %26 = tpu.concatenate %22, %23, %24, %25 in 0 : vector<1x128x32xbf16>, vector<1x128x32xbf16>, vector<1x128x32xbf16>, vector<1x128x32xbf16> -> vector<4x128x32xbf16>
    %27 = vector.extract_strided_slice %17 {offsets = [0, 128], sizes = [128, 32], strides = [1, 1]} : vector<128x384xbf16> to vector<128x32xbf16>
    %28 = vector.extract_strided_slice %17 {offsets = [0, 160], sizes = [128, 32], strides = [1, 1]} : vector<128x384xbf16> to vector<128x32xbf16>
    %29 = vector.extract_strided_slice %17 {offsets = [0, 192], sizes = [128, 32], strides = [1, 1]} : vector<128x384xbf16> to vector<128x32xbf16>
    %30 = vector.extract_strided_slice %17 {offsets = [0, 224], sizes = [128, 32], strides = [1, 1]} : vector<128x384xbf16> to vector<128x32xbf16>
    %31 = vector.shape_cast %27 : vector<128x32xbf16> to vector<1x128x32xbf16>
    %32 = vector.shape_cast %28 : vector<128x32xbf16> to vector<1x128x32xbf16>
    %33 = vector.shape_cast %29 : vector<128x32xbf16> to vector<1x128x32xbf16>
    %34 = vector.shape_cast %30 : vector<128x32xbf16> to vector<1x128x32xbf16>
    %35 = tpu.concatenate %31, %32, %33, %34 in 0 : vector<1x128x32xbf16>, vector<1x128x32xbf16>, vector<1x128x32xbf16>, vector<1x128x32xbf16> -> vector<4x128x32xbf16>
    %36 = vector.extract_strided_slice %17 {offsets = [0, 256], sizes = [128, 32], strides = [1, 1]} : vector<128x384xbf16> to vector<128x32xbf16>
    %37 = vector.extract_strided_slice %17 {offsets = [0, 288], sizes = [128, 32], strides = [1, 1]} : vector<128x384xbf16> to vector<128x32xbf16>
    %38 = vector.extract_strided_slice %17 {offsets = [0, 320], sizes = [128, 32], strides = [1, 1]} : vector<128x384xbf16> to vector<128x32xbf16>
    %39 = vector.extract_strided_slice %17 {offsets = [0, 352], sizes = [128, 32], strides = [1, 1]} : vector<128x384xbf16> to vector<128x32xbf16>
    %40 = vector.shape_cast %36 : vector<128x32xbf16> to vector<1x128x32xbf16>
    %41 = vector.shape_cast %37 : vector<128x32xbf16> to vector<1x128x32xbf16>
    %42 = vector.shape_cast %38 : vector<128x32xbf16> to vector<1x128x32xbf16>
    %43 = vector.shape_cast %39 : vector<128x32xbf16> to vector<1x128x32xbf16>
    %44 = tpu.concatenate %40, %41, %42, %43 in 0 : vector<1x128x32xbf16>, vector<1x128x32xbf16>, vector<1x128x32xbf16>, vector<1x128x32xbf16> -> vector<4x128x32xbf16>
    %c0_16 = arith.constant 0 : index
    %c0_17 = arith.constant 0 : index
    %45 = vector.load %arg3[%c0_16, %c0_17] : memref<128x128xf32, #tpu.memory_space<vmem>>, vector<128x128xf32>
    %cst_18 = arith.constant 1.000000e+10 : f32
    %46 = vector.broadcast %cst_18 : f32 to vector<1x128xf32>
    %47 = arith.mulf %4, %46 : vector<1x128xf32>
    %48 = vector.broadcast %47 : vector<1x128xf32> to vector<128x128xf32>
    %49 = arith.addf %45, %48 : vector<128x128xf32>
    "tpu.trace_start"() <{level = 10 : i32, message = "hnf,hmf->hnm"}> : () -> ()
    %cst_19 = arith.constant dense<0.000000e+00> : vector<4x128x128xf32>
    %50 = tpu.matmul %35, %26, %cst_19 {dimension_numbers = #tpu.dot_dimension_numbers<[2], [2], [1], [1], [0, 0, 0, 1, 1, 1], [0], [0]>} : vector<4x128x32xbf16>, vector<4x128x32xbf16>, vector<4x128x128xf32> -> vector<4x128x128xf32>
    "tpu.trace_stop"() : () -> ()
    %51 = vector.shape_cast %49 : vector<128x128xf32> to vector<1x128x128xf32>
    %52 = vector.broadcast %51 : vector<1x128x128xf32> to vector<4x128x128xf32>
    %53 = arith.subf %50, %52 : vector<4x128x128xf32>
    %cst_20 = arith.constant dense<0xFF800000> : vector<4x128xf32>
    %54 = vector.multi_reduction <maximumf>, %53, %cst_20 [2] : vector<4x128x128xf32> to vector<4x128xf32>
    %55 = vector.shape_cast %54 : vector<4x128xf32> to vector<4x128x1xf32>
    %56 = vector.broadcast %55 : vector<4x128x1xf32> to vector<4x128x128xf32>
    %57 = arith.subf %53, %56 : vector<4x128x128xf32>
    %58 = math.exp %57 : vector<4x128x128xf32>
    %cst_21 = arith.constant dense<0.000000e+00> : vector<4x128xf32>
    %59 = vector.multi_reduction <add>, %58, %cst_21 [2] : vector<4x128x128xf32> to vector<4x128xf32>
    %60 = vector.shape_cast %59 : vector<4x128xf32> to vector<4x128x1xf32>
    %61 = tpu.reciprocal %60 {approx = true} : vector<4x128x1xf32> -> vector<4x128x1xf32>
    %62 = vector.broadcast %61 : vector<4x128x1xf32> to vector<4x128x128xf32>
    %63 = arith.mulf %58, %62 : vector<4x128x128xf32>
    %64 = arith.truncf %63 : vector<4x128x128xf32> to vector<4x128x128xbf16>
    "tpu.trace_start"() <{level = 10 : i32, message = "hnm,hmf->hnf"}> : () -> ()
    %cst_22 = arith.constant dense<0.000000e+00> : vector<4x128x32xf32>
    %65 = tpu.matmul %64, %44, %cst_22 {dimension_numbers = #tpu.dot_dimension_numbers<[2], [1], [1], [2], [0, 0, 0, 1, 1, 2], [0], [0]>} : vector<4x128x128xbf16>, vector<4x128x32xbf16>, vector<4x128x32xf32> -> vector<4x128x32xf32>
    "tpu.trace_stop"() : () -> ()
    %66 = vector.extract_strided_slice %65 {offsets = [0, 0, 0], sizes = [1, 128, 32], strides = [1, 1, 1]} : vector<4x128x32xf32> to vector<1x128x32xf32>
    %67 = vector.shape_cast %66 : vector<1x128x32xf32> to vector<128x32xf32>
    %68 = vector.extract_strided_slice %65 {offsets = [1, 0, 0], sizes = [1, 128, 32], strides = [1, 1, 1]} : vector<4x128x32xf32> to vector<1x128x32xf32>
    %69 = vector.shape_cast %68 : vector<1x128x32xf32> to vector<128x32xf32>
    %70 = vector.extract_strided_slice %65 {offsets = [2, 0, 0], sizes = [1, 128, 32], strides = [1, 1, 1]} : vector<4x128x32xf32> to vector<1x128x32xf32>
    %71 = vector.shape_cast %70 : vector<1x128x32xf32> to vector<128x32xf32>
    %72 = vector.extract_strided_slice %65 {offsets = [3, 0, 0], sizes = [1, 128, 32], strides = [1, 1, 1]} : vector<4x128x32xf32> to vector<1x128x32xf32>
    %73 = vector.shape_cast %72 : vector<1x128x32xf32> to vector<128x32xf32>
    %74 = tpu.concatenate %67, %69, %71, %73 in 1 : vector<128x32xf32>, vector<128x32xf32>, vector<128x32xf32>, vector<128x32xf32> -> vector<128x128xf32>
    %75 = arith.truncf %74 : vector<128x128xf32> to vector<128x128xbf16>
    %c0_23 = arith.constant 0 : index
    %c0_24 = arith.constant 0 : index
    %76 = vector.load %arg5[%c0_23, %c0_24] : memref<128x128xbf16, #tpu.memory_space<vmem>>, vector<128x128xbf16>
    %cst_25 = arith.constant dense<0.000000e+00> : vector<128x128xf32>
    %77 = tpu.matmul %75, %76, %cst_25 {dimension_numbers = #tpu.dot_dimension_numbers<[1], [0], [0], [1], [0, 0, 1, 1], [], []>} : vector<128x128xbf16>, vector<128x128xbf16>, vector<128x128xf32> -> vector<128x128xf32>
    %78 = vector.broadcast %6 : vector<1x128xf32> to vector<128x128xf32>
    %79 = arith.addf %77, %78 : vector<128x128xf32>
    %80 = arith.addf %1, %79 : vector<128x128xf32>
    %81 = vector.broadcast %9 : vector<1x128xf32> to vector<128x128xf32>
    %82 = arith.mulf %80, %81 : vector<128x128xf32>
    %83 = vector.broadcast %10 : vector<1x128xf32> to vector<128x128xf32>
    %84 = arith.addf %82, %83 : vector<128x128xf32>
    %85 = arith.truncf %84 : vector<128x128xf32> to vector<128x128xbf16>
    %c0_26 = arith.constant 0 : index
    %c0_27 = arith.constant 0 : index
    %86 = vector.load %arg6[%c0_26, %c0_27] : memref<128x256xbf16, #tpu.memory_space<vmem>>, vector<128x256xbf16>
    %cst_28 = arith.constant dense<0.000000e+00> : vector<128x256xf32>
    %87 = tpu.matmul %85, %86, %cst_28 {dimension_numbers = #tpu.dot_dimension_numbers<[1], [0], [0], [1], [0, 0, 1, 1], [], []>} : vector<128x128xbf16>, vector<128x256xbf16>, vector<128x256xf32> -> vector<128x256xf32>
    %88 = vector.broadcast %7 : vector<1x256xf32> to vector<128x256xf32>
    %89 = arith.addf %87, %88 : vector<128x256xf32>
    %cst_29 = arith.constant 0.000000e+00 : f32
    %90 = vector.broadcast %cst_29 : f32 to vector<128x256xf32>
    %91 = arith.maximumf %89, %90 : vector<128x256xf32>
    %92 = arith.truncf %91 : vector<128x256xf32> to vector<128x256xbf16>
    %c0_30 = arith.constant 0 : index
    %c0_31 = arith.constant 0 : index
    %93 = vector.load %arg7[%c0_30, %c0_31] : memref<256x128xbf16, #tpu.memory_space<vmem>>, vector<256x128xbf16>
    %cst_32 = arith.constant dense<0.000000e+00> : vector<128x128xf32>
    %94 = tpu.matmul %92, %93, %cst_32 {dimension_numbers = #tpu.dot_dimension_numbers<[1], [0], [0], [1], [0, 0, 1, 1], [], []>} : vector<128x256xbf16>, vector<256x128xbf16>, vector<128x128xf32> -> vector<128x128xf32>
    %95 = vector.broadcast %8 : vector<1x128xf32> to vector<128x128xf32>
    %96 = arith.addf %94, %95 : vector<128x128xf32>
    %97 = arith.addf %84, %96 : vector<128x128xf32>
    %98 = vector.broadcast %11 : vector<1x128xf32> to vector<128x128xf32>
    %99 = arith.mulf %97, %98 : vector<128x128xf32>
    %100 = vector.broadcast %12 : vector<1x128xf32> to vector<128x128xf32>
    %101 = arith.addf %99, %100 : vector<128x128xf32>
    %102 = vector.shape_cast %101 : vector<128x128xf32> to vector<8x16x128xf32>
    %c0_33 = arith.constant 0 : index
    %c0_34 = arith.constant 0 : index
    %c0_35 = arith.constant 0 : index
    %103 = vector.load %arg9[%c0_33, %c0_34, %c0_35] : memref<8x16x128xf32, #tpu.memory_space<vmem>>, vector<8x16x128xf32>
    tpu.vector_store %arg9[%c0_33, %c0_34, %c0_35], %102 {strides = array<i32>} : memref<8x16x128xf32, #tpu.memory_space<vmem>>, vector<8x16x128xf32>,
    return
  }
  func.func @transform_0(%arg0: i32) -> (i32, i32, i32) {
    %c0_i32 = arith.constant 0 : i32
    %c0_i32_0 = arith.constant 0 : i32
    %c0_i32_1 = arith.constant 0 : i32
    return %arg0, %c0_i32, %c0_i32_0 : i32, i32, i32
  }
  func.func @transform_1(%arg0: i32) -> (i32, i32, i32) {
    %c0_i32 = arith.constant 0 : i32
    %c0_i32_0 = arith.constant 0 : i32
    %c0_i32_1 = arith.constant 0 : i32
    return %arg0, %c0_i32, %c0_i32_0 : i32, i32, i32
  }
  func.func @transform_2(%arg0: i32) -> (i32, i32) {
    %c0_i32 = arith.constant 0 : i32
    %c0_i32_0 = arith.constant 0 : i32
    %c0_i32_1 = arith.constant 0 : i32
    return %c0_i32, %c0_i32_0 : i32, i32
  }
  func.func @transform_3(%arg0: i32) -> (i32, i32) {
    %c0_i32 = arith.constant 0 : i32
    %c0_i32_0 = arith.constant 0 : i32
    %c0_i32_1 = arith.constant 0 : i32
    return %c0_i32, %c0_i32_0 : i32, i32
  }
  func.func @transform_4(%arg0: i32) -> (i32, i32) {
    %c0_i32 = arith.constant 0 : i32
    %c0_i32_0 = arith.constant 0 : i32
    %c0_i32_1 = arith.constant 0 : i32
    return %c0_i32, %c0_i32_0 : i32, i32
  }
  func.func @transform_5(%arg0: i32) -> (i32, i32) {
    %c0_i32 = arith.constant 0 : i32
    %c0_i32_0 = arith.constant 0 : i32
    %c0_i32_1 = arith.constant 0 : i32
    return %c0_i32, %c0_i32_0 : i32, i32
  }
  func.func @transform_6(%arg0: i32) -> (i32, i32) {
    %c0_i32 = arith.constant 0 : i32
    %c0_i32_0 = arith.constant 0 : i32
    %c0_i32_1 = arith.constant 0 : i32
    return %c0_i32, %c0_i32_0 : i32, i32
  }
  func.func @transform_7(%arg0: i32) -> (i32, i32) {
    %c0_i32 = arith.constant 0 : i32
    %c0_i32_0 = arith.constant 0 : i32
    %c0_i32_1 = arith.constant 0 : i32
    return %c0_i32, %c0_i32_0 : i32, i32
  }
  func.func @transform_8(%arg0: i32) -> (i32, i32, i32) {
    %c0_i32 = arith.constant 0 : i32
    %c0_i32_0 = arith.constant 0 : i32
    %c0_i32_1 = arith.constant 0 : i32
    return %arg0, %c0_i32, %c0_i32_0 : i32, i32, i32
  }
}

</mosaic_0001>

<bundles_post_ra>
// kernel: tpu_custom_call.1
= control target key start
LH: loop header
LB: loop body
LE: loop exit
PB: predicated region body
PF: predicated region fallthrough
CT: control target
= control target key end

     0   :  { %s7645_s0 = inlined_call_operand.hbm [shape: f32[32,16,128], index: 0, kind: input, shape index: {}]   ;;  %s7646_s1 = inlined_call_operand.hbm [shape: f32[4,1,128], index: 1, kind: input, shape index: {}]   ;;  %s7647_s2 = inlined_call_operand.hbm [shape: f32[128,128], index: 2, kind: input, shape index: {}]   ;;  %s7648_s3 = inlined_call_operand.hbm [shape: bf16[128,384], index: 3, kind: input, shape index: {}]   ;;  %s7649_s4 = inlined_call_operand.hbm [shape: bf16[128,128], index: 4, kind: input, shape index: {}]   ;;  %s7650_s5 = inlined_call_operand.hbm [shape: bf16[128,256], index: 5, kind: input, shape index: {}]   ;;  %s7651_s6 = inlined_call_operand.hbm [shape: bf16[256,128], index: 6, kind: input, shape index: {}]   ;;  %s7652_s7 = inlined_call_operand.vmem [shape: f32[1,1408], index: 7, kind: input, shape index: {}]   ;;  %s7653_s8 = inlined_call_operand.hbm [shape: f32[32,16,128], index: 8, kind: output, shape index: {}]  }
   0x1   :  { %7728 = sst [smem:[#allocation68_spill]] %s7645_s0 }
   0x2   :  { %7729 = sst [smem:[#allocation69_spill]] %s7647_s2 }
   0x3   :  { %7730 = sst [smem:[#allocation70_spill]] %s7648_s3 }
   0x4   :  { %7731 = sst [smem:[#allocation71_spill]] %s7649_s4 }
   0x5   :  { %7732 = sst [smem:[#allocation72_spill]] %s7650_s5 }
   0x6   :  { %13 = vsyncpa [#allocation3], 0 }
   0x7   :  { %15 = vsyncpa [#allocation3 + $0x1], 0 }
   0x8   :  { %16 = vsyncpa [#allocation6], 0 }
   0x9   :  { %18 = vsyncpa [#allocation6 + $0x1], 0 }
   0xa   :  { %19 = vsyncpa [#allocation9], 0 }
   0xb   :  { %20 = vsyncpa [#allocation12], 0 }
   0xc   :  { %21 = vsyncpa [#allocation4], 0 }
   0xd   :  { %23 = vsyncpa [#allocation4 + $0x1], 0  ;;  %s5624_s27 = smov 0   ;;  %s5626_s28 = smov 0  }
   0xe   :  { %s5628_s29 = smov 0   ;;  %s5630_s30 = smov 0  }
   0xf LB: > { %s5559_s9 = smov [#allocation7]   ;;  %s5645_s11 = sadd.s32 4294967295, %s5557_s30   ;;  %s5557_s30 = sphi %s5630_s30, %s7896_s30   ;;  %s5553_s29 = sphi %s5628_s29, %s7895_s29   ;;  %s5549_s28 = sphi %s5626_s28, %s7894_s28   ;;  %s5545_s27 = sphi %s5624_s27, %s7893_s27  }
  0x10   : > { %s250_s10 = sshll.u32 %s5559_s9, 4  ;;  %p3965_p0 = scmp.ge.s32.totalorder %s5557_s30, 1  ;;  %s5650_s10 = int_to_ptr.vmem [resolvable:$true] %s250_s10 }
  0x11   : > { %p7656_p1 = scmp.eq.s32.totalorder %s5645_s11, 0  ;;  %p238_p2 = scmp.lt.s32.totalorder %s5557_s30, 5 }
  0x12   : > { %s5560_s13 = smov [#allocation8]   ;;  %s5561_s16 = smov [#allocation11]  }
  0x13   : > { %p5652_p3 = pnand %p3965_p0, %p238_p2  ;;  %s263_s14 = sshll.u32 %s5560_s13, 4  ;;  %s5664_s14 = int_to_ptr.vmem [resolvable:$true] %s263_s14 }
  0x14   : > { %s5666_s17 = sshll.u32 %s5561_s16, 4  ;;  %s7735_s2 = sld [smem:[#allocation69_spill]]  ;;  %s290_s17 = int_to_ptr.vmem [resolvable:$true] %s5666_s17 }
  0x15   : > { %s7733_s12 = scalar_select %p5652_p3, 1, 0 }
  0x16   : > { %p4715_p4 = pneg %p5652_p3 }
  0x18   : > { %p5660_p5 = pnand %p4715_p4, %p7656_p1 }
  0x1a   : > { %s5275_s20 = scalar_lea.hbm %s7735_s2, 2048  ;;  %p5676_p7 = pneg %p5660_p5 }
  0x1b   : > { %p5276_p6 = scmp.ne.s32.totalorder %s7735_s2, %s5275_s20  ;;  %p5282_p10 = scmp.lt.u32.totalorder %s5275_s20, %s7735_s2 }
  0x1d   : > { %p5278_p8 = pnand %p5676_p7, %p5276_p6 }
  0x1f   : > { %p5279_p9 = pneg %p5278_p8 }
  0x21   : > { %p5284_p11 = pnand %p5282_p10, %p5279_p9 }
  0x23   : > { %5287 = shalt.err (!%p5284_p11)
}
  0x24   : > { %s5288_s26 = scalar_lea.vmem %s5650_s10, 2048  ;;  %p5296_p2 = scmp.lt.s32.totalorder %s5650_s10, %s5650_s10 }
  0x25   : > { %p5289_p12 = scmp.ne.s32.totalorder %s5650_s10, %s5288_s26  ;;  %p5297_p4 = scmp.lt.s32.totalorder %s5288_s26, %s5288_s26 }
  0x27   : > { %p5291_p13 = pnand %p5289_p12, %p5676_p7  ;;  %p5298_p6 = por %p5297_p4, %p5296_p2 }
  0x29   : > { %p5292_p0 = pneg %p5291_p13 }
  0x2b   : > { %p5299_p8 = pnand %p5298_p6, %p5292_p0 }
  0x2d   : > { %5302 = shalt.err (!%p5299_p8)
}
  0x2e   : > { %s7654_s9 = smov 128   ;;  %s7658_s13 = smov 8  }
  0x2f   : > { %4718 = dma.hbm_to_vmem [thread:$0]  (!%p5660_p5), %s7735_s2, 2048, %s5650_s10, [#allocation6], %s7654_s9, %s7654_s9, %s7658_s13  }
  0x30   : > { %s7737_s3 = sld [smem:[#allocation70_spill]] }
  0x36   : > { %s5303_s21 = scalar_lea.hbm %s7737_s3, 3072 }
  0x37   : > { %p5304_p9 = scmp.ne.s32.totalorder %s7737_s3, %s5303_s21  ;;  %p5310_p12 = scmp.lt.u32.totalorder %s5303_s21, %s7737_s3 }
  0x39   : > { %p5306_p10 = pnand %p5304_p9, %p5676_p7 }
  0x3b   : > { %p5307_p11 = pneg %p5306_p10 }
  0x3d   : > { %p5312_p13 = pnand %p5310_p12, %p5307_p11 }
  0x3f   : > { %5315 = shalt.err (!%p5312_p13)
}
  0x40   : > { %s5316_s10 = scalar_lea.vmem %s5664_s14, 3072  ;;  %p5324_p6 = scmp.lt.s32.totalorder %s5664_s14, %s5664_s14 }
  0x41   : > { %p5317_p0 = scmp.ne.s32.totalorder %s5664_s14, %s5316_s10  ;;  %p5325_p8 = scmp.lt.s32.totalorder %s5316_s10, %s5316_s10 }
  0x43   : > { %p5319_p2 = pnand %p5317_p0, %p5676_p7  ;;  %p5326_p9 = por %p5325_p8, %p5324_p6 }
  0x45   : > { %p5320_p4 = pneg %p5319_p2 }
  0x47   : > { %p5327_p10 = pnand %p5326_p9, %p5320_p4 }
  0x49   : > { %5330 = shalt.err (!%p5327_p10)
}
  0x4a   : > { %s5564_s16 = smov 192   ;;  %s5565_s18 = smov 12  }
  0x4b   : > { %4721 = dma.hbm_to_vmem [thread:$0]  (!%p5660_p5), %s7737_s3, 3072, %s5664_s14, [#allocation9], %s5564_s16, %s5564_s16, %s5565_s18  }
  0x4c   : > { %s7738_s5 = sld [smem:[#allocation72_spill]] }
  0x52   : > { %s5331_s24 = scalar_lea.hbm %s7738_s5, 2048 }
  0x53   : > { %p5332_p11 = scmp.ne.s32.totalorder %s7738_s5, %s5331_s24  ;;  %p5338_p0 = scmp.lt.u32.totalorder %s5331_s24, %s7738_s5 }
  0x55   : > { %p5334_p12 = pnand %p5332_p11, %p5676_p7 }
  0x57   : > { %p5335_p13 = pneg %p5334_p12 }
  0x59   : > { %p5340_p2 = pnand %p5338_p0, %p5335_p13 }
  0x5b   : > { %5343 = shalt.err (!%p5340_p2)
}
  0x5c   : > { %s5344_s19 = scalar_lea.vmem %s290_s17, 2048  ;;  %p5352_p9 = scmp.lt.s32.totalorder %s290_s17, %s290_s17 }
  0x5d   : > { %p5345_p4 = scmp.ne.s32.totalorder %s290_s17, %s5344_s19  ;;  %p5353_p10 = scmp.lt.s32.totalorder %s5344_s19, %s5344_s19 }
  0x5f   : > { %p5347_p6 = pnand %p5345_p4, %p5676_p7  ;;  %p5354_p1 = por %p5353_p10, %p5352_p9 }
  0x61   : > { %p5348_p8 = pneg %p5347_p6 }
  0x63   : > { %p5355_p3 = pnand %p5354_p1, %p5348_p8 }
  0x65   : > { %5358 = shalt.err (!%p5355_p3)
}
  0x66   : > { %s7739_s14 = smov 128   ;;  %s5566_s18 = smov [#allocation10]  }
  0x67   : > { %4727 = dma.hbm_to_vmem [thread:$0]  (!%p5660_p5), %s7738_s5, 2048, %s290_s17, [#allocation12], %s7739_s14, %s7739_s14, %s7658_s13  }
  0x68   : > { %s276_s20 = sshll.u32 %s5566_s18, 4  ;;  %s7740_s4 = sld [smem:[#allocation71_spill]]  ;;  %s277_s20 = int_to_ptr.vmem [resolvable:$true] %s276_s20 }
  0x6e   : > { %s5359_s24 = scalar_lea.hbm %s7740_s4, 1024 }
  0x6f   : > { %p5360_p1 = scmp.ne.s32.totalorder %s7740_s4, %s5359_s24  ;;  %p5366_p12 = scmp.lt.u32.totalorder %s5359_s24, %s7740_s4 }
  0x71   : > { %p5362_p3 = pnand %p5360_p1, %p5676_p7 }
  0x73   : > { %p5363_p11 = pneg %p5362_p3 }
  0x75   : > { %p5368_p13 = pnand %p5366_p12, %p5363_p11 }
  0x77   : > { %5371 = shalt.err (!%p5368_p13)
}
  0x78   : > { %s5372_s17 = scalar_lea.vmem %s277_s20, 1024  ;;  %p5380_p6 = scmp.lt.s32.totalorder %s277_s20, %s277_s20 }
  0x79   : > { %p5373_p0 = scmp.ne.s32.totalorder %s277_s20, %s5372_s17  ;;  %p5381_p8 = scmp.lt.s32.totalorder %s5372_s17, %s5372_s17 }
  0x7b   : > { %p5375_p2 = pnand %p5373_p0, %p5676_p7  ;;  %p5382_p9 = por %p5381_p8, %p5380_p6 }
  0x7d   : > { %p5376_p4 = pneg %p5375_p2 }
  0x7f   : > { %p5383_p10 = pnand %p5382_p9, %p5376_p4 }
  0x81   : > { %5386 = shalt.err (!%p5383_p10)
}
  0x82   : > { %s5567_s9 = smov 64   ;;  %s5568_s16 = smov 4  }
  0x83   : > { %4724 = dma.hbm_to_vmem [thread:$0]  (!%p5660_p5), %s7740_s4, 1024, %s277_s20, [#allocation9], %s5567_s9, %s5567_s9, %s5568_s16  }
  0x84   : > { %s5569_s22 = smov [#allocation13]   ;;  %s5387_s10 = scalar_lea.hbm %s7651_s6, 2048 }
  0x85   : > { %s302_s24 = sshll.u32 %s5569_s22, 4  ;;  %p5388_p1 = scmp.ne.s32.totalorder %s7651_s6, %s5387_s10  ;;  %s303_s24 = int_to_ptr.vmem [resolvable:$true] %s302_s24 }
  0x86   : > { %p5394_p12 = scmp.lt.u32.totalorder %s5387_s10, %s7651_s6 }
  0x87   : > { %p5390_p3 = pnand %p5388_p1, %p5676_p7 }
  0x89   : > { %p5391_p11 = pneg %p5390_p3 }
  0x8b   : > { %p5396_p13 = pnand %p5394_p12, %p5391_p11 }
  0x8d   : > { %5399 = shalt.err (!%p5396_p13)
}
  0x8e   : > { %s5400_s20 = scalar_lea.vmem %s303_s24, 2048  ;;  %p5408_p6 = scmp.lt.s32.totalorder %s303_s24, %s303_s24 }
  0x8f   : > { %p5401_p0 = scmp.ne.s32.totalorder %s303_s24, %s5400_s20  ;;  %p5409_p8 = scmp.lt.s32.totalorder %s5400_s20, %s5400_s20 }
  0x91   : > { %p5403_p2 = pnand %p5401_p0, %p5676_p7  ;;  %p5410_p9 = por %p5409_p8, %p5408_p6 }
  0x93   : > { %p5404_p4 = pneg %p5403_p2 }
  0x95   : > { %p5411_p10 = pnand %p5410_p9, %p5404_p4 }
  0x97   : > { %5414 = shalt.err (!%p5411_p10)
}
  0x98   : > { %4730 = dma.hbm_to_vmem [thread:$0]  (!%p5660_p5), %s7651_s6, 2048, %s303_s24, [#allocation12], %s5567_s9, %s5567_s9, %s5568_s16  }
  0x99   : > { %s3964_s2 = sadd.s32 4294967294, %s5557_s30   ;;  %s5783_s15 = sadd.s32 1, %s5557_s30  }
  0x9a   : > { %s36_s23 = sadd.s32 1, %s5553_s29  ;;  %s33_s13 = ssub.s32 %s5557_s30, %s5783_s15 }
  0x9b   : > { %p43_p7 = scmp.ne.s32.totalorder %s5553_s29, %s5549_s28  ;;  %p34_p1 = scmp.eq.s32.totalorder %s33_s13, 0 }
  0x9c   : > { %p44_p3 = scmp.eq.s32.totalorder %s5557_s30, 0  ;;  %p49_p11 = scmp.ne.s32.totalorder %s5549_s28, %s5545_s27 }
  0x9d   : > { %p225_p12 = scmp.eq.s32.totalorder %s5645_s11, 3  ;;  %p7741_p0 = scmp.eq.s32.totalorder %s5645_s11, 0 }
  0x9e   : > { %s5795_s22 = scalar_select %p34_p1, %s5553_s29, %s36_s23  }
  0x9f   : > { %p45_p13 = por %p44_p3, %p43_p7  ;;  %p5799_p2 = por %p7741_p0, %p49_p11 }
  0xa0   : > { %p5803_p5 = por %p225_p12, %p43_p7  ;;  %p231_p4 = scmp.eq.s32.totalorder %s3964_s2, 3 }
  0xa1   : > { %s7742_s9 = scalar_select %p5799_p2, 1, 0 }
  0xa2   : > { %s7743_s16 = scalar_select %p5803_p5, 1, 0 }
  0xa3   : > { %p4747_p6 = scmp.lt.s32.totalorder %s5557_s30, 4  ;;  %s5809_s24 = sand.u32 1, %s5553_s29  }
  0xa4   : > { %p5811_p8 = por %p231_p4, %p49_p11  ;;  %s3972_s26 = sshll.u32 %s5809_s24, 7 }
  0xa5   : > { %s4094_s10 = sshll.u32 %s5557_s30, 11  ;;  %s7745_s0 = sld [smem:[#allocation68_spill]] }
  0xa6   : > { %s7744_s25 = scalar_select %p5811_p8, 1, 0 }
  0xa7   : > { %s323_s18 = scalar_lea.vmem [#allocation2], %s3972_s26  ;;  %p5822_p9 = pnand %p4747_p6, %p45_p13 }
  0xa8   : > { %s331_s21 = sshll.u32 %s323_s18, 4  ;;  %s320_s13 = scalar_lea.sflag [#allocation3], %s5809_s24  ;;  %s5826_s21 = int_to_ptr.vmem [resolvable:$true] %s331_s21 }
  0xa9   : > { %p5417_p7 = pneg %p5822_p9 }
  0xab   : > { %s5820_s20 = scalar_lea.hbm %s7745_s0, %s4094_s10  ;;  %s5420_s19 = scalar_lea.hbm %s7745_s0, 8192 }
  0xac   : > { %s5415_s3 = scalar_lea.hbm %s5820_s20, 2048  ;;  %p5421_p11 = scmp.lt.u32.totalorder %s5820_s20, %s7745_s0 }
  0xad   : > { %p5416_p10 = scmp.ne.s32.totalorder %s5820_s20, %s5415_s3  ;;  %p5422_p12 = scmp.lt.u32.totalorder %s5420_s19, %s5415_s3 }
  0xae   : > { %p5424_p0 = scmp.lt.u32.totalorder %s5415_s3, %s5820_s20 }
  0xaf   : > { %p5418_p1 = pnand %p5417_p7, %p5416_p10  ;;  %p5423_p13 = por %p5422_p12, %p5421_p11 }
  0xb1   : > { %p5419_p3 = pneg %p5418_p1  ;;  %p5425_p4 = por %p5424_p0, %p5423_p13 }
  0xb3   : > { %p5426_p6 = pnand %p5425_p4, %p5419_p3 }
  0xb5   : > { %5429 = shalt.err (!%p5426_p6)
}
  0xb6   : > { %s5430_s23 = scalar_lea.vmem %s5826_s21, 2048  ;;  %s5570_s26 = smov [#allocation2]  }
  0xb7   : > { %p5431_p10 = scmp.ne.s32.totalorder %s5826_s21, %s5430_s23  ;;  %s5435_s10 = sshll.u32 %s5570_s26, 4  ;;  %s5436_s10 = int_to_ptr.vmem [resolvable:$false] %s5435_s10 }
  0xb8   : > { %s5437_s17 = scalar_lea.vmem %s5436_s10, 4096  ;;  %p5438_p5 = scmp.lt.s32.totalorder %s5826_s21, %s5436_s10 }
  0xb9   : > { %p5433_p1 = pnand %p5431_p10, %p5417_p7  ;;  %p5439_p11 = scmp.lt.s32.totalorder %s5437_s17, %s5430_s23 }
  0xbb   : > { %p5434_p8 = pneg %p5433_p1  ;;  %p5440_p12 = por %p5439_p11, %p5438_p5 }
  0xbd   : > { %p5441_p13 = pnand %p5440_p12, %p5434_p8 }
  0xbf   : > { %5444 = shalt.err (!%p5441_p13)
}
  0xc0   : > { %s7747_s3 = smov 8   ;;  %s3976_s19 = sshll.u32 %s5557_s30, 4 }
  0xc1   : > { %4734 = dma.hbm_to_vmem [thread:$0]  (!%p5822_p9), %s5820_s20, 2048, %s5826_s21, %s320_s13, %s7739_s14, %s7739_s14, %s7747_s3  }
  0xc2   : > { %s5864_s26 = scalar_lea.hbm %s7646_s1, %s3976_s19  ;;  %s344_s10 = scalar_lea.vmem [#allocation5], %s5809_s24 }
  0xc3   : > { %s351_s17 = sshll.u32 %s344_s10, 4  ;;  %s7748_s0 = sand.u32 1, %s5557_s30   ;;  %s352_s17 = int_to_ptr.vmem [resolvable:$true] %s351_s17 }
  0xc4   : > { %s342_s4 = scalar_lea.sflag [#allocation6], %s7748_s0  ;;  %s5445_s5 = scalar_lea.hbm %s5864_s26, 16 }
  0xc5   : > { %p5446_p5 = scmp.ne.s32.totalorder %s5864_s26, %s5445_s5  ;;  %s5450_s21 = scalar_lea.hbm %s7646_s1, 64 }
  0xc6   : > { %p5451_p0 = scmp.lt.u32.totalorder %s5864_s26, %s7646_s1  ;;  %p5452_p4 = scmp.lt.u32.totalorder %s5450_s21, %s5445_s5 }
  0xc7   : > { %p5448_p8 = pnand %p5446_p5, %p5417_p7  ;;  %p5454_p10 = scmp.lt.u32.totalorder %s5445_s5, %s5864_s26 }
  0xc8   : > { %p5453_p6 = por %p5452_p4, %p5451_p0 }
  0xc9   : > { %p5449_p3 = pneg %p5448_p8 }
  0xca   : > { %p5455_p1 = por %p5454_p10, %p5453_p6 }
  0xcc   : > { %p5456_p11 = pnand %p5455_p1, %p5449_p3 }
  0xce   : > { %5459 = shalt.err (!%p5456_p11)
}
  0xcf   : > { %s5460_s0 = scalar_lea.vmem %s352_s17, 16  ;;  %s5571_s24 = smov [#allocation5]  }
  0xd0   : > { %p5461_p12 = scmp.ne.s32.totalorder %s352_s17, %s5460_s0  ;;  %s5465_s19 = sshll.u32 %s5571_s24, 4  ;;  %s5466_s19 = int_to_ptr.vmem [resolvable:$false] %s5465_s19 }
  0xd1   : > { %s5467_s18 = scalar_lea.vmem %s5466_s19, 32  ;;  %p5468_p8 = scmp.lt.s32.totalorder %s352_s17, %s5466_s19 }
  0xd2   : > { %p5463_p13 = pnand %p5461_p12, %p5417_p7  ;;  %p5469_p2 = scmp.lt.s32.totalorder %s5467_s18, %s5460_s0 }
  0xd4   : > { %p5464_p5 = pneg %p5463_p13  ;;  %p5470_p0 = por %p5469_p2, %p5468_p8 }
  0xd6   : > { %p5471_p4 = pnand %p5470_p0, %p5464_p5 }
  0xd8   : > { %5474 = shalt.err (!%p5471_p4)
}
  0xd9   : > { %4737 = dma.hbm_to_vmem [thread:$0]  (!%p5822_p9), %s5864_s26, 16, %s352_s17, %s342_s4  }
  0xda   : > { %p7749_p3 = scmp.ne.s32.totalorder %s7733_s12, 0 }
  0xdc   : > { %360 = sbr.rel (%p7749_p3) target bundleno = 2522 (0x9da), region = 52 }
  0xe3   : > { %s5891_s5 = sand.u32 1, %s5549_s28   ;;  %p7750_p2 = scmp.ne.s32.totalorder %s7742_s9, 0 }
  0xe4   : > { %s3978_s23 = sshll.u32 %s5891_s5, 7  ;;  %s363_s10 = scalar_lea.sflag [#allocation3], %s5891_s5 }
  0xe5   : > { %s5897_s14 = scalar_lea.vmem [#allocation2], %s3978_s23 }
  0xe6   : > { %5520 = dma.done.wait (%p7750_p2), %s363_s10, 2048  }
  0xe7   : > { %5522 = vsyncadd (%p7750_p2), %s363_s10, 4294965248  ;;  %s371_s4 = sand.u32 1, %s5645_s11   ;;  %s374_s2 = scalar_lea.vmem [#allocation5], %s5891_s5 }
  0xe8   : > { %s372_s12 = scalar_lea.sflag [#allocation6], %s371_s4 }
  0xe9   : > { %5524 = dma.done.wait (%p7750_p2), %s372_s12, 16  }
  0xea   : > { %5526 = vsyncadd (%p7750_p2), %s372_s12, 4294967280  ;;  %p7751_p9 = scmp.eq.s32.totalorder %s5645_s11, 0 }
  0xec   : > { %5528 = dma.done.wait (%p7751_p9), [#allocation6], 2048   ;;  %p7752_p7 = pmov %p7751_p9 }
  0xee   : > { %5530 = vsyncadd (%p7752_p7), [#allocation6], 4294965248  ;;  %p7753_p6 = pmov %p7752_p7 }
  0xf0   : > { %5532 = dma.done.wait (%p7753_p6), [#allocation9], 4096   ;;  %p7754_p10 = pmov %p7753_p6 }
  0xf1   : > { %p7755_p1 = pmov %p7753_p6 }
  0xf2   : > { %5534 = vsyncadd (%p7754_p10), [#allocation9], 4294963200 }
  0xf3   : > { %5536 = dma.done.wait (%p7755_p1), [#allocation12], 4096   ;;  %p7756_p11 = pmov %p7755_p1 }
  0xf4   : > { %v7662_v0 = vmov 0   ;;  %v4923_v1 = vld [vmem:[#allocation8 + $0x4] ss:$12 sps:$4 sm:$0xff]   ;;  %v4925_v2 = vld [vmem:[#allocation8] ss:$12 sps:$4 sm:$0xff]   ;;  %v437_v27 = vld [vmem:[%s5897_s14 + $0x18] sm:$0xff]  ;;  %v500_v49 = vlaneseq }
  0xf5   : > { %5538 = vsyncadd (%p7756_p11), [#allocation12], 4294963200  ;;  %675 = vmatprep.mubr.bf16.mxu0 %v7662_v0  ;;  %643 = vmatprep.subr.bf16.mxu0 %v4923_v1  ;;  %v4926_v3 = vld [vmem:[#allocation8 + $0x1c] ss:$12 sps:$4 sm:$0xff]   ;;  %v4928_v4 = vld [vmem:[#allocation8 + $0x18] ss:$12 sps:$4 sm:$0xff]  }
  0xf6   : > { %644 = vmatpush1.bf16.msra.mxu0 %v4925_v2  ;;  %v4929_v5 = vld [vmem:[#allocation8 + $0x34] ss:$12 sps:$4 sm:$0xff]   ;;  %v4931_v6 = vld [vmem:[#allocation8 + $0x30] ss:$12 sps:$4 sm:$0xff]   ;;  %v4932_v7 = vld [vmem:[#allocation8 + $0x4c] ss:$12 sps:$4 sm:$0xff]  }
  0xf7   : > { %645 = vmatprep.subr.bf16.mxu0 %v4926_v3  ;;  %v434_v8 = vld [vmem:[%s5897_s14] sm:$0xff]  ;;  %v4934_v9 = vld [vmem:[#allocation8 + $0x48] ss:$12 sps:$4 sm:$0xff]   ;;  %v4944_v21 = vld [vmem:[#allocation8 + $0xac] ss:$12 sps:$4 sm:$0xff]   ;;  %v5945_v50 = vshrl.u32 %v500_v49, 7 }
  0xf8   : > { %v435_v10 = vld [vmem:[%s5897_s14 + $0x8] sm:$0xff]  ;;  %v4941_v18 = vld [vmem:[#allocation8 + $0x94] ss:$12 sps:$4 sm:$0xff]   ;;  %v4943_v20 = vld [vmem:[#allocation8 + $0x90] ss:$12 sps:$4 sm:$0xff]   ;;  %vm1108_vm0 = vcmask 261120  }
  0xf9   : > { %v4935_v11 = vld [vmem:[#allocation8 + $0x64] ss:$12 sps:$4 sm:$0xff]   ;;  %v450_v12 = vpack.c.bf16 %v435_v10, %v434_v8  ;;  %v4937_v13 = vld [vmem:[#allocation8 + $0x60] ss:$12 sps:$4 sm:$0xff]   ;;  %v4938_v14 = vld [vmem:[#allocation8 + $0x7c] ss:$12 sps:$4 sm:$0xff]  }
  0xfa   : > { %646 = vmatpush1.bf16.msra.mxu0 %v4928_v4  ;;  %v4947_v15 = vld [vmem:[#allocation8 + $0x8] ss:$12 sps:$4 sm:$0xff]   ;;  %v4948_v16 = vld [vmem:[#allocation8 + $0x20] ss:$12 sps:$4 sm:$0xff]   ;;  %v4940_v17 = vld [vmem:[#allocation8 + $0x78] ss:$12 sps:$4 sm:$0xff]  }
  0xfb   : > { %647 = vmatprep.subr.bf16.mxu0 %v4929_v5  ;;  %4337 = vmatprep.mubr.bf16.mxu1 %v450_v12  ;;  %v4949_v19 = vld [vmem:[#allocation8 + $0x38] ss:$12 sps:$4 sm:$0xff]   ;;  %v4950_v22 = vld [vmem:[#allocation8 + $0x50] ss:$12 sps:$4 sm:$0xff]   ;;  %v4946_v23 = vld [vmem:[#allocation8 + $0xa8] ss:$12 sps:$4 sm:$0xff]  }
  0xfc   : > { %4321 = vmatprep.subr.bf16.mxu1 %v4947_v15  ;;  %v4951_v24 = vld [vmem:[#allocation8 + $0x68] ss:$12 sps:$4 sm:$0xff]   ;;  %v4952_v25 = vld [vmem:[#allocation8 + $0x80] ss:$12 sps:$4 sm:$0xff]   ;;  %v4953_v28 = vld [vmem:[#allocation8 + $0x98] ss:$12 sps:$4 sm:$0xff]  }
  0xfd   : > { %4322 = vmatpush3.bf16.msra.mxu1 %v4947_v15  ;;  %v436_v26 = vld [vmem:[%s5897_s14 + $0x10] sm:$0xff]  ;;  %v438_v31 = vld [vmem:[%s5897_s14 + $0x20] sm:$0xff]  ;;  %v439_v32 = vld [vmem:[%s5897_s14 + $0x28] sm:$0xff]  ;;  %7757 = vst [vmem:[#allocation21_spill] sm:$0xff] %v5945_v50  ;;  %v5948_v51 = vsub.s32 0, %v5945_v50  ;;  %v7661_v53 = vsub.s32 1, %v5945_v50 }
  0xfe   : > { %648 = vmatpush1.bf16.msra.mxu0 %v4931_v6  ;;  %4323 = vmatprep.subr.bf16.mxu1 %v4948_v16  ;;  %v451_v29 = vpack.c.bf16 %v437_v27, %v436_v26  ;;  %v4954_v30 = vld [vmem:[#allocation8 + $0xb0] ss:$12 sps:$4 sm:$0xff]   ;;  %v452_v33 = vpack.c.bf16 %v439_v32, %v438_v31  ;;  %v443_v38 = vld [vmem:[%s5897_s14 + $0x48] sm:$0xff]  ;;  %s5573_s17 = smov 96   ;;  %v510_v6 = vsub.s32 2, %v5945_v50  ;;  %s5574_s20 = smov 64  }
  0xff   : > { %649 = vmatprep.subr.bf16.mxu0 %v4932_v7  ;;  %v440_v34 = vld [vmem:[%s5897_s14 + $0x30] sm:$0xff]  ;;  %v441_v35 = vld [vmem:[%s5897_s14 + $0x38] sm:$0xff]  ;;  %v442_v37 = vld [vmem:[%s5897_s14 + $0x40] sm:$0xff]  ;;  %7758 = vst [vmem:[#allocation22_spill] sm:$0xff] %v5948_v51  ;;  %s5575_s21 = smov 32   ;;  %vm2957_vm1 = vcmask 523264  }
 0x100   : > { %v453_v36 = vpack.c.bf16 %v441_v35, %v440_v34  ;;  %v454_v39 = vpack.c.bf16 %v443_v38, %v442_v37  ;;  %v444_v40 = vld [vmem:[%s5897_s14 + $0x50] sm:$0xff]  ;;  %v445_v41 = vld [vmem:[%s5897_s14 + $0x58] sm:$0xff]  ;;  %v446_v42 = vld [vmem:[%s5897_s14 + $0x60] sm:$0xff]  ;;  %vm2974_vm2 = vcmask 785408   ;;  %p7891_p13 = scmp.ne.s32.totalorder %s7743_s16, 0  ;;  %s5576_s19 = smov [#allocation14]  }
 0x101   : > { %4324 = vmatpush3.bf16.msra.mxu1 %v4948_v16  ;;  %v447_v43 = vld [vmem:[%s5897_s14 + $0x68] sm:$0xff]  ;;  %v455_v44 = vpack.c.bf16 %v445_v41, %v444_v40  ;;  %v448_v46 = vld [vmem:[%s5897_s14 + $0x70] sm:$0xff]  ;;  %v449_v47 = vld [vmem:[%s5897_s14 + $0x78] sm:$0xff]  ;;  %s5479_s18 = sshll.u32 %s5576_s19, 4  ;;  %s5480_s18 = int_to_ptr.vmem [resolvable:$false] %s5479_s18 }
 0x102   : > { %650 = vmatpush1.bf16.msra.mxu0 %v4934_v9  ;;  %4325 = vmatprep.subr.bf16.mxu1 %v4949_v19  ;;  %v456_v45 = vpack.c.bf16 %v447_v43, %v446_v42  ;;  %v457_v48 = vpack.c.bf16 %v449_v47, %v448_v46  ;;  %v459_v52 = vld [vmem:[%s7652_s7] sm:$0x7]  ;;  %s5481_s10 = scalar_lea.vmem %s5480_s18, 4096 }
 0x103   : > { %651 = vmatprep.subr.bf16.mxu0 %v4935_v11  ;;  %v5955_v54 = vrot.slane %v459_v52, %v5948_v51  ;;  %v5959_v56 = vrot.slane %v459_v52, %v7661_v53 }
 0x105   : > { %4326 = vmatpush3.bf16.msra.mxu1 %v4949_v19 }
 0x106   : > { %652 = vmatpush1.bf16.msra.mxu0 %v4937_v13  ;;  %4327 = vmatprep.subr.bf16.mxu1 %v4950_v22 }
 0x107   : > { %653 = vmatprep.subr.bf16.mxu0 %v4938_v14  ;;  %v5984_v14 = vrot.slane %v459_v52, %v510_v6 }
 0x109   : > { %4328 = vmatpush3.bf16.msra.mxu1 %v4950_v22 }
 0x10a   : > { %654 = vmatpush1.bf16.msra.mxu0 %v4940_v17  ;;  %4329 = vmatprep.subr.bf16.mxu1 %v4951_v24 }
 0x10b   : > { %655 = vmatprep.subr.bf16.mxu0 %v4941_v18 }
 0x10d   : > { %4330 = vmatpush3.bf16.msra.mxu1 %v4951_v24 }
 0x10e   : > { %656 = vmatpush1.bf16.msra.mxu0 %v4943_v20  ;;  %4331 = vmatprep.subr.bf16.mxu1 %v4952_v25 }
 0x10f   : > { %657 = vmatprep.subr.bf16.mxu0 %v4944_v21 }
 0x111   : > { %4332 = vmatpush3.bf16.msra.mxu1 %v4952_v25 }
 0x112   : > { %658 = vmatpush1.bf16.msra.mxu0 %v4946_v23  ;;  %4333 = vmatprep.subr.bf16.mxu1 %v4953_v28 }
 0x115   : > { %676 = vmatmul.mubr.bf16.vlgmr.msra.gmra.mrb[0].mxu0 %v450_v12  ;;  %4334 = vmatpush3.bf16.msra.mxu1 %v4953_v28 }
 0x116   : > { %685 = vmatprep.mubr.bf16.mxu0 %v7662_v0  ;;  %4335 = vmatprep.subr.bf16.mxu1 %v4954_v30 }
 0x119   : > { %4336 = vmatpush3.bf16.msra.mxu1 %v4954_v30 }
 0x11c   : > { %4338 = vmatmul.mubr.bf16.vlgmr.msra.gmra.mrb[0].mxu1 %v451_v29 }
 0x11d   : > { %686 = vmatmul.mubr.bf16.gmra.mrb[4].mxu0 %v451_v29  ;;  %4341 = vmatprep.mubr.bf16.mxu1 %v452_v33 }
 0x11e   : > { %695 = vmatprep.mubr.bf16.mxu0 %v7662_v0 }
 0x124   : > { %4342 = vmatmul.mubr.bf16.gmra.mrb[4].mxu1 %v453_v36 }
 0x125   : > { %696 = vmatmul.mubr.bf16.gmra.mrb[8].mxu0 %v452_v33  ;;  %4345 = vmatprep.mubr.bf16.mxu1 %v454_v39 }
 0x126   : > { %705 = vmatprep.mubr.bf16.mxu0 %v7662_v0 }
 0x12c   : > { %4346 = vmatmul.mubr.bf16.gmra.mrb[8].mxu1 %v455_v44 }
 0x12d   : > { %706 = vmatmul.mubr.bf16.gmra.mrb[12].mxu0 %v453_v36  ;;  %4349 = vmatprep.mubr.bf16.mxu1 %v456_v45 }
 0x12e   : > { %715 = vmatprep.mubr.bf16.mxu0 %v7662_v0 }
 0x134   : > { %4350 = vmatmul.mubr.bf16.gmra.mrb[12].mxu1 %v457_v48 }
 0x135   : > { %716 = vmatmul.mubr.bf16.gmra.mrb[16].mxu0 %v454_v39 }
 0x136   : > { %725 = vmatprep.mubr.bf16.mxu0 %v7662_v0 }
 0x13d   : > { %726 = vmatmul.mubr.bf16.gmra.mrb[20].mxu0 %v455_v44 }
 0x13e   : > { %735 = vmatprep.mubr.bf16.mxu0 %v7662_v0 }
 0x145   : > { %736 = vmatmul.mubr.bf16.gmra.mrb[24].mxu0 %v456_v45 }
 0x146   : > { %745 = vmatprep.mubr.bf16.mxu0 %v7662_v0 }
 0x14d   : > { %746 = vmatmul.mubr.bf16.gmra.mrb[28].mxu0 %v457_v48 }
 0x1e8   : > { %v677_v55 = vpop.f32.mrb[0].mxu0 }
 0x1e9   : > { %v679_v57 = vpop.f32.mrb[1].mxu0  ;;  %v678_v59 = vadd.f32 %v677_v55, %v5955_v54 }
 0x1ea   : > { %v681_v58 = vpop.f32.mrb[2].mxu0  ;;  %v680_v62 = vadd.f32 %v679_v57, %v5959_v56 }
 0x1eb   : > { %v682_v60 = vadd.f32 %v681_v58, %v5955_v54  ;;  %v683_v61 = vpop.f32.mrb[3].mxu0 }
 0x1ec   : > { %v684_v63 = vadd.f32 %v683_v61, %v5959_v56 }
 0x1ed   : > { %v5965_v1 = vpack.c.bf16 %v682_v60, %v678_v59 }
 0x1ee   : > { %v5967_v2 = vpack.c.bf16 %v684_v63, %v680_v62 }
 0x1ef   : > { %885 = vrot.lane.b32.xlu0 %v5965_v1, %s5573_s17  ;;  %4657 = vmatprep.subr.msk.bf16.mxu0 %vm1108_vm0, %v5965_v1  ;;  %v1134_v3 = vsel %vm1108_vm0, %v5965_v1, 0  ;;  %v4339_v18 = vpop.f32.mrb[0].mxu1 }
 0x1f0   : > { %v687_v4 = vpop.f32.mrb[4].mxu0  ;;  %4354 = vmatpush3.bf16.xpose.msra.mxu0 %v1134_v3  ;;  %4369 = vmatprep.mubr.msk.bf16.mxu0 %vm1108_vm0, %v5967_v2  ;;  %v799_v20 = vadd.f32 %v4339_v18, %v5984_v14  ;;  %v790_v21 = vpop.f32.mrb[1].mxu1 }
 0x1f1   : > { %v689_v5 = vpop.f32.mrb[5].mxu0  ;;  %v688_v9 = vadd.f32 %v687_v4, %v5955_v54  ;;  %v791_v24 = vadd.f32 %v790_v21, %v5984_v14  ;;  %v4340_v25 = vpop.f32.mrb[2].mxu1 }
 0x1f2   : > { %v690_v7 = vadd.f32 %v689_v5, %v5959_v56  ;;  %v691_v8 = vpop.f32.mrb[6].mxu0  ;;  %v802_v29 = vadd.f32 %v4340_v25, %v5984_v14  ;;  %v793_v30 = vpop.f32.mrb[3].mxu1 }
 0x1f3   : > { %v692_v10 = vadd.f32 %v691_v8, %v5955_v54  ;;  %v693_v11 = vpop.f32.mrb[7].mxu0  ;;  %v794_v32 = vadd.f32 %v793_v30, %v5984_v14 }
 0x1f4   : > { %v694_v12 = vadd.f32 %v693_v11, %v5959_v56  ;;  %v6004_v34 = vpack.c.bf16 %v802_v29, %v799_v20 }
 0x1f5   : > { %v5982_v13 = vpack.c.bf16 %v692_v10, %v688_v9  ;;  %v6008_v36 = vpack.c.bf16 %v794_v32, %v791_v24 }
 0x1f6   : > { %v5986_v15 = vpack.c.bf16 %v694_v12, %v690_v7 }
 0x1f7   : > { %887 = vrot.lane.b32.xlu0 %v5982_v13, %s5573_s17  ;;  %4658 = vmatprep.subr.msk.bf16.mxu0 %vm1108_vm0, %v5982_v13  ;;  %v1137_v16 = vsel %vm1108_vm0, %v5982_v13, 0  ;;  %v4343_v39 = vpop.f32.mrb[4].mxu1 }
 0x1f8   : > { %v697_v17 = vpop.f32.mrb[8].mxu0  ;;  %4356 = vmatpush3.bf16.xpose.msra.mxu0 %v1137_v16  ;;  %v815_v41 = vadd.f32 %v4343_v39, %v5984_v14  ;;  %v806_v42 = vpop.f32.mrb[5].mxu1 }
 0x1f9   : > { %v699_v19 = vpop.f32.mrb[9].mxu0  ;;  %v698_v26 = vadd.f32 %v697_v17, %v5955_v54  ;;  %v807_v45 = vadd.f32 %v806_v42, %v5984_v14  ;;  %v4344_v46 = vpop.f32.mrb[6].mxu1 }
 0x1fa   : > { %v700_v22 = vadd.f32 %v699_v19, %v5959_v56  ;;  %v701_v23 = vpop.f32.mrb[10].mxu0  ;;  %v818_v52 = vadd.f32 %v4344_v46, %v5984_v14  ;;  %v809_v55 = vpop.f32.mrb[7].mxu1 }
 0x1fb   : > { %v702_v27 = vadd.f32 %v701_v23, %v5955_v54  ;;  %v703_v28 = vpop.f32.mrb[11].mxu0  ;;  %v810_v58 = vadd.f32 %v809_v55, %v5984_v14 }
 0x1fc   : > { %v704_v31 = vadd.f32 %v703_v28, %v5959_v56  ;;  %v6026_v60 = vpack.c.bf16 %v818_v52, %v815_v41 }
 0x1fd   : > { %v6002_v33 = vpack.c.bf16 %v702_v27, %v698_v26  ;;  %v6030_v62 = vpack.c.bf16 %v810_v58, %v807_v45 }
 0x1fe   : > { %v6006_v35 = vpack.c.bf16 %v704_v31, %v700_v22 }
 0x1ff   : > { %889 = vrot.lane.b32.xlu1 %v6002_v33, %s5573_s17  ;;  %4659 = vmatprep.subr.msk.bf16.mxu0 %vm1108_vm0, %v6002_v33  ;;  %v1140_v37 = vsel %vm1108_vm0, %v6002_v33, 0  ;;  %v4347_v4 = vpop.f32.mrb[8].mxu1 }
 0x200   : > { %v707_v38 = vpop.f32.mrb[12].mxu0  ;;  %4358 = vmatpush3.bf16.xpose.msra.mxu0 %v1140_v37  ;;  %v831_v6 = vadd.f32 %v4347_v4, %v5984_v14  ;;  %v822_v7 = vpop.f32.mrb[9].mxu1 }
 0x201   : > { %v709_v40 = vpop.f32.mrb[13].mxu0  ;;  %v708_v47 = vadd.f32 %v707_v38, %v5955_v54  ;;  %v823_v10 = vadd.f32 %v822_v7, %v5984_v14  ;;  %v4348_v11 = vpop.f32.mrb[10].mxu1 }
 0x202   : > { %v710_v43 = vadd.f32 %v709_v40, %v5959_v56  ;;  %v711_v44 = vpop.f32.mrb[14].mxu0  ;;  %v834_v18 = vadd.f32 %v4348_v11, %v5984_v14  ;;  %v825_v19 = vpop.f32.mrb[11].mxu1 }
 0x203   : > { %v712_v48 = vadd.f32 %v711_v44, %v5955_v54  ;;  %v713_v49 = vpop.f32.mrb[15].mxu0  ;;  %v826_v21 = vadd.f32 %v825_v19, %v5984_v14 }
 0x204   : > { %v714_v57 = vadd.f32 %v713_v49, %v5959_v56  ;;  %v6048_v23 = vpack.c.bf16 %v834_v18, %v831_v6 }
 0x205   : > { %v6024_v59 = vpack.c.bf16 %v712_v48, %v708_v47  ;;  %v6052_v25 = vpack.c.bf16 %v826_v21, %v823_v10 }
 0x206   : > { %v6028_v61 = vpack.c.bf16 %v714_v57, %v710_v43  ;;  %7759 = vst [vmem:[#allocation23_spill] sm:$0xff] %v6048_v23 }
 0x207   : > { %891 = vrot.lane.b32.xlu1 %v6024_v59, %s5573_s17  ;;  %4660 = vmatprep.subr.msk.bf16.mxu0 %vm1108_vm0, %v6024_v59  ;;  %v1143_v63 = vsel %vm1108_vm0, %v6024_v59, 0  ;;  %v4351_v28 = vpop.f32.mrb[12].mxu1 }
 0x208   : > { %v717_v3 = vpop.f32.mrb[16].mxu0  ;;  %4360 = vmatpush3.bf16.xpose.msra.mxu0 %v1143_v63  ;;  %v847_v30 = vadd.f32 %v4351_v28, %v5984_v14  ;;  %v838_v31 = vpop.f32.mrb[13].mxu1 }
 0x209   : > { %v719_v5 = vpop.f32.mrb[17].mxu0  ;;  %v718_v12 = vadd.f32 %v717_v3, %v5955_v54  ;;  %v839_v38 = vadd.f32 %v838_v31, %v5984_v14  ;;  %v4352_v39 = vpop.f32.mrb[14].mxu1 }
 0x20a   : > { %v720_v8 = vadd.f32 %v719_v5, %v5959_v56  ;;  %v721_v9 = vpop.f32.mrb[18].mxu0  ;;  %v850_v43 = vadd.f32 %v4352_v39, %v5984_v14  ;;  %v841_v44 = vpop.f32.mrb[15].mxu1 }
 0x20b   : > { %v722_v16 = vadd.f32 %v721_v9, %v5955_v54  ;;  %v723_v17 = vpop.f32.mrb[19].mxu0  ;;  %v842_v46 = vadd.f32 %v841_v44, %v5984_v14 }
 0x20c   : > { %v724_v20 = vadd.f32 %v723_v17, %v5959_v56  ;;  %v6068_v48 = vpack.c.bf16 %v850_v43, %v847_v30 }
 0x20d   : > { %v6046_v22 = vpack.c.bf16 %v722_v16, %v718_v12  ;;  %v6072_v52 = vpack.c.bf16 %v842_v46, %v839_v38 }
 0x20e   : > { %v6050_v24 = vpack.c.bf16 %v724_v20, %v720_v8  ;;  %7760 = vst [vmem:[#allocation24_spill] sm:$0xff] %v6068_v48 }
 0x20f   : > { %893 = vrot.lane.b32.xlu0 %v6046_v22, %s5573_s17  ;;  %4661 = vmatprep.subr.msk.bf16.mxu0 %vm1108_vm0, %v6046_v22  ;;  %v1146_v26 = vsel %vm1108_vm0, %v6046_v22, 0  ;;  %7761 = vst [vmem:[#allocation25_spill] sm:$0xff] %v6072_v52 }
 0x210   : > { %v727_v27 = vpop.f32.mrb[20].mxu0  ;;  %4362 = vmatpush3.bf16.xpose.msra.mxu0 %v1146_v26 }
 0x211   : > { %v729_v29 = vpop.f32.mrb[21].mxu0  ;;  %v728_v40 = vadd.f32 %v727_v27, %v5955_v54 }
 0x212   : > { %v730_v32 = vadd.f32 %v729_v29, %v5959_v56  ;;  %v731_v37 = vpop.f32.mrb[22].mxu0 }
 0x213   : > { %v732_v41 = vadd.f32 %v731_v37, %v5955_v54  ;;  %v733_v42 = vpop.f32.mrb[23].mxu0 }
 0x214   : > { %v734_v45 = vadd.f32 %v733_v42, %v5959_v56 }
 0x215   : > { %v868_v47 = vpack.c.bf16 %v732_v41, %v728_v40 }
 0x216   : > { %v6070_v49 = vpack.c.bf16 %v734_v45, %v730_v32 }
 0x217   : > { %895 = vrot.lane.b32.xlu1 %v868_v47, %s5573_s17  ;;  %4662 = vmatprep.subr.msk.bf16.mxu0 %vm1108_vm0, %v868_v47  ;;  %v1149_v55 = vsel %vm1108_vm0, %v868_v47, 0 }
 0x218   : > { %v737_v57 = vpop.f32.mrb[24].mxu0  ;;  %4364 = vmatpush3.bf16.xpose.msra.mxu0 %v1149_v55 }
 0x219   : > { %v739_v58 = vpop.f32.mrb[25].mxu0  ;;  %v738_v14 = vadd.f32 %v737_v57, %v5955_v54 }
 0x21a   : > { %v740_v63 = vadd.f32 %v739_v58, %v5959_v56  ;;  %v741_v3 = vpop.f32.mrb[26].mxu0 }
 0x21b   : > { %v742_v4 = vadd.f32 %v741_v3, %v5955_v54  ;;  %v743_v5 = vpop.f32.mrb[27].mxu0 }
 0x21c   : > { %v744_v6 = vadd.f32 %v743_v5, %v5959_v56 }
 0x21d   : > { %v871_v7 = vpack.c.bf16 %v742_v4, %v738_v14 }
 0x21e   : > { %v6081_v8 = vpack.c.bf16 %v744_v6, %v740_v63 }
 0x21f   : > { %897 = vrot.lane.b32.xlu0 %v871_v7, %s5573_s17  ;;  %4663 = vmatprep.subr.msk.bf16.mxu0 %vm1108_vm0, %v871_v7  ;;  %v1152_v9 = vsel %vm1108_vm0, %v871_v7, 0 }
 0x220   : > { %v747_v10 = vpop.f32.mrb[28].mxu0  ;;  %4366 = vmatpush3.bf16.xpose.msra.mxu0 %v1152_v9 }
 0x221   : > { %v749_v11 = vpop.f32.mrb[29].mxu0  ;;  %v748_v17 = vadd.f32 %v747_v10, %v5955_v54 }
 0x222   : > { %v750_v12 = vadd.f32 %v749_v11, %v5959_v56  ;;  %v751_v16 = vpop.f32.mrb[30].mxu0 }
 0x223   : > { %v752_v18 = vadd.f32 %v751_v16, %v5955_v54  ;;  %v753_v19 = vpop.f32.mrb[31].mxu0  ;;  %901 = vrot.lane.b32.xlu0 %v5965_v1, %s5574_s20 }
 0x224   : > { %v754_v20 = vadd.f32 %v753_v19, %v5959_v56 }
 0x225   : > { %v874_v21 = vpack.c.bf16 %v752_v18, %v748_v17 }
 0x226   : > { %v6092_v26 = vpack.c.bf16 %v754_v20, %v750_v12 }
 0x227   : > { %899 = vrot.lane.b32.xlu1 %v874_v21, %s5573_s17  ;;  %941 = vrot.lane.b32.xlu0 %v5967_v2, %s5573_s17  ;;  %v1155_v27 = vsel %vm1108_vm0, %v874_v21, 0 }
 0x228   : > { %4664 = vmatprep.subr.msk.bf16.mxu0 %vm1108_vm0, %v874_v21 }
 0x229   : > { %4368 = vmatpush3.bf16.xpose.msra.mxu0 %v1155_v27 }
 0x22b   : > { %917 = vrot.lane.b32.xlu1 %v5965_v1, %s5575_s21  ;;  %903 = vrot.lane.b32.xlu0 %v5982_v13, %s5574_s20 }
 0x22f   : > { %943 = vrot.lane.b32.xlu1 %v5986_v15, %s5573_s17  ;;  %905 = vrot.lane.b32.xlu0 %v6002_v33, %s5574_s20 }
 0x230   : > { %4370 = vmatmul.mubr.msk.bf16.vlgmr.msra.gmra.mrb[32].mxu0 %vm1108_vm0, %v5986_v15 }
 0x231   : > { %4373 = vmatprep.mubr.msk.bf16.mxu0 %vm1108_vm0, %v6006_v35 }
 0x233   : > { %919 = vrot.lane.b32.xlu1 %v5982_v13, %s5575_s21  ;;  %907 = vrot.lane.b32.xlu0 %v6024_v59, %s5574_s20 }
 0x237   : > { %921 = vrot.lane.b32.xlu1 %v6002_v33, %s5575_s21  ;;  %909 = vrot.lane.b32.xlu0 %v6046_v22, %s5574_s20 }
 0x238   : > { %4374 = vmatmul.mubr.msk.bf16.gmra.mrb[36].mxu0 %vm1108_vm0, %v6028_v61 }
 0x239   : > { %4377 = vmatprep.mubr.msk.bf16.mxu0 %vm1108_vm0, %v6050_v24 }
 0x23b   : > { %923 = vrot.lane.b32.xlu1 %v6024_v59, %s5575_s21  ;;  %911 = vrot.lane.b32.xlu0 %v868_v47, %s5574_s20 }
 0x23f   : > { %925 = vrot.lane.b32.xlu1 %v6046_v22, %s5575_s21  ;;  %927 = vrot.lane.b32.xlu0 %v868_v47, %s5575_s21 }
 0x240   : > { %4378 = vmatmul.mubr.msk.bf16.gmra.mrb[40].mxu0 %vm1108_vm0, %v6070_v49 }
 0x241   : > { %4381 = vmatprep.mubr.msk.bf16.mxu0 %vm1108_vm0, %v6081_v8 }
 0x243   : > { %945 = vrot.lane.b32.xlu1 %v6006_v35, %s5573_s17  ;;  %913 = vrot.lane.b32.xlu0 %v871_v7, %s5574_s20 }
 0x247   : > { %947 = vrot.lane.b32.xlu1 %v6028_v61, %s5573_s17  ;;  %929 = vrot.lane.b32.xlu0 %v871_v7, %s5575_s21 }
 0x248   : > { %4382 = vmatmul.mubr.msk.bf16.gmra.mrb[44].mxu0 %vm1108_vm0, %v6092_v26 }
 0x24b   : > { %949 = vrot.lane.b32.xlu1 %v6050_v24, %s5573_s17  ;;  %915 = vrot.lane.b32.xlu0 %v874_v21, %s5574_s20 }
 0x24f   : > { %951 = vrot.lane.b32.xlu1 %v6070_v49, %s5573_s17  ;;  %931 = vrot.lane.b32.xlu0 %v874_v21, %s5575_s21 }
 0x253   : > { %953 = vrot.lane.b32.xlu1 %v6081_v8, %s5573_s17  ;;  %957 = vrot.lane.b32.xlu0 %v5967_v2, %s5574_s20 }
 0x257   : > { %959 = vrot.lane.b32.xlu1 %v5986_v15, %s5574_s20  ;;  %973 = vrot.lane.b32.xlu0 %v5967_v2, %s5575_s21 }
 0x25b   : > { %975 = vrot.lane.b32.xlu1 %v5986_v15, %s5575_s21  ;;  %961 = vrot.lane.b32.xlu0 %v6006_v35, %s5574_s20 }
 0x25f   : > { %963 = vrot.lane.b32.xlu1 %v6028_v61, %s5574_s20  ;;  %977 = vrot.lane.b32.xlu0 %v6006_v35, %s5575_s21 }
 0x261   : > { %v886_v54 = vpop.permute.xlu0 %885 }
 0x262   : > { %4665 = vmatprep.subr.msk.bf16.mxu1 %vm1108_vm0, %v886_v54  ;;  %v1279_v56 = vsel %vm1108_vm0, %v886_v54, 0 }
 0x263   : > { %979 = vrot.lane.b32.xlu1 %v6028_v61, %s5575_s21  ;;  %965 = vrot.lane.b32.xlu0 %v6050_v24, %s5574_s20 }
 0x264   : > { %4386 = vmatpush3.bf16.xpose.msra.mxu1 %v1279_v56 }
 0x267   : > { %955 = vrot.lane.b32.xlu1 %v6092_v26, %s5573_s17  ;;  %981 = vrot.lane.b32.xlu0 %v6050_v24, %s5575_s21 }
 0x269   : > { %v888_v1 = vpop.permute.xlu0 %887 }
 0x26a   : > { %4666 = vmatprep.subr.msk.bf16.mxu1 %vm1108_vm0, %v888_v1  ;;  %v1282_v2 = vsel %vm1108_vm0, %v888_v1, 0 }
 0x26b   : > { %967 = vrot.lane.b32.xlu1 %v6070_v49, %s5574_s20  ;;  %969 = vrot.lane.b32.xlu0 %v6081_v8, %s5574_s20 }
 0x26c   : > { %4388 = vmatpush3.bf16.xpose.msra.mxu1 %v1282_v2 }
 0x26f   : > { %983 = vrot.lane.b32.xlu1 %v6070_v49, %s5575_s21  ;;  %985 = vrot.lane.b32.xlu0 %v6081_v8, %s5575_s21 }
 0x271   : > { %v890_v13 = vpop.permute.xlu1 %889 }
 0x272   : > { %4667 = vmatprep.subr.msk.bf16.mxu1 %vm1108_vm0, %v890_v13  ;;  %v1285_v15 = vsel %vm1108_vm0, %v890_v13, 0 }
 0x273   : > { %997 = vrot.lane.b32.xlu1 %v6008_v36, %s5573_s17  ;;  %999 = vrot.lane.b32.xlu0 %v6004_v34, %s5573_s17 }
 0x274   : > { %4390 = vmatpush3.bf16.xpose.msra.mxu1 %v1285_v15 }
 0x277   : > { %1003 = vrot.lane.b32.xlu1 %v6026_v60, %s5573_s17  ;;  %1001 = vrot.lane.b32.xlu0 %v6030_v62, %s5573_s17 }
 0x279   : > { %v892_v33 = vpop.permute.xlu1 %891 }
 0x27a   : > { %4668 = vmatprep.subr.msk.bf16.mxu1 %vm1108_vm0, %v892_v33  ;;  %v1288_v35 = vsel %vm1108_vm0, %v892_v33, 0 }
 0x27b   : > { %1009 = vrot.lane.b32.xlu1 %v6072_v52, %s5573_s17  ;;  %1005 = vrot.lane.b32.xlu0 %v6052_v25, %s5573_s17 }
 0x27c   : > { %4392 = vmatpush3.bf16.xpose.msra.mxu1 %v1288_v35 }
 0x27f   : > { %1021 = vrot.lane.b32.xlu1 %v6008_v36, %s5574_s20  ;;  %1007 = vrot.lane.b32.xlu0 %v6048_v23, %s5573_s17 }
 0x281   : > { %v894_v59 = vpop.permute.xlu0 %893 }
 0x282   : > { %4669 = vmatprep.subr.msk.bf16.mxu1 %vm1108_vm0, %v894_v59  ;;  %v1291_v61 = vsel %vm1108_vm0, %v894_v59, 0 }
 0x283   : > { %1045 = vrot.lane.b32.xlu1 %v6008_v36, %s5575_s21  ;;  %1011 = vrot.lane.b32.xlu0 %v6068_v48, %s5573_s17 }
 0x284   : > { %4394 = vmatpush3.bf16.xpose.msra.mxu1 %v1291_v61 }
 0x287   : > { %1023 = vrot.lane.b32.xlu1 %v6004_v34, %s5574_s20  ;;  %1047 = vrot.lane.b32.xlu0 %v6004_v34, %s5575_s21 }
 0x289   : > { %v896_v22 = vpop.permute.xlu1 %895 }
 0x28a   : > { %4670 = vmatprep.subr.msk.bf16.mxu1 %vm1108_vm0, %v896_v22  ;;  %v1294_v24 = vsel %vm1108_vm0, %v896_v22, 0 }
 0x28b   : > { %1025 = vrot.lane.b32.xlu1 %v6030_v62, %s5574_s20  ;;  %1029 = vrot.lane.b32.xlu0 %v6052_v25, %s5574_s20 }
 0x28c   : > { %4396 = vmatpush3.bf16.xpose.msra.mxu1 %v1294_v24 }
 0x28f   : > { %1049 = vrot.lane.b32.xlu1 %v6030_v62, %s5575_s21 }
 0x291   : > { %v898_v28 = vpop.permute.xlu0 %897 }
 0x292   : > { %4671 = vmatprep.subr.msk.bf16.mxu1 %vm1108_vm0, %v898_v28  ;;  %v1297_v29 = vsel %vm1108_vm0, %v898_v28, 0 }
 0x293   : > { %1027 = vrot.lane.b32.xlu1 %v6026_v60, %s5574_s20 }
 0x294   : > { %4398 = vmatpush3.bf16.xpose.msra.mxu1 %v1297_v29 }
 0x295   : > { %v902_v30 = vpop.permute.xlu0 %901 }
 0x296   : > { %4673 = vmatprep.subr.msk.bf16.mxu0 %vm1108_vm0, %v902_v30  ;;  %v1424_v31 = vsel %vm1108_vm0, %v902_v30, 0 }
 0x297   : > { %1051 = vrot.lane.b32.xlu1 %v6026_v60, %s5575_s21  ;;  %4418 = vmatpush3.bf16.xpose.msra.mxu0 %v1424_v31 }
 0x299   : > { %v900_v32 = vpop.permute.xlu1 %899  ;;  %v942_v37 = vpop.permute.xlu0 %941 }
 0x29a   : > { %4672 = vmatprep.subr.msk.bf16.mxu1 %vm1108_vm0, %v900_v32  ;;  %4401 = vmatprep.mubr.msk.bf16.mxu1 %vm1108_vm0, %v942_v37  ;;  %v1300_v38 = vsel %vm1108_vm0, %v900_v32, 0 }
 0x29b   : > { %971 = vrot.lane.b32.xlu1 %v6092_v26, %s5574_s20 }
 0x29c   : > { %4400 = vmatpush3.bf16.xpose.msra.mxu1 %v1300_v38 }
 0x29d   : > { %v918_v39 = vpop.permute.xlu1 %917  ;;  %v904_v40 = vpop.permute.xlu0 %903 }
 0x29e   : > { %4674 = vmatprep.subr.msk.bf16.mxu0 %vm1108_vm0, %v904_v40  ;;  %4681 = vmatprep.subr.msk.bf16.mxu1 %vm1108_vm0, %v918_v39  ;;  %v1427_v41 = vsel %vm1108_vm0, %v904_v40, 0  ;;  %v1569_v44 = vsel %vm1108_vm0, %v918_v39, 0 }
 0x29f   : > { %987 = vrot.lane.b32.xlu1 %v6092_v26, %s5575_s21  ;;  %4420 = vmatpush3.bf16.xpose.msra.mxu0 %v1427_v41  ;;  %v458_v41 = vld [vmem:[%s374_s2] sm:$0x1] }
 0x2a1   : > { %v944_v42 = vpop.permute.xlu1 %943  ;;  %v906_v43 = vpop.permute.xlu0 %905 }
 0x2a2   : > { %4675 = vmatprep.subr.msk.bf16.mxu0 %vm1108_vm0, %v906_v43  ;;  %v1430_v47 = vsel %vm1108_vm0, %v906_v43, 0  ;;  %v1085_v43 = vmul.f32 1e+10, %v458_v41  ;;  %v1083_v41 = vld [vmem:[#allocation7 + $0x70] sm:$0xff] }
 0x2a3   : > { %4402 = vmatmul.mubr.msk.bf16.vlgmr.msra.gmra.mrb[16].mxu1 %vm1108_vm0, %v944_v42  ;;  %1053 = vrot.lane.b32.xlu1 %v6052_v25, %s5575_s21 }
 0x2a4   : > { %4450 = vmatpush3.bf16.xpose.msra.mxu1 %v1569_v44 }
 0x2a5   : > { %v920_v45 = vpop.permute.xlu1 %919  ;;  %v908_v46 = vpop.permute.xlu0 %907 }
 0x2a6   : > { %4682 = vmatprep.subr.msk.bf16.mxu1 %vm1108_vm0, %v920_v45  ;;  %v1572_v57 = vsel %vm1108_vm0, %v920_v45, 0  ;;  %v1433_v3 = vsel %vm1108_vm0, %v908_v46, 0  ;;  %v6317_v45 = vrot.slane %v1085_v43, %v5948_v51 }
 0x2a7   : > { %1031 = vrot.lane.b32.xlu1 %v6048_v23, %s5574_s20  ;;  %4422 = vmatpush3.bf16.xpose.msra.mxu0 %v1430_v47  ;;  %v1071_v47 = vld [vmem:[#allocation7 + $0x10] sm:$0xff] }
 0x2a8   : > { %4676 = vmatprep.subr.msk.bf16.mxu0 %vm1108_vm0, %v908_v46 }
 0x2a9   : > { %v922_v49 = vpop.permute.xlu1 %921  ;;  %v910_v55 = vpop.permute.xlu0 %909 }
 0x2aa   : > { %v1575_v5 = vsel %vm1108_vm0, %v922_v49, 0  ;;  %v1436_v8 = vsel %vm1108_vm0, %v910_v55, 0 }
 0x2ac   : > { %4452 = vmatpush3.bf16.xpose.msra.mxu1 %v1572_v57  ;;  %v1070_v57 = vld [vmem:[#allocation7 + $0x8] sm:$0xff] }
 0x2ad   : > { %4683 = vmatprep.subr.msk.bf16.mxu1 %vm1108_vm0, %v922_v49  ;;  %v924_v58 = vpop.permute.xlu1 %923  ;;  %v912_v63 = vpop.permute.xlu0 %911 }
 0x2ae   : > { %v1578_v11 = vsel %vm1108_vm0, %v924_v58, 0  ;;  %v1439_v17 = vsel %vm1108_vm0, %v912_v63, 0 }
 0x2af   : > { %4424 = vmatpush3.bf16.xpose.msra.mxu0 %v1433_v3 }
 0x2b0   : > { %4677 = vmatprep.subr.msk.bf16.mxu0 %vm1108_vm0, %v910_v55  ;;  %v6322_v55 = vadd.f32 %v6317_v45, %v1071_v47 }
 0x2b1   : > { %v926_v14 = vpop.permute.xlu1 %925  ;;  %v928_v4 = vpop.permute.xlu0 %927 }
 0x2b2   : > { %v1581_v20 = vsel %vm1108_vm0, %v926_v14, 0  ;;  %v1584_v1 = vsel %vm1108_vm0, %v928_v4, 0 }
 0x2b4   : > { %4454 = vmatpush3.bf16.xpose.msra.mxu1 %v1575_v5 }
 0x2b5   : > { %4684 = vmatprep.subr.msk.bf16.mxu1 %vm1108_vm0, %v924_v58  ;;  %v946_v6 = vpop.permute.xlu1 %945  ;;  %v914_v7 = vpop.permute.xlu0 %913 }
 0x2b6   : > { %4405 = vmatprep.mubr.msk.bf16.mxu1 %vm1108_vm0, %v946_v6  ;;  %v1442_v27 = vsel %vm1108_vm0, %v914_v7, 0 }
 0x2b7   : > { %4426 = vmatpush3.bf16.xpose.msra.mxu0 %v1436_v8 }
 0x2b8   : > { %4678 = vmatprep.subr.msk.bf16.mxu0 %vm1108_vm0, %v912_v63  ;;  %v1069_v63 = vld [vmem:[#allocation7] sm:$0xff] }
 0x2b9   : > { %v948_v9 = vpop.permute.xlu1 %947  ;;  %v930_v10 = vpop.permute.xlu0 %929  ;;  %v6333_v5 = vadd.f32 %v6317_v45, %v1069_v63  ;;  %v1081_v63 = vld [vmem:[#allocation7 + $0x60] sm:$0xff] }
 0x2ba   : > { %4406 = vmatmul.mubr.msk.bf16.gmra.mrb[20].mxu1 %vm1108_vm0, %v948_v9  ;;  %v1587_v59 = vsel %vm1108_vm0, %v930_v10, 0 }
 0x2bc   : > { %4456 = vmatpush3.bf16.xpose.msra.mxu1 %v1578_v11 }
 0x2bd   : > { %4685 = vmatprep.subr.msk.bf16.mxu1 %vm1108_vm0, %v926_v14  ;;  %v950_v12 = vpop.permute.xlu1 %949  ;;  %v916_v16 = vpop.permute.xlu0 %915  ;;  %v6327_v14 = vadd.f32 %v6317_v45, %v1070_v57  ;;  %v6409_v57 = vadd.f32 %v6317_v45, %v1083_v41 }
 0x2be   : > { %4409 = vmatprep.mubr.msk.bf16.mxu1 %vm1108_vm0, %v950_v12  ;;  %v1445_v15 = vsel %vm1108_vm0, %v916_v16, 0 }
 0x2bf   : > { %4428 = vmatpush3.bf16.xpose.msra.mxu0 %v1439_v17 }
 0x2c0   : > { %4679 = vmatprep.subr.msk.bf16.mxu0 %vm1108_vm0, %v914_v7  ;;  %v1072_v7 = vld [vmem:[#allocation7 + $0x18] sm:$0xff] }
 0x2c1   : > { %v952_v18 = vpop.permute.xlu1 %951  ;;  %v932_v19 = vpop.permute.xlu0 %931  ;;  %v6346_v17 = vadd.f32 %v6317_v45, %v1072_v7 }
 0x2c2   : > { %4410 = vmatmul.mubr.msk.bf16.gmra.mrb[24].mxu1 %vm1108_vm0, %v952_v18  ;;  %v1590_v29 = vsel %vm1108_vm0, %v932_v19, 0 }
 0x2c4   : > { %4458 = vmatpush3.bf16.xpose.msra.mxu1 %v1581_v20  ;;  %v1073_v20 = vld [vmem:[#allocation7 + $0x20] sm:$0xff] }
 0x2c5   : > { %4686 = vmatprep.subr.msk.bf16.mxu1 %vm1108_vm0, %v928_v4  ;;  %v954_v21 = vpop.permute.xlu1 %953  ;;  %v958_v26 = vpop.permute.xlu0 %957 }
 0x2c6   : > { %4413 = vmatprep.mubr.msk.bf16.mxu1 %vm1108_vm0, %v954_v21  ;;  %4433 = vmatprep.mubr.msk.bf16.mxu0 %vm1108_vm0, %v958_v26  ;;  %v1076_v21 = vld [vmem:[#allocation7 + $0x38] sm:$0xff] }
 0x2c7   : > { %4430 = vmatpush3.bf16.xpose.msra.mxu0 %v1442_v27 }
 0x2c8   : > { %4680 = vmatprep.subr.msk.bf16.mxu0 %vm1108_vm0, %v916_v16 }
 0x2c9   : > { %v960_v54 = vpop.permute.xlu1 %959  ;;  %v974_v56 = vpop.permute.xlu0 %973 }
 0x2cc   : > { %4460 = vmatpush3.bf16.xpose.msra.mxu1 %v1584_v1 }
 0x2cd   : > { %4687 = vmatprep.subr.msk.bf16.mxu1 %vm1108_vm0, %v930_v10  ;;  %v976_v2 = vpop.permute.xlu1 %975  ;;  %v962_v13 = vpop.permute.xlu0 %961  ;;  %v1075_v10 = vld [vmem:[#allocation7 + $0x30] sm:$0xff] }
 0x2ce   : > { %v6349_v18 = vadd.f32 %v6317_v45, %v1075_v10  ;;  %v6420_v10 = vadd.f32 %v6317_v45, %v1081_v63 }
 0x2cf   : > { %4432 = vmatpush3.bf16.xpose.msra.mxu0 %v1445_v15 }
 0x2d0   : > { %4481 = vmatprep.subr.bf16.mxu0 %v6008_v36 }
 0x2d1   : > { %v964_v33 = vpop.permute.xlu1 %963  ;;  %v978_v35 = vpop.permute.xlu0 %977 }
 0x2d4   : > { %4462 = vmatpush3.bf16.xpose.msra.mxu1 %v1587_v59 }
 0x2d5   : > { %4688 = vmatprep.subr.msk.bf16.mxu1 %vm1108_vm0, %v932_v19  ;;  %v980_v61 = vpop.permute.xlu1 %979  ;;  %v966_v22 = vpop.permute.xlu0 %965 }
 0x2d6   : > { %4434 = vmatmul.mubr.msk.bf16.vlgmr.msra.gmra.mrb[48].mxu0 %vm1108_vm0, %v960_v54 }
 0x2d7   : > { %4437 = vmatprep.mubr.msk.bf16.mxu0 %vm1108_vm0, %v962_v13  ;;  %4482 = vmatpush3.bf16.msra.mxu0 %v6008_v36 }
 0x2d8   : > { %4483 = vmatprep.subr.bf16.mxu0 %v6004_v34 }
 0x2d9   : > { %v956_v24 = vpop.permute.xlu1 %955  ;;  %v982_v28 = vpop.permute.xlu0 %981 }
 0x2da   : > { %4414 = vmatmul.mubr.msk.bf16.gmra.mrb[28].mxu1 %vm1108_vm0, %v956_v24 }
 0x2db   : > { %4465 = vmatprep.mubr.msk.bf16.mxu1 %vm1108_vm0, %v974_v56  ;;  %4484 = vmatpush3.bf16.msra.mxu0 %v6004_v34  ;;  %v6362_v56 = vadd.f32 %v6317_v45, %v1073_v20 }
 0x2dc   : > { %4464 = vmatpush3.bf16.xpose.msra.mxu1 %v1590_v29  ;;  %4485 = vmatprep.subr.bf16.mxu0 %v6030_v62 }
 0x2dd   : > { %v968_v30 = vpop.permute.xlu1 %967  ;;  %v970_v31 = vpop.permute.xlu0 %969 }
 0x2de   : > { %4438 = vmatmul.mubr.msk.bf16.gmra.mrb[52].mxu0 %vm1108_vm0, %v964_v33  ;;  %v1074_v33 = vld [vmem:[#allocation7 + $0x28] sm:$0xff] }
 0x2df   : > { %4441 = vmatprep.mubr.msk.bf16.mxu0 %vm1108_vm0, %v966_v22  ;;  %4486 = vmatpush3.bf16.msra.mxu0 %v6030_v62  ;;  %v6377_v24 = vadd.f32 %v6317_v45, %v1074_v33 }
 0x2e0   : > { %4487 = vmatprep.subr.bf16.mxu0 %v6026_v60 }
 0x2e1   : > { %v984_v36 = vpop.permute.xlu1 %983  ;;  %v986_v32 = vpop.permute.xlu0 %985 }
 0x2e3   : > { %4466 = vmatmul.mubr.msk.bf16.vlgmr.msra.gmra.mrb[32].mxu1 %vm1108_vm0, %v976_v2  ;;  %4488 = vmatpush3.bf16.msra.mxu0 %v6026_v60  ;;  %v6365_v2 = vadd.f32 %v6317_v45, %v1076_v21 }
 0x2e4   : > { %4469 = vmatprep.mubr.msk.bf16.mxu1 %vm1108_vm0, %v978_v35  ;;  %4489 = vmatprep.subr.bf16.mxu0 %v6052_v25  ;;  %v1079_v35 = vld [vmem:[#allocation7 + $0x50] sm:$0xff] }
 0x2e5   : > { %v998_v34 = vpop.permute.xlu1 %997  ;;  %v1000_v37 = vpop.permute.xlu0 %999 }
 0x2e6   : > { %4442 = vmatmul.mubr.msk.bf16.gmra.mrb[56].mxu0 %vm1108_vm0, %v968_v30  ;;  %4513 = vmatprep.subr.bf16.mxu1 %v998_v34  ;;  %v1077_v30 = vld [vmem:[#allocation7 + $0x40] sm:$0xff] }
 0x2e7   : > { %4445 = vmatprep.mubr.msk.bf16.mxu0 %vm1108_vm0, %v970_v31  ;;  %4490 = vmatpush3.bf16.msra.mxu0 %v6052_v25  ;;  %v1080_v31 = vld [vmem:[#allocation7 + $0x58] sm:$0xff] }
 0x2e8   : > { %4514 = vmatpush3.bf16.msra.mxu1 %v998_v34  ;;  %4491 = vmatprep.subr.bf16.mxu0 %v6048_v23 }
 0x2e9   : > { %4515 = vmatprep.subr.bf16.mxu1 %v1000_v37  ;;  %v1004_v62 = vpop.permute.xlu1 %1003  ;;  %v1002_v60 = vpop.permute.xlu0 %1001 }
 0x2eb   : > { %4470 = vmatmul.mubr.msk.bf16.gmra.mrb[36].mxu1 %vm1108_vm0, %v980_v61  ;;  %4492 = vmatpush3.bf16.msra.mxu0 %v6048_v23 }
 0x2ec   : > { %4473 = vmatprep.mubr.msk.bf16.mxu1 %vm1108_vm0, %v982_v28  ;;  %4516 = vmatpush3.bf16.msra.mxu1 %v1000_v37  ;;  %v6380_v28 = vadd.f32 %v6317_v45, %v1079_v35  ;;  %v6392_v37 = vadd.f32 %v6317_v45, %v1077_v30 }
 0x2ed   : > { %4493 = vmatprep.subr.bf16.mxu0 %v6072_v52  ;;  %4517 = vmatprep.subr.bf16.mxu1 %v1002_v60  ;;  %v1010_v38 = vpop.permute.xlu1 %1009  ;;  %v1006_v39 = vpop.permute.xlu0 %1005 }
 0x2ef   : > { %4494 = vmatpush3.bf16.msra.mxu0 %v6072_v52 }
 0x2f0   : > { %4518 = vmatpush3.bf16.msra.mxu1 %v1002_v60  ;;  %4495 = vmatprep.subr.bf16.mxu0 %v6068_v48  ;;  %v6395_v60 = vadd.f32 %v6317_v45, %v1080_v31 }
 0x2f1   : > { %4519 = vmatprep.subr.bf16.mxu1 %v1004_v62  ;;  %v6304_v25 = vpop.permute.xlu1 %1021  ;;  %v1008_v42 = vpop.permute.xlu0 %1007 }
 0x2f2   : > { %7762 = vst [vmem:[#allocation26_spill] sm:$0xff] %v6304_v25 }
 0x2f3   : > { %4474 = vmatmul.mubr.msk.bf16.gmra.mrb[40].mxu1 %vm1108_vm0, %v984_v36  ;;  %4496 = vmatpush3.bf16.msra.mxu0 %v6068_v48 }
 0x2f4   : > { %4477 = vmatprep.mubr.msk.bf16.mxu1 %vm1108_vm0, %v986_v32  ;;  %4520 = vmatpush3.bf16.msra.mxu1 %v1004_v62 }
 0x2f5   : > { %4521 = vmatprep.subr.bf16.mxu1 %v1006_v39  ;;  %4545 = vmatprep.subr.bf16.mxu0 %v6304_v25  ;;  %v6310_v40 = vpop.permute.xlu1 %1045  ;;  %v1012_v49 = vpop.permute.xlu0 %1011 }
 0x2f6   : > { %7763 = vst [vmem:[#allocation27_spill] sm:$0xff] %v6310_v40 }
 0x2f8   : > { %4522 = vmatpush3.bf16.msra.mxu1 %v1006_v39  ;;  %v1078_v39 = vld [vmem:[#allocation7 + $0x48] sm:$0xff] }
 0x2f9   : > { %4523 = vmatprep.subr.bf16.mxu1 %v1008_v42  ;;  %v6314_v44 = vpop.permute.xlu1 %1023 }
 0x2fa   : > { %7764 = vst [vmem:[#allocation28_spill] sm:$0xff] %v6314_v44 }
 0x2fc   : > { %4524 = vmatpush3.bf16.msra.mxu1 %v1008_v42 }
 0x2fd   : > { %4525 = vmatprep.subr.bf16.mxu1 %v1010_v38  ;;  %v6319_v46 = vpop.permute.xlu1 %1025 }
 0x2fe   : > { %7765 = vst [vmem:[#allocation29_spill] sm:$0xff] %v6319_v46 }
 0x300   : > { %4526 = vmatpush3.bf16.msra.mxu1 %v1010_v38 }
 0x301   : > { %4527 = vmatprep.subr.bf16.mxu1 %v1012_v49  ;;  %v6324_v58 = vpop.permute.xlu1 %1049 }
 0x302   : > { %7766 = vst [vmem:[#allocation30_spill] sm:$0xff] %v6324_v58 }
 0x303   : > { %v4371_v3 = vpop.f32.mrb[32].mxu0 }
 0x304   : > { %v6330_v4 = vsub.f32 %v4371_v3, %v6322_v55  ;;  %v1191_v6 = vpop.f32.mrb[33].mxu0  ;;  %4528 = vmatpush3.bf16.msra.mxu1 %v1012_v49  ;;  %v6406_v49 = vadd.f32 %v6317_v45, %v1078_v39  ;;  %v1084_v3 = vld [vmem:[#allocation7 + $0x78] sm:$0xff] }
 0x305   : > { %v4372_v8 = vpop.f32.mrb[34].mxu0  ;;  %4577 = vmatprep.subr.bf16.mxu1 %v6310_v40  ;;  %v6336_v9 = vpop.permute.xlu1 %1027  ;;  %v6343_v16 = vsub.f32 %v1191_v6, %v6333_v5  ;;  %v6423_v20 = vadd.f32 %v6317_v45, %v1084_v3 }
 0x306   : > { %7767 = vst [vmem:[#allocation31_spill] sm:$0xff] %v6336_v9  ;;  %1757 = vmax.xlane.f32.xlu0 %v6330_v4  ;;  %v1194_v11 = vpop.f32.mrb[35].mxu0  ;;  %v6356_v27 = vsub.f32 %v4372_v8, %v6346_v17  ;;  %7769 = vst [vmem:[#allocation33_spill] sm:$0xff] %v6406_v49 }
 0x307   : > { %v6340_v12 = vsub.f32 %v1194_v11, %v6327_v14 }
 0x309   : > { %1755 = vmax.xlane.f32.xlu1 %v6340_v12  ;;  %v6352_v19 = vpop.permute.xlu1 %1051 }
 0x30a   : > { %7768 = vst [vmem:[#allocation32_spill] sm:$0xff] %v6352_v19  ;;  %1753 = vmax.xlane.f32.xlu0 %v6343_v16 }
 0x30b   : > { %v4375_v26 = vpop.f32.mrb[36].mxu0 }
 0x30c   : > { %v6359_v54 = vsub.f32 %v4375_v26, %v6349_v18  ;;  %v1207_v1 = vpop.f32.mrb[37].mxu0  ;;  %v1082_v26 = vld [vmem:[#allocation7 + $0x68] sm:$0xff] }
 0x30d   : > { %v4376_v13 = vpop.f32.mrb[38].mxu0  ;;  %v972_v15 = vpop.permute.xlu1 %971  ;;  %v6371_v61 = vsub.f32 %v1207_v1, %v6362_v56  ;;  %v6434_v33 = vadd.f32 %v6317_v45, %v1082_v26 }
 0x30e   : > { %1759 = vmax.xlane.f32.xlu0 %v6356_v27  ;;  %1765 = vmax.xlane.f32.xlu1 %v6359_v54  ;;  %v1210_v59 = vpop.f32.mrb[39].mxu0  ;;  %v6374_v22 = vsub.f32 %v4376_v13, %v6365_v2 }
 0x30f   : > { %4446 = vmatmul.mubr.msk.bf16.gmra.mrb[60].mxu0 %vm1108_vm0, %v972_v15  ;;  %v6386_v32 = vsub.f32 %v1210_v59, %v6377_v24 }
 0x311   : > { %v988_v29 = vpop.permute.xlu1 %987 }
 0x312   : > { %1761 = vmax.xlane.f32.xlu1 %v6371_v61  ;;  %1767 = vmax.xlane.f32.xlu0 %v6374_v22 }
 0x313   : > { %v4379_v36 = vpop.f32.mrb[40].mxu0  ;;  %4478 = vmatmul.mubr.msk.bf16.gmra.mrb[44].mxu1 %vm1108_vm0, %v988_v29 }
 0x314   : > { %v6389_v34 = vsub.f32 %v4379_v36, %v6380_v28  ;;  %v1223_v62 = vpop.f32.mrb[41].mxu0 }
 0x315   : > { %v4380_v38 = vpop.f32.mrb[42].mxu0  ;;  %v6400_v43 = vsub.f32 %v1223_v62, %v6392_v37 }
 0x316   : > { %1763 = vmax.xlane.f32.xlu0 %v6386_v32  ;;  %1773 = vmax.xlane.f32.xlu1 %v6389_v34  ;;  %v1226_v42 = vpop.f32.mrb[43].mxu0  ;;  %v6403_v47 = vsub.f32 %v4380_v38, %v6395_v60 }
 0x317   : > { %v6414_v7 = vsub.f32 %v1226_v42, %v6406_v49 }
 0x31a   : > { %1769 = vmax.xlane.f32.xlu1 %v6400_v43  ;;  %1775 = vmax.xlane.f32.xlu0 %v6403_v47 }
 0x31b   : > { %v4383_v6 = vpop.f32.mrb[44].mxu0 }
 0x31c   : > { %v6417_v8 = vsub.f32 %v4383_v6, %v6409_v57  ;;  %v1239_v11 = vpop.f32.mrb[45].mxu0 }
 0x31d   : > { %v4384_v21 = vpop.f32.mrb[46].mxu0  ;;  %v6428_v13 = vsub.f32 %v1239_v11, %v6420_v10 }
 0x31e   : > { %1771 = vmax.xlane.f32.xlu0 %v6414_v7  ;;  %1781 = vmax.xlane.f32.xlu1 %v6417_v8  ;;  %v1242_v1 = vpop.f32.mrb[47].mxu0  ;;  %v6431_v15 = vsub.f32 %v4384_v21, %v6423_v20 }
 0x31f   : > { %v6439_v35 = vsub.f32 %v1242_v1, %v6434_v33 }
 0x322   : > { %1777 = vmax.xlane.f32.xlu1 %v6428_v13  ;;  %1783 = vmax.xlane.f32.xlu0 %v6431_v15 }
 0x326   : > { %1779 = vmax.xlane.f32.xlu0 %v6439_v35 }
 0x376   : > { %v4403_v59 = vpop.f32.mrb[16].mxu1 }
 0x377   : > { %v6443_v29 = vsub.f32 %v4403_v59, %v6322_v55  ;;  %v1336_v30 = vpop.f32.mrb[17].mxu1 }
 0x378   : > { %v4404_v31 = vpop.f32.mrb[18].mxu1  ;;  %v6464_v0 = vsub.f32 %v1336_v30, %v6333_v5 }
 0x379   : > { %v6446_v36 = vsub.f32 %v4404_v31, %v6346_v17  ;;  %v1339_v45 = vpop.f32.mrb[19].mxu1  ;;  %1789 = vmax.xlane.f32.xlu1 %v6443_v29 }
 0x37a   : > { %7773 = vst [vmem:[#allocation37_spill] sm:$0xff] %v6464_v0 }
 0x37b   : > { %7770 = vst [vmem:[#allocation34_spill] sm:$0xff] %v6446_v36  ;;  %1791 = vmax.xlane.f32.xlu0 %v6446_v36 }
 0x38d   : > { %v4407_v62 = vpop.f32.mrb[20].mxu1 }
 0x38e   : > { %v1352_v38 = vpop.f32.mrb[21].mxu1  ;;  %v6486_v52 = vsub.f32 %v4407_v62, %v6349_v18 }
 0x38f   : > { %v4408_v39 = vpop.f32.mrb[22].mxu1 }
 0x390   : > { %v1355_v41 = vpop.f32.mrb[23].mxu1  ;;  %7777 = vst [vmem:[#allocation41_spill] sm:$0xff] %v6486_v52  ;;  %v6497_v46 = vsub.f32 %v4408_v39, %v6365_v2 }
 0x392   : > { %7778 = vst [vmem:[#allocation42_spill] sm:$0xff] %v6497_v46 }
 0x395   : > { %v4411_v42 = vpop.f32.mrb[24].mxu1 }
 0x396   : > { %v6450_v63 = vpop.f32.mrb[25].mxu1  ;;  %v6536_v36 = vsub.f32 %v4411_v42, %v6380_v28 }
 0x397   : > { %v4412_v3 = vpop.f32.mrb[26].mxu1 }
 0x398   : > { %v6452_v6 = vpop.f32.mrb[27].mxu1  ;;  %7786 = vst [vmem:[#allocation50_spill] sm:$0xff] %v6536_v36 }
 0x3a9   : > { %v4435_v11 = vpop.f32.mrb[48].mxu0 }
 0x3aa   : > { %v6455_v21 = vsub.f32 %v4435_v11, %v6322_v55  ;;  %v1481_v26 = vpop.f32.mrb[49].mxu0  ;;  %v6473_v11 = vsub.f32 %v1339_v45, %v6327_v14 }
 0x3ab   : > { %v4436_v1 = vpop.f32.mrb[50].mxu0  ;;  %v6478_v58 = vsub.f32 %v1481_v26, %v6333_v5 }
 0x3ac   : > { %7771 = vst [vmem:[#allocation35_spill] sm:$0xff] %v6455_v21  ;;  %1821 = vmax.xlane.f32.xlu1 %v6455_v21  ;;  %v6459_v59 = vsub.f32 %v4436_v1, %v6346_v17  ;;  %v1484_v31 = vpop.f32.mrb[51].mxu0  ;;  %7774 = vst [vmem:[#allocation38_spill] sm:$0xff] %v6473_v11 }
 0x3ad   : > { %v6461_v53 = vpop.f32.mrb[28].mxu1  ;;  %7775 = vst [vmem:[#allocation39_spill] sm:$0xff] %v6478_v58  ;;  %v6483_v48 = vsub.f32 %v1484_v31, %v6327_v14 }
 0x3ae   : > { %7772 = vst [vmem:[#allocation36_spill] sm:$0xff] %v6459_v59  ;;  %v6466_v50 = vpop.f32.mrb[29].mxu1  ;;  %1823 = vmax.xlane.f32.xlu0 %v6459_v59 }
 0x3af   : > { %v6469_v51 = vpop.f32.mrb[30].mxu1  ;;  %7776 = vst [vmem:[#allocation40_spill] sm:$0xff] %v6483_v48 }
 0x3b0   : > { %1785 = vmax.xlane.f32.xlu1 %v6464_v0  ;;  %v6475_v19 = vpop.f32.mrb[31].mxu1 }
 0x3b1   : > { %v4439_v1 = vpop.f32.mrb[52].mxu0 }
 0x3b2   : > { %v1497_v40 = vpop.f32.mrb[53].mxu0  ;;  %1787 = vmax.xlane.f32.xlu0 %v6473_v11  ;;  %v6502_v25 = vsub.f32 %v4439_v1, %v6349_v18 }
 0x3b3   : > { %v4440_v30 = vpop.f32.mrb[54].mxu0 }
 0x3b4   : > { %1817 = vmax.xlane.f32.xlu1 %v6478_v58  ;;  %v1500_v23 = vpop.f32.mrb[55].mxu0  ;;  %7779 = vst [vmem:[#allocation43_spill] sm:$0xff] %v6502_v25 }
 0x3b6   : > { %v6488_v45 = vpop.f32.mrb[32].mxu1  ;;  %1819 = vmax.xlane.f32.xlu0 %v6483_v48  ;;  %v6507_v48 = vsub.f32 %v4440_v30, %v6365_v2  ;;  %v6525_v30 = vpop.permute.xlu0 %1047 }
 0x3b7   : > { %v6490_v9 = vpop.f32.mrb[33].mxu1  ;;  %7783 = vst [vmem:[#allocation47_spill] sm:$0xff] %v6525_v30 }
 0x3b8   : > { %v6493_v26 = vpop.f32.mrb[34].mxu1  ;;  %1797 = vmax.xlane.f32.xlu1 %v6486_v52  ;;  %7780 = vst [vmem:[#allocation44_spill] sm:$0xff] %v6507_v48  ;;  %v6510_v52 = vsub.f32 %v1352_v38, %v6362_v56  ;;  %v6528_v38 = vsub.f32 %v1497_v40, %v6362_v56 }
 0x3b9   : > { %v6499_v44 = vpop.f32.mrb[35].mxu1  ;;  %v4443_v31 = vpop.f32.mrb[56].mxu0 }
 0x3ba   : > { %v1513_v62 = vpop.f32.mrb[57].mxu0  ;;  %1799 = vmax.xlane.f32.xlu0 %v6497_v46  ;;  %7781 = vst [vmem:[#allocation45_spill] sm:$0xff] %v6510_v52  ;;  %v6521_v46 = vsub.f32 %v1355_v41, %v6377_v24  ;;  %7784 = vst [vmem:[#allocation48_spill] sm:$0xff] %v6528_v38  ;;  %v6543_v30 = vpop.permute.xlu0 %1029  ;;  %v6556_v42 = vsub.f32 %v4443_v31, %v6380_v28 }
 0x3bb   : > { %v4444_v11 = vpop.f32.mrb[58].mxu0  ;;  %7787 = vst [vmem:[#allocation51_spill] sm:$0xff] %v6543_v30 }
 0x3bc   : > { %1829 = vmax.xlane.f32.xlu1 %v6502_v25  ;;  %v1516_v59 = vpop.f32.mrb[59].mxu0  ;;  %7782 = vst [vmem:[#allocation46_spill] sm:$0xff] %v6521_v46  ;;  %7791 = vst [vmem:[#allocation55_spill] sm:$0xff] %v6556_v42  ;;  %v6561_v30 = vsub.f32 %v4444_v11, %v6395_v60 }
 0x3be   : > { %v6512_v39 = vpop.f32.mrb[36].mxu1  ;;  %1831 = vmax.xlane.f32.xlu0 %v6507_v48  ;;  %v6533_v48 = vsub.f32 %v1500_v23, %v6377_v24  ;;  %v6551_v23 = vsub.f32 %v4412_v3, %v6395_v60  ;;  %v1758_v0 = vpop.xlane.xlu0 %1757  ;;  %7792 = vst [vmem:[#allocation56_spill] sm:$0xff] %v6561_v30  ;;  %v6573_v3 = vsub.f32 %v6452_v6, %v6406_v49 }
 0x3bf   : > { %v6514_v58 = vpop.f32.mrb[37].mxu1 }
 0x3c0   : > { %v6517_v1 = vpop.f32.mrb[38].mxu1  ;;  %1793 = vmax.xlane.f32.xlu1 %v6510_v52  ;;  %7785 = vst [vmem:[#allocation49_spill] sm:$0xff] %v6533_v48  ;;  %7789 = vst [vmem:[#allocation53_spill] sm:$0xff] %v6551_v23 }
 0x3c1   : > { %v6523_v25 = vpop.f32.mrb[39].mxu1  ;;  %7795 = vst [vmem:[#allocation59_spill] sm:$0xff] %v6573_v3 }
 0x3c2   : > { %1795 = vmax.xlane.f32.xlu0 %v6521_v46  ;;  %v6548_v46 = vpop.permute.xlu1 %1053  ;;  %v1754_v31 = vpop.xlane.xlu0 %1753 }
 0x3c3   : > { %7788 = vst [vmem:[#allocation52_spill] sm:$0xff] %v6548_v46 }
 0x3c4   : > { %1825 = vmax.xlane.f32.xlu1 %v6528_v38 }
 0x3c6   : > { %v6538_v52 = vpop.f32.mrb[40].mxu1  ;;  %1827 = vmax.xlane.f32.xlu0 %v6533_v48  ;;  %v6567_v46 = vpop.permute.xlu1 %1031 }
 0x3c7   : > { %v6540_v41 = vpop.f32.mrb[41].mxu1  ;;  %7794 = vst [vmem:[#allocation58_spill] sm:$0xff] %v6567_v46  ;;  %v1760_v6 = vpop.xlane.xlu0 %1759 }
 0x3c8   : > { %v6545_v40 = vpop.f32.mrb[42].mxu1  ;;  %1805 = vmax.xlane.f32.xlu1 %v6536_v36  ;;  %v6565_v36 = vsub.f32 %v6450_v63, %v6392_v37  ;;  %v6581_v63 = vsub.f32 %v1516_v59, %v6406_v49 }
 0x3c9   : > { %v6553_v38 = vpop.f32.mrb[43].mxu1 }
 0x3ca   : > { %7790 = vst [vmem:[#allocation54_spill] sm:$0xff] %v6553_v38  ;;  %1807 = vmax.xlane.f32.xlu0 %v6551_v23  ;;  %7793 = vst [vmem:[#allocation57_spill] sm:$0xff] %v6565_v36  ;;  %v1756_v11 = vpop.xlane.xlu1 %1755 }
 0x3cb   : > { %7797 = vst [vmem:[#allocation61_spill] sm:$0xff] %v6581_v63  ;;  %v1768_v59 = vpop.xlane.xlu0 %1767 }
 0x3cc   : > { %1837 = vmax.xlane.f32.xlu1 %v6556_v42  ;;  %v6576_v42 = vsub.f32 %v1513_v62, %v6392_v37  ;;  %v6591_v62 = vsub.f32 %v6469_v51, %v6423_v20  ;;  %v1881_v51 = vsub.f32 %v6343_v16, %v1754_v31 }
 0x3ce   : > { %1839 = vmax.xlane.f32.xlu0 %v6561_v30  ;;  %7796 = vst [vmem:[#allocation60_spill] sm:$0xff] %v6576_v42  ;;  %v6585_v30 = vsub.f32 %v6461_v53, %v6409_v57  ;;  %v1766_v46 = vpop.xlane.xlu1 %1765  ;;  %7799 = vst [vmem:[#allocation63_spill] sm:$0xff] %v6591_v62 }
 0x3cf   : > { %v1764_v38 = vpop.xlane.xlu0 %1763 }
 0x3d0   : > { %1801 = vmax.xlane.f32.xlu1 %v6565_v36  ;;  %7798 = vst [vmem:[#allocation62_spill] sm:$0xff] %v6585_v30  ;;  %v1883_v36 = vsub.f32 %v6330_v4, %v1758_v0 }
 0x3d2   : > { %1803 = vmax.xlane.f32.xlu0 %v6573_v3  ;;  %v1762_v3 = vpop.xlane.xlu1 %1761  ;;  %v1949_v21 = vmul.f32 1.442695, %v1883_v36  ;;  %v6610_v36 = vsub.f32 %v6466_v50, %v6420_v10 }
 0x3d3   : > { %v1885_v23 = vsub.f32 %v6371_v61, %v1762_v3 }
 0x3d4   : > { %1833 = vmax.xlane.f32.xlu1 %v6576_v42  ;;  %v1887_v42 = vsub.f32 %v6359_v54, %v1766_v46  ;;  %v1888_v54 = vsub.f32 %v6374_v22, %v1768_v59  ;;  %v1776_v59 = vpop.xlane.xlu0 %1775 }
 0x3d5   : > { %v1953_v4 = vmul.f32 1.442695, %v1885_v23  ;;  %v6620_v23 = vsub.f32 %v6475_v19, %v6434_v33 }
 0x3d6   : > { %1835 = vmax.xlane.f32.xlu0 %v6581_v63  ;;  %v1957_v53 = vmul.f32 1.442695, %v1887_v42  ;;  %v1884_v42 = vsub.f32 %v6356_v27, %v1760_v6  ;;  %v1959_v50 = vmul.f32 1.442695, %v1888_v54  ;;  %v1882_v27 = vsub.f32 %v6340_v12, %v1756_v11 }
 0x3d8   : > { %1813 = vmax.xlane.f32.xlu1 %v6585_v30  ;;  %5003 = vpow2.f32 %v1957_v53  ;;  %v1951_v19 = vmul.f32 1.442695, %v1884_v42  ;;  %v1772_v12 = vpop.xlane.xlu0 %1771 }
 0x3d9   : > { %5005 = vpow2.f32 %v1949_v21 }
 0x3da   : > { %1815 = vmax.xlane.f32.xlu0 %v6591_v62  ;;  %v1774_v62 = vpop.xlane.xlu1 %1773  ;;  %5007 = vpow2.f32 %v1953_v4  ;;  %v1892_v4 = vsub.f32 %v6403_v47, %v1776_v59 }
 0x3db   : > { %v1891_v31 = vsub.f32 %v6389_v34, %v1774_v62 }
 0x3dd   : > { %v1965_v53 = vmul.f32 1.442695, %v1891_v31 }
 0x3e2   : > { %v4447_v63 = vpop.f32.mrb[60].mxu0  ;;  %v6637_v62 = vpop.eup %5003 }
 0x3e3   : > { %v6598_v48 = vsub.f32 %v4447_v63, %v6409_v57  ;;  %v1529_v30 = vpop.f32.mrb[61].mxu0  ;;  %v1770_v63 = vpop.xlane.xlu1 %1769 }
 0x3e4   : > { %v4448_v49 = vpop.f32.mrb[62].mxu0  ;;  %v6627_v21 = vsub.f32 %v1529_v30, %v6420_v10  ;;  %v1889_v34 = vsub.f32 %v6400_v43, %v1770_v63  ;;  %v1947_v30 = vmul.f32 1.442695, %v1882_v27  ;;  %v6641_v11 = vpop.eup %5005 }
 0x3e5   : > { %7800 = vst [vmem:[#allocation64_spill] sm:$0xff] %v6598_v48  ;;  %v6602_v46 = vsub.f32 %v4448_v49, %v6423_v20  ;;  %1845 = vmax.xlane.f32.xlu1 %v6598_v48  ;;  %v1532_v0 = vpop.f32.mrb[63].mxu0  ;;  %v1945_v49 = vmul.f32 1.442695, %v1881_v51  ;;  %v1886_v51 = vsub.f32 %v6386_v32, %v1764_v38  ;;  %v6645_v43 = vpop.eup %5007  ;;  %v1967_v38 = vmul.f32 1.442695, %v1892_v4 }
 0x3e6   : > { %v6606_v61 = vpop.f32.mrb[44].mxu1  ;;  %7801 = vst [vmem:[#allocation65_spill] sm:$0xff] %v6627_v21  ;;  %v6632_v6 = vsub.f32 %v1532_v0, %v6434_v33  ;;  %v1961_v0 = vmul.f32 1.442695, %v1889_v34 }
 0x3e7   : > { %v6612_v16 = vpop.f32.mrb[45].mxu1  ;;  %1847 = vmax.xlane.f32.xlu0 %v6602_v46  ;;  %5009 = vpow2.f32 %v1945_v49  ;;  %v1955_v54 = vmul.f32 1.442695, %v1886_v51  ;;  %v1890_v49 = vsub.f32 %v6414_v7, %v1772_v12  ;;  %v1782_v42 = vpop.xlane.xlu1 %1781 }
 0x3e8   : > { %v6616_v3 = vpop.f32.mrb[46].mxu1  ;;  %5011 = vpow2.f32 %v1959_v50  ;;  %v1784_v7 = vpop.xlane.xlu0 %1783  ;;  %v1895_v27 = vsub.f32 %v6417_v8, %v1782_v42  ;;  %v6681_v42 = vsub.f32 %v6488_v45, %v6322_v55 }
 0x3e9   : > { %v6622_v22 = vpop.f32.mrb[47].mxu1  ;;  %1809 = vmax.xlane.f32.xlu1 %v6610_v36  ;;  %5013 = vpow2.f32 %v1951_v19  ;;  %v1963_v47 = vmul.f32 1.442695, %v1890_v49  ;;  %v1896_v4 = vsub.f32 %v6431_v15, %v1784_v7 }
 0x3ea   : > { %5015 = vpow2.f32 %v1965_v53 }
 0x3eb   : > { %1811 = vmax.xlane.f32.xlu0 %v6620_v23  ;;  %5017 = vpow2.f32 %v1947_v30  ;;  %v1778_v63 = vpop.xlane.xlu1 %1777  ;;  %v1973_v30 = vmul.f32 1.442695, %v1895_v27  ;;  %v1975_v49 = vmul.f32 1.442695, %v1896_v4 }
 0x3ec   : > { %5019 = vpow2.f32 %v1961_v0  ;;  %v1893_v53 = vsub.f32 %v6428_v13, %v1778_v63  ;;  %v1780_v51 = vpop.xlane.xlu0 %1779  ;;  %v7809_v63 = vld [vmem:[#allocation37_spill] sm:$0xff] }
 0x3ed   : > { %1841 = vmax.xlane.f32.xlu1 %v6627_v21  ;;  %5021 = vpow2.f32 %v1955_v54  ;;  %v1894_v13 = vsub.f32 %v6439_v35, %v1780_v51  ;;  %v6691_v35 = vsub.f32 %v6490_v9, %v6333_v5  ;;  %v7811_v51 = vld [vmem:[#allocation39_spill] sm:$0xff] }
 0x3ee   : > { %5023 = vpow2.f32 %v1967_v38  ;;  %v1969_v0 = vmul.f32 1.442695, %v1893_v53  ;;  %v6686_v38 = vsub.f32 %v6493_v26, %v6346_v17  ;;  %v6702_v17 = vsub.f32 %v6499_v44, %v6327_v14  ;;  %v7810_v53 = vld [vmem:[#allocation34_spill] sm:$0xff] }
 0x3ef   : > { %1843 = vmax.xlane.f32.xlu0 %v6632_v6  ;;  %5025 = vpow2.f32 %v1963_v47  ;;  %v1971_v15 = vmul.f32 1.442695, %v1894_v13  ;;  %v6713_v26 = vsub.f32 %v6512_v39, %v6349_v18  ;;  %v6718_v44 = vsub.f32 %v6517_v1, %v6365_v2 }
 0x3f0   : > { %5027 = vpow2.f32 %v1973_v30  ;;  %v6723_v14 = vsub.f32 %v6514_v58, %v6362_v56  ;;  %v6728_v47 = vsub.f32 %v6523_v25, %v6377_v24  ;;  %v6733_v39 = vsub.f32 %v6538_v52, %v6380_v28  ;;  %v7804_v24 = vld [vmem:[#allocation33_spill] sm:$0xff]  ;;  %v7805_v52 = vld [vmem:[#allocation54_spill] sm:$0xff] }
 0x3f1   : > { %2085 = vadd.xlane.f32.xlu1 %v6637_v62  ;;  %v6649_v32 = vpop.eup %5009  ;;  %5029 = vpow2.f32 %v1969_v0  ;;  %v6739_v58 = vsub.f32 %v6545_v40, %v6395_v60  ;;  %v6744_v25 = vsub.f32 %v6540_v41, %v6392_v37  ;;  %v6749_v28 = vsub.f32 %v7805_v52, %v7804_v24  ;;  %v7808_v40 = vld [vmem:[#allocation35_spill] sm:$0xff]  ;;  %v7814_v52 = vld [vmem:[#allocation41_spill] sm:$0xff] }
 0x3f2   : > { %v6652_v50 = vpop.eup %5011  ;;  %5031 = vpow2.f32 %v1975_v49  ;;  %7802 = vst [vmem:[#allocation66_spill] sm:$0xff] %v6733_v39  ;;  %v6759_v37 = vsub.f32 %v6616_v3, %v6423_v20  ;;  %v6764_v60 = vsub.f32 %v6612_v16, %v6420_v10  ;;  %v6769_v1 = vsub.f32 %v6622_v22, %v6434_v33  ;;  %v7812_v49 = vld [vmem:[#allocation40_spill] sm:$0xff] }
 0x3f3   : > { %2077 = vadd.xlane.f32.xlu0 %v6641_v11  ;;  %v6655_v31 = vpop.eup %5013  ;;  %5033 = vpow2.f32 %v1971_v15  ;;  %7803 = vst [vmem:[#allocation67_spill] sm:$0xff] %v6744_v25 }
 0x3f4   : > { %v6658_v59 = vpop.eup %5015  ;;  %7807 = vst [vmem:[#allocation54_spill] sm:$0xff] %v6764_v60 }
 0x3f5   : > { %2081 = vadd.xlane.f32.xlu1 %v6645_v43  ;;  %v6662_v19 = vpop.eup %5017 }
 0x3f6   : > { %v6666_v34 = vpop.eup %5019 }
 0x3f7   : > { %2073 = vadd.xlane.f32.xlu0 %v6649_v32  ;;  %v6669_v12 = vpop.eup %5021 }
 0x3f8   : > { %v6673_v8 = vpop.eup %5023 }
 0x3f9   : > { %2087 = vadd.xlane.f32.xlu1 %v6652_v50  ;;  %v6677_v54 = vpop.eup %5025 }
 0x3fa   : > { %v6695_v55 = vpop.eup %5027 }
 0x3fb   : > { %2079 = vadd.xlane.f32.xlu0 %v6655_v31  ;;  %v6698_v45 = vpop.eup %5029 }
 0x3fc   : > { %v6706_v5 = vpop.eup %5031 }
 0x3fd   : > { %2093 = vadd.xlane.f32.xlu1 %v6658_v59  ;;  %v6709_v9 = vpop.eup %5033 }
 0x3ff   : > { %2075 = vadd.xlane.f32.xlu0 %v6662_v19 }
 0x401   : > { %2089 = vadd.xlane.f32.xlu1 %v6666_v34 }
 0x403   : > { %2083 = vadd.xlane.f32.xlu0 %v6669_v12 }
 0x405   : > { %2095 = vadd.xlane.f32.xlu1 %v6673_v8 }
 0x406   : > { %v1790_v18 = vpop.xlane.xlu1 %1789 }
 0x407   : > { %2091 = vadd.xlane.f32.xlu0 %v6677_v54  ;;  %v1899_v2 = vsub.f32 %v6443_v29, %v1790_v18  ;;  %v6754_v29 = vsub.f32 %v6606_v61, %v6409_v57 }
 0x408   : > { %v1792_v20 = vpop.xlane.xlu0 %1791 }
 0x409   : > { %1853 = vmax.xlane.f32.xlu1 %v6681_v42  ;;  %v1981_v56 = vmul.f32 1.442695, %v1899_v2  ;;  %7806 = vst [vmem:[#allocation33_spill] sm:$0xff] %v6754_v29  ;;  %v1900_v30 = vsub.f32 %v7810_v53, %v1792_v20 }
 0x40b   : > { %1855 = vmax.xlane.f32.xlu0 %v6686_v38  ;;  %5035 = vpow2.f32 %v1981_v56  ;;  %v1983_v2 = vmul.f32 1.442695, %v1900_v30  ;;  %v7813_v56 = vld [vmem:[#allocation36_spill] sm:$0xff]  ;;  %v7816_v30 = vld [vmem:[#allocation42_spill] sm:$0xff] }
 0x40d   : > { %1849 = vmax.xlane.f32.xlu1 %v6691_v35 }
 0x40f   : > { %2101 = vadd.xlane.f32.xlu0 %v6695_v55 }
 0x411   : > { %2097 = vadd.xlane.f32.xlu1 %v6698_v45 }
 0x413   : > { %1851 = vmax.xlane.f32.xlu0 %v6702_v17 }
 0x415   : > { %2103 = vadd.xlane.f32.xlu1 %v6706_v5  ;;  %v6773_v57 = vpop.eup %5035 }
 0x417   : > { %2099 = vadd.xlane.f32.xlu0 %v6709_v9 }
 0x419   : > { %1861 = vmax.xlane.f32.xlu1 %v6713_v26 }
 0x41b   : > { %1863 = vmax.xlane.f32.xlu0 %v6718_v44 }
 0x41d   : > { %1857 = vmax.xlane.f32.xlu1 %v6723_v14 }
 0x41f   : > { %1859 = vmax.xlane.f32.xlu0 %v6728_v47 }
 0x421   : > { %1869 = vmax.xlane.f32.xlu1 %v6733_v39 }
 0x423   : > { %1871 = vmax.xlane.f32.xlu0 %v6739_v58 }
 0x425   : > { %1865 = vmax.xlane.f32.xlu1 %v6744_v25 }
 0x427   : > { %1867 = vmax.xlane.f32.xlu0 %v6749_v28 }
 0x429   : > { %1877 = vmax.xlane.f32.xlu1 %v6754_v29 }
 0x42b   : > { %1879 = vmax.xlane.f32.xlu0 %v6759_v37 }
 0x42d   : > { %1873 = vmax.xlane.f32.xlu1 %v6764_v60 }
 0x42f   : > { %1875 = vmax.xlane.f32.xlu0 %v6769_v1 }
 0x433   : > { %2109 = vadd.xlane.f32.xlu0 %v6773_v57 }
 0x439   : > { %v1822_v41 = vpop.xlane.xlu1 %1821 }
 0x43a   : > { %v1915_v61 = vsub.f32 %v7808_v40, %v1822_v41 }
 0x43b   : > { %v1824_v16 = vpop.xlane.xlu0 %1823 }
 0x43c   : > { %v2013_v10 = vmul.f32 1.442695, %v1915_v61  ;;  %v1916_v24 = vsub.f32 %v7813_v56, %v1824_v16 }
 0x43d   : > { %v1786_v3 = vpop.xlane.xlu1 %1785 }
 0x43e   : > { %5037 = vpow2.f32 %v2013_v10  ;;  %v1897_v7 = vsub.f32 %v7809_v63, %v1786_v3  ;;  %v7815_v3 = vld [vmem:[#allocation38_spill] sm:$0xff] }
 0x43f   : > { %v1788_v22 = vpop.xlane.xlu0 %1787 }
 0x440   : > { %v1977_v33 = vmul.f32 1.442695, %v1897_v7  ;;  %v1898_v20 = vsub.f32 %v7815_v3, %v1788_v22 }
 0x441   : > { %v1818_v27 = vpop.xlane.xlu1 %1817 }
 0x442   : > { %5039 = vpow2.f32 %v1977_v33  ;;  %v1913_v0 = vsub.f32 %v7811_v51, %v1818_v27  ;;  %v2015_v33 = vmul.f32 1.442695, %v1916_v24  ;;  %v1979_v16 = vmul.f32 1.442695, %v1898_v20  ;;  %v7819_v24 = vld [vmem:[#allocation46_spill] sm:$0xff] }
 0x443   : > { %v1820_v13 = vpop.xlane.xlu0 %1819 }
 0x444   : > { %v2009_v4 = vmul.f32 1.442695, %v1913_v0  ;;  %v1914_v15 = vsub.f32 %v7812_v49, %v1820_v13  ;;  %v7818_v13 = vld [vmem:[#allocation45_spill] sm:$0xff] }
 0x445   : > { %v1798_v18 = vpop.xlane.xlu1 %1797 }
 0x446   : > { %5041 = vpow2.f32 %v2009_v4  ;;  %v1903_v41 = vsub.f32 %v7814_v52, %v1798_v18  ;;  %v2011_v40 = vmul.f32 1.442695, %v1914_v15  ;;  %v7817_v4 = vld [vmem:[#allocation43_spill] sm:$0xff] }
 0x447   : > { %v1800_v10 = vpop.xlane.xlu0 %1799 }
 0x448   : > { %v6783_v61 = vpop.eup %5037  ;;  %5043 = vpow2.f32 %v2011_v40  ;;  %v1989_v63 = vmul.f32 1.442695, %v1903_v41  ;;  %v1904_v51 = vsub.f32 %v7816_v30, %v1800_v10  ;;  %v7820_v10 = vld [vmem:[#allocation48_spill] sm:$0xff] }
 0x449   : > { %v1830_v7 = vpop.xlane.xlu1 %1829  ;;  %2141 = vadd.xlane.f32.xlu0 %v6783_v61  ;;  %5045 = vpow2.f32 %v1983_v2 }
 0x44a   : > { %5047 = vpow2.f32 %v1989_v63  ;;  %v1919_v22 = vsub.f32 %v7817_v4, %v1830_v7  ;;  %v1991_v56 = vmul.f32 1.442695, %v1904_v51  ;;  %v7822_v4 = vld [vmem:[#allocation49_spill] sm:$0xff] }
 0x44b   : > { %v1832_v53 = vpop.xlane.xlu0 %1831  ;;  %5049 = vpow2.f32 %v2015_v33  ;;  %v7821_v33 = vld [vmem:[#allocation44_spill] sm:$0xff] }
 0x44c   : > { %v6787_v27 = vpop.eup %5039  ;;  %5051 = vpow2.f32 %v1979_v16  ;;  %v2021_v40 = vmul.f32 1.442695, %v1919_v22  ;;  %v1920_v16 = vsub.f32 %v7821_v33, %v1832_v53 }
 0x44d   : > { %v1794_v0 = vpop.xlane.xlu1 %1793  ;;  %2105 = vadd.xlane.f32.xlu1 %v6787_v27 }
 0x44e   : > { %v1901_v49 = vsub.f32 %v7818_v13, %v1794_v0 }
 0x44f   : > { %v1796_v2 = vpop.xlane.xlu0 %1795 }
 0x450   : > { %v6793_v15 = vpop.eup %5041  ;;  %v1985_v18 = vmul.f32 1.442695, %v1901_v49  ;;  %v1902_v52 = vsub.f32 %v7819_v24, %v1796_v2  ;;  %v2023_v2 = vmul.f32 1.442695, %v1920_v16 }
 0x451   : > { %v1826_v41 = vpop.xlane.xlu1 %1825  ;;  %2137 = vadd.xlane.f32.xlu0 %v6793_v15 }
 0x452   : > { %5053 = vpow2.f32 %v1985_v18  ;;  %v1917_v3 = vsub.f32 %v7820_v10, %v1826_v41  ;;  %v6798_v20 = vpop.eup %5043  ;;  %v1987_v30 = vmul.f32 1.442695, %v1902_v52  ;;  %v7825_v41 = vld [vmem:[#allocation53_spill] sm:$0xff] }
 0x453   : > { %v6800_v63 = vpop.eup %5045  ;;  %v1828_v7 = vpop.xlane.xlu0 %1827  ;;  %2139 = vadd.xlane.f32.xlu1 %v6798_v20  ;;  %5055 = vpow2.f32 %v1991_v56  ;;  %v7824_v56 = vld [vmem:[#allocation50_spill] sm:$0xff] }
 0x454   : > { %5057 = vpow2.f32 %v2021_v40  ;;  %v2017_v0 = vmul.f32 1.442695, %v1917_v3  ;;  %v1918_v22 = vsub.f32 %v7822_v4, %v1828_v7  ;;  %v6806_v13 = vpop.eup %5047 }
 0x455   : > { %v1806_v51 = vpop.xlane.xlu1 %1805  ;;  %2111 = vadd.xlane.f32.xlu0 %v6800_v63  ;;  %7823 = vst [vmem:[#allocation35_spill] sm:$0xff] %v6806_v13  ;;  %v6808_v49 = vpop.eup %5049  ;;  %5059 = vpow2.f32 %v1987_v30 }
 0x456   : > { %v1907_v24 = vsub.f32 %v7824_v56, %v1806_v51  ;;  %5061 = vpow2.f32 %v2017_v0  ;;  %v2019_v52 = vmul.f32 1.442695, %v1918_v22  ;;  %v6816_v10 = vpop.eup %5051  ;;  %v7826_v51 = vld [vmem:[#allocation57_spill] sm:$0xff] }
 0x457   : > { %v1808_v18 = vpop.xlane.xlu0 %1807  ;;  %2117 = vadd.xlane.f32.xlu1 %v6806_v13  ;;  %5063 = vpow2.f32 %v2023_v2 }
 0x458   : > { %v1908_v40 = vsub.f32 %v7825_v41, %v1808_v18  ;;  %v1997_v33 = vmul.f32 1.442695, %v1907_v24  ;;  %5065 = vpow2.f32 %v2019_v52  ;;  %v7829_v41 = vld [vmem:[#allocation59_spill] sm:$0xff] }
 0x459   : > { %v6812_v53 = vpop.xlane.xlu1 %1837  ;;  %2143 = vadd.xlane.f32.xlu0 %v6808_v49 }
 0x45a   : > { %v1999_v30 = vmul.f32 1.442695, %v1908_v40  ;;  %5067 = vpow2.f32 %v1997_v33  ;;  %v7832_v33 = vld [vmem:[#allocation62_spill] sm:$0xff] }
 0x45b   : > { %v6820_v7 = vpop.xlane.xlu0 %1839 }
 0x45c   : > { %v6818_v3 = vpop.eup %5053  ;;  %5069 = vpow2.f32 %v1999_v30 }
 0x45d   : > { %v1802_v16 = vpop.xlane.xlu1 %1801  ;;  %2113 = vadd.xlane.f32.xlu1 %v6818_v3  ;;  %2107 = vadd.xlane.f32.xlu0 %v6816_v10  ;;  %v6825_v4 = vpop.eup %5055 }
 0x45e   : > { %v1905_v0 = vsub.f32 %v7826_v51, %v1802_v16  ;;  %7827 = vst [vmem:[#allocation37_spill] sm:$0xff] %v6825_v4  ;;  %v6827_v22 = vpop.eup %5057 }
 0x45f   : > { %7828 = vst [vmem:[#allocation34_spill] sm:$0xff] %v6827_v22  ;;  %v1804_v18 = vpop.xlane.xlu0 %1803  ;;  %v6834_v24 = vpop.eup %5059 }
 0x460   : > { %v1993_v56 = vmul.f32 1.442695, %v1905_v0  ;;  %v1906_v29 = vsub.f32 %v7829_v41, %v1804_v18  ;;  %v6836_v40 = vpop.eup %5061 }
 0x461   : > { %v6830_v2 = vpop.xlane.xlu1 %1833  ;;  %2119 = vadd.xlane.f32.xlu1 %v6825_v4  ;;  %2149 = vadd.xlane.f32.xlu0 %v6827_v22  ;;  %7830 = vst [vmem:[#allocation39_spill] sm:$0xff] %v6836_v40  ;;  %v6843_v18 = vpop.eup %5063 }
 0x462   : > { %v1995_v52 = vmul.f32 1.442695, %v1906_v29  ;;  %5071 = vpow2.f32 %v1993_v56  ;;  %7833 = vst [vmem:[#allocation36_spill] sm:$0xff] %v6843_v18  ;;  %v6845_v41 = vpop.eup %5065  ;;  %v7835_v29 = vld [vmem:[#allocation63_spill] sm:$0xff] }
 0x463   : > { %v6838_v16 = vpop.xlane.xlu0 %1835  ;;  %7834 = vst [vmem:[#allocation41_spill] sm:$0xff] %v6845_v41 }
 0x464   : > { %7831 = vst [vmem:[#allocation40_spill] sm:$0xff] %v6838_v16  ;;  %5073 = vpow2.f32 %v1995_v52  ;;  %v6850_v56 = vpop.eup %5067 }
 0x465   : > { %v1814_v51 = vpop.xlane.xlu1 %1813  ;;  %2115 = vadd.xlane.f32.xlu1 %v6834_v24  ;;  %2145 = vadd.xlane.f32.xlu0 %v6836_v40  ;;  %7836 = vst [vmem:[#allocation38_spill] sm:$0xff] %v6850_v56 }
 0x466   : > { %v1911_v0 = vsub.f32 %v7832_v33, %v1814_v51  ;;  %v6852_v39 = vpop.eup %5069 }
 0x467   : > { %v1816_v60 = vpop.xlane.xlu0 %1815  ;;  %7837 = vst [vmem:[#allocation42_spill] sm:$0xff] %v6852_v39 }
 0x468   : > { %v2005_v30 = vmul.f32 1.442695, %v1911_v0  ;;  %v1912_v48 = vsub.f32 %v7835_v29, %v1816_v60 }
 0x469   : > { %2147 = vadd.xlane.f32.xlu1 %v6845_v41  ;;  %2151 = vadd.xlane.f32.xlu0 %v6843_v18 }
 0x46a   : > { %5075 = vpow2.f32 %v2005_v30  ;;  %v2007_v21 = vmul.f32 1.442695, %v1912_v48 }
 0x46c   : > { %5077 = vpow2.f32 %v2007_v21  ;;  %v6856_v52 = vpop.eup %5071 }
 0x46d   : > { %2127 = vadd.xlane.f32.xlu1 %v6852_v39  ;;  %2125 = vadd.xlane.f32.xlu0 %v6850_v56  ;;  %7838 = vst [vmem:[#allocation43_spill] sm:$0xff] %v6856_v52 }
 0x46e   : > { %v6858_v51 = vpop.eup %5073 }
 0x46f   : > { %7839 = vst [vmem:[#allocation45_spill] sm:$0xff] %v6858_v51 }
 0x471   : > { %2123 = vadd.xlane.f32.xlu1 %v6858_v51  ;;  %2121 = vadd.xlane.f32.xlu0 %v6856_v52 }
 0x472   : > { %v6862_v60 = vpop.xlane.xlu1 %1845 }
 0x473   : > { %7840 = vst [vmem:[#allocation46_spill] sm:$0xff] %v6862_v60 }
 0x474   : > { %v6864_v33 = vpop.eup %5075  ;;  %v6866_v48 = vpop.xlane.xlu0 %1847 }
 0x475   : > { %7841 = vst [vmem:[#allocation48_spill] sm:$0xff] %v6864_v33  ;;  %2133 = vadd.xlane.f32.xlu0 %v6864_v33 }
 0x476   : > { %v1810_v21 = vpop.xlane.xlu1 %1809  ;;  %v6869_v0 = vpop.eup %5077 }
 0x477   : > { %7842 = vst [vmem:[#allocation44_spill] sm:$0xff] %v6869_v0  ;;  %v1909_v30 = vsub.f32 %v6610_v36, %v1810_v21  ;;  %2135 = vadd.xlane.f32.xlu1 %v6869_v0 }
 0x478   : > { %v1812_v29 = vpop.xlane.xlu0 %1811 }
 0x479   : > { %v2001_v39 = vmul.f32 1.442695, %v1909_v30  ;;  %v1910_v56 = vsub.f32 %v6620_v23, %v1812_v29 }
 0x47a   : > { %v6874_v52 = vpop.xlane.xlu1 %1841 }
 0x47b   : > { %7843 = vst [vmem:[#allocation49_spill] sm:$0xff] %v6874_v52  ;;  %5079 = vpow2.f32 %v2001_v39  ;;  %v2003_v60 = vmul.f32 1.442695, %v1910_v56 }
 0x47c   : > { %v6876_v51 = vpop.xlane.xlu0 %1843 }
 0x47d   : > { %5081 = vpow2.f32 %v2003_v60 }
 0x47e   : > { %v2086_v25 = vpop.xlane.xlu1 %2085 }
 0x480   : > { %v2078_v33 = vpop.xlane.xlu0 %2077 }
 0x482   : > { %v2082_v16 = vpop.xlane.xlu1 %2081 }
 0x484   : > { %v2074_v18 = vpop.xlane.xlu0 %2073 }
 0x485   : > { %v6878_v22 = vpop.eup %5079 }
 0x486   : > { %7844 = vst [vmem:[#allocation50_spill] sm:$0xff] %v6878_v22  ;;  %v2088_v36 = vpop.xlane.xlu1 %2087  ;;  %2129 = vadd.xlane.f32.xlu0 %v6878_v22 }
 0x487   : > { %v6881_v21 = vpop.eup %5081 }
 0x488   : > { %7845 = vst [vmem:[#allocation53_spill] sm:$0xff] %v6881_v21  ;;  %2131 = vadd.xlane.f32.xlu1 %v6881_v21  ;;  %v2080_v23 = vpop.xlane.xlu0 %2079 }
 0x489   : > { %5083 = vrcp.f32 %v2080_v23 }
 0x48a   : > { %v2094_v39 = vpop.xlane.xlu1 %2093  ;;  %5085 = vrcp.f32 %v2074_v18 }
 0x48b   : > { %5087 = vrcp.f32 %v2078_v33 }
 0x48c   : > { %v2076_v56 = vpop.xlane.xlu0 %2075 }
 0x48d   : > { %5089 = vrcp.f32 %v2076_v56 }
 0x48e   : > { %v2090_v60 = vpop.xlane.xlu1 %2089  ;;  %5091 = vrcp.f32 %v2082_v16 }
 0x490   : > { %v2084_v30 = vpop.xlane.xlu0 %2083 }
 0x491   : > { %5093 = vrcp.f32 %v2084_v30 }
 0x492   : > { %5095 = vrcp.f32 %v2088_v36  ;;  %v2096_v29 = vpop.xlane.xlu1 %2095 }
 0x493   : > { %v5084_v0 = vpop.eup %5083  ;;  %5097 = vrcp.f32 %v2086_v25 }
 0x494   : > { %v2092_v22 = vpop.xlane.xlu0 %2091  ;;  %v5086_v52 = vpop.eup %5085  ;;  %v2268_v18 = vmul.f32 %v5084_v0, %v6655_v31 }
 0x495   : > { %5099 = vrcp.f32 %v2092_v22  ;;  %v5088_v41 = vpop.eup %5087  ;;  %v2265_v16 = vmul.f32 %v5086_v52, %v6649_v32  ;;  %v7846_v52 = vld [vmem:[#allocation26_spill] sm:$0xff] }
 0x496   : > { %5101 = vrcp.f32 %v2090_v60  ;;  %v1854_v21 = vpop.xlane.xlu1 %1853  ;;  %v2267_v40 = vmul.f32 %v5088_v41, %v6641_v11 }
 0x497   : > { %v5090_v23 = vpop.eup %5089  ;;  %v1931_v33 = vsub.f32 %v6681_v42, %v1854_v21  ;;  %5103 = vrcp.f32 %v2096_v29 }
 0x498   : > { %v1856_v56 = vpop.xlane.xlu0 %1855  ;;  %v2266_v30 = vmul.f32 %v5090_v23, %v6662_v19  ;;  %v5092_v36 = vpop.eup %5091  ;;  %v2330_v0 = vpack.c.bf16 %v2268_v18, %v2267_v40 }
 0x499   : > { %v2045_v25 = vmul.f32 1.442695, %v1931_v33  ;;  %v1932_v13 = vsub.f32 %v6686_v38, %v1856_v56  ;;  %v2269_v19 = vmul.f32 %v5092_v36, %v6645_v43 }
 0x49a   : > { %v1850_v22 = vpop.xlane.xlu1 %1849  ;;  %v2329_v60 = vpack.c.bf16 %v2266_v30, %v2265_v16  ;;  %v7848_v16 = vld [vmem:[#allocation29_spill] sm:$0xff] }
 0x49b   : > { %v5094_v4 = vpop.eup %5093  ;;  %5105 = vpow2.f32 %v2045_v25  ;;  %v1929_v31 = vsub.f32 %v6691_v35, %v1850_v22  ;;  %v2047_v21 = vmul.f32 1.442695, %v1932_v13  ;;  %v7847_v35 = vld [vmem:[#allocation28_spill] sm:$0xff] }
 0x49c   : > { %v5096_v42 = vpop.eup %5095  ;;  %5107 = vrcp.f32 %v2094_v39  ;;  %4497 = vmatprep.mubr.bf16.mxu0 %v2329_v60  ;;  %v2102_v32 = vpop.xlane.xlu0 %2101  ;;  %v2270_v11 = vmul.f32 %v5094_v4, %v6669_v12 }
 0x49d   : > { %v2041_v41 = vmul.f32 1.442695, %v1929_v31  ;;  %4498 = vmatmul.mubr.bf16.vlgmr.msra.gmra.mrb[64].mxu0 %v2330_v0  ;;  %v5098_v38 = vpop.eup %5097  ;;  %v2272_v40 = vmul.f32 %v5096_v42, %v6652_v50  ;;  %v7850_v42 = vld [vmem:[#allocation51_spill] sm:$0xff] }
 0x49e   : > { %4546 = vmatpush3.bf16.msra.mxu0 %v7846_v52  ;;  %v2098_v29 = vpop.xlane.xlu1 %2097  ;;  %v2331_v23 = vpack.c.bf16 %v2270_v11, %v2269_v19  ;;  %v2271_v12 = vmul.f32 %v5098_v38, %v6637_v62 }
 0x49f   : > { %v5100_v33 = vpop.eup %5099  ;;  %5109 = vpow2.f32 %v2041_v41  ;;  %4547 = vmatprep.subr.bf16.mxu0 %v7847_v35 }
 0x4a0   : > { %v5102_v13 = vpop.eup %5101  ;;  %5111 = vpow2.f32 %v2047_v21  ;;  %4501 = vmatprep.mubr.bf16.mxu0 %v2331_v23  ;;  %v1852_v39 = vpop.xlane.xlu0 %1851  ;;  %v2274_v4 = vmul.f32 %v5100_v33, %v6677_v54  ;;  %v2332_v30 = vpack.c.bf16 %v2272_v40, %v2271_v12 }
 0x4a1   : > { %v1930_v43 = vsub.f32 %v6702_v17, %v1852_v39  ;;  %5113 = vrcp.f32 %v2102_v32  ;;  %v2273_v50 = vmul.f32 %v5102_v13, %v6666_v34  ;;  %v5104_v36 = vpop.eup %5103  ;;  %v7849_v17 = vld [vmem:[#allocation31_spill] sm:$0xff] }
 0x4a2   : > { %4548 = vmatpush3.bf16.msra.mxu0 %v7847_v35  ;;  %v2104_v18 = vpop.xlane.xlu1 %2103  ;;  %v2276_v60 = vmul.f32 %v5104_v36, %v6673_v8 }
 0x4a3   : > { %v2043_v56 = vmul.f32 1.442695, %v1930_v43  ;;  %5115 = vrcp.f32 %v2104_v18  ;;  %4549 = vmatprep.subr.bf16.mxu0 %v7848_v16  ;;  %v2333_v62 = vpack.c.bf16 %v2274_v4, %v2273_v50  ;;  %v7852_v43 = vld [vmem:[#allocation25_spill] sm:$0xff] }
 0x4a4   : > { %5117 = vrcp.f32 %v2098_v29  ;;  %v2100_v25 = vpop.xlane.xlu0 %2099 }
 0x4a5   : > { %v6902_v22 = vpop.eup %5105  ;;  %5119 = vpow2.f32 %v2043_v56  ;;  %4502 = vmatmul.mubr.bf16.gmra.mrb[68].mxu0 %v2332_v30 }
 0x4a6   : > { %v5108_v54 = vpop.eup %5107  ;;  %5121 = vrcp.f32 %v2100_v25  ;;  %4550 = vmatpush3.bf16.msra.mxu0 %v7848_v16  ;;  %2173 = vadd.xlane.f32.xlu0 %v6902_v22  ;;  %v1862_v39 = vpop.xlane.xlu1 %1861 }
 0x4a7   : > { %4505 = vmatprep.mubr.bf16.mxu0 %v2333_v62  ;;  %4551 = vmatprep.subr.bf16.mxu0 %v7849_v17  ;;  %v2275_v31 = vmul.f32 %v5108_v54, %v6658_v59  ;;  %v7851_v59 = vld [vmem:[#allocation58_spill] sm:$0xff]  ;;  %v1935_v30 = vsub.f32 %v6713_v26, %v1862_v39  ;;  %v7855_v26 = vld [vmem:[#allocation60_spill] sm:$0xff] }
 0x4a8   : > { %v1864_v23 = vpop.xlane.xlu0 %1863 }
 0x4a9   : > { %v6908_v34 = vpop.eup %5109  ;;  %v2334_v21 = vpack.c.bf16 %v2276_v60, %v2275_v31  ;;  %v2053_v25 = vmul.f32 1.442695, %v1935_v30  ;;  %v1936_v62 = vsub.f32 %v6718_v44, %v1864_v23 }
 0x4aa   : > { %v6911_v0 = vpop.eup %5111  ;;  %4552 = vmatpush3.bf16.msra.mxu0 %v7849_v17  ;;  %2169 = vadd.xlane.f32.xlu1 %v6908_v34 }
 0x4ab   : > { %4553 = vmatprep.subr.bf16.mxu0 %v7850_v42  ;;  %2175 = vadd.xlane.f32.xlu0 %v6911_v0  ;;  %v5114_v32 = vpop.eup %5113  ;;  %5123 = vpow2.f32 %v2053_v25 }
 0x4ac   : > { %v2279_v33 = vmul.f32 %v5114_v32, %v6695_v55  ;;  %v1860_v13 = vpop.xlane.xlu0 %1859  ;;  %v7854_v55 = vld [vmem:[#allocation23_spill] sm:$0xff] }
 0x4ad   : > { %v5116_v19 = vpop.eup %5115  ;;  %4506 = vmatmul.mubr.bf16.gmra.mrb[72].mxu0 %v2334_v21  ;;  %v1934_v60 = vsub.f32 %v6728_v47, %v1860_v13 }
 0x4ae   : > { %v5118_v11 = vpop.eup %5117  ;;  %4554 = vmatpush3.bf16.msra.mxu0 %v7850_v42  ;;  %v2280_v38 = vmul.f32 %v5116_v19, %v6706_v5  ;;  %v7853_v5 = vld [vmem:[#allocation24_spill] sm:$0xff]  ;;  %v2055_v42 = vmul.f32 1.442695, %v1936_v62 }
 0x4af   : > { %v6918_v8 = vpop.eup %5119  ;;  %4555 = vmatprep.subr.bf16.mxu0 %v7851_v59  ;;  %v2277_v52 = vmul.f32 %v5118_v11, %v6698_v45  ;;  %v1858_v45 = vpop.xlane.xlu1 %1857  ;;  %v2051_v32 = vmul.f32 1.442695, %v1934_v60  ;;  %v1921_v11 = vsub.f32 %v7855_v26, %v6830_v2  ;;  %v7857_v2 = vld [vmem:[#allocation56_spill] sm:$0xff] }
 0x4b0   : > { %v5122_v41 = vpop.eup %5121  ;;  %2171 = vadd.xlane.f32.xlu0 %v6918_v8  ;;  %v2336_v40 = vpack.c.bf16 %v2280_v38, %v2279_v33  ;;  %v6929_v12 = vpop.xlane.xlu0 %1871  ;;  %v1933_v36 = vsub.f32 %v6723_v14, %v1858_v45  ;;  %v1924_v33 = vsub.f32 %v7857_v2, %v6820_v7 }
 0x4b1   : > { %v2278_v29 = vmul.f32 %v5122_v41, %v6709_v9  ;;  %v2025_v47 = vmul.f32 1.442695, %v1921_v11 }
 0x4b2   : > { %4556 = vmatpush3.bf16.msra.mxu0 %v7851_v59  ;;  %v2049_v17 = vmul.f32 1.442695, %v1933_v36  ;;  %v7856_v59 = vld [vmem:[#allocation55_spill] sm:$0xff] }
 0x4b3   : > { %v2335_v35 = vpack.c.bf16 %v2278_v29, %v2277_v52  ;;  %v6937_v4 = vpop.xlane.xlu1 %1869  ;;  %v1923_v44 = vsub.f32 %v7856_v59, %v6812_v53 }
 0x4b4   : > { %v1868_v9 = vpop.xlane.xlu0 %1867  ;;  %5125 = vpow2.f32 %v2049_v17 }
 0x4b5   : > { %4509 = vmatprep.mubr.bf16.mxu0 %v2335_v35  ;;  %5127 = vpow2.f32 %v2055_v42  ;;  %v6957_v52 = vpop.eup %5123  ;;  %v2029_v29 = vmul.f32 1.442695, %v1923_v44 }
 0x4b6   : > { %4510 = vmatmul.mubr.bf16.gmra.mrb[76].mxu0 %v2336_v40  ;;  %v1938_v40 = vsub.f32 %v6749_v28, %v1868_v9  ;;  %v1940_v28 = vsub.f32 %v6739_v58, %v6929_v12 }
 0x4b7   : > { %v6941_v56 = vpop.xlane.xlu1 %1865 }
 0x4b8   : > { %v6939_v18 = vpop.xlane.xlu0 %1879  ;;  %v2059_v30 = vmul.f32 1.442695, %v1938_v40 }
 0x4bb   : > { %1033 = vrot.lane.b32.xlu1 %v7852_v43, %s5574_s20  ;;  %v6946_v50 = vpop.xlane.xlu1 %1877 }
 0x4bc   : > { %v6943_v16 = vpop.xlane.xlu0 %1875 }
 0x4be   : > { %v6960_v23 = vpop.eup %5125 }
 0x4bf   : > { %1057 = vrot.lane.b32.xlu1 %v7852_v43, %s5575_s21  ;;  %v6951_v31 = vpop.xlane.xlu1 %1873  ;;  %v6966_v13 = vpop.eup %5127  ;;  %v2031_v43 = vmul.f32 1.442695, %v1924_v33 }
 0x4c0   : > { %v2110_v54 = vpop.xlane.xlu0 %2109 }
 0x4c3   : > { %1035 = vrot.lane.b32.xlu1 %v7853_v5, %s5574_s20 }
 0x4c6   : > { %1055 = vrot.lane.b32.xlu0 %v7854_v55, %s5575_s21 }
 0x4d6   : > { %v2142_v21 = vpop.xlane.xlu0 %2141 }
 0x4da   : > { %v2106_v19 = vpop.xlane.xlu1 %2105 }
 0x4de   : > { %v2138_v14 = vpop.xlane.xlu0 %2137 }
 0x4df   : > { %5129 = vrcp.f32 %v2138_v14  ;;  %v1928_v14 = vsub.f32 %v6602_v46, %v6866_v48 }
 0x4e0   : > { %5131 = vpow2.f32 %v2051_v32  ;;  %v2140_v41 = vpop.xlane.xlu1 %2139 }
 0x4e1   : > { %5133 = vrcp.f32 %v2140_v41 }
 0x4e2   : > { %v2112_v38 = vpop.xlane.xlu0 %2111  ;;  %5135 = vrcp.f32 %v2142_v21 }
 0x4e3   : > { %5137 = vpow2.f32 %v2025_v47 }
 0x4e4   : > { %v2118_v35 = vpop.xlane.xlu1 %2117 }
 0x4e5   : > { %2181 = vadd.xlane.f32.xlu0 %v6957_v52 }
 0x4e6   : > { %v2144_v53 = vpop.xlane.xlu0 %2143 }
 0x4e7   : > { %2177 = vadd.xlane.f32.xlu1 %v6960_v23  ;;  %5139 = vrcp.f32 %v2144_v53 }
 0x4e8   : > { %5141 = vpow2.f32 %v2029_v29 }
 0x4e9   : > { %5143 = vrcp.f32 %v2112_v38  ;;  %2183 = vadd.xlane.f32.xlu0 %v6966_v13  ;;  %v5130_v39 = vpop.eup %5129  ;;  %v2039_v38 = vmul.f32 1.442695, %v1928_v14 }
 0x4ea   : > { %5145 = vrcp.f32 %v2106_v19  ;;  %v2114_v45 = vpop.xlane.xlu1 %2113  ;;  %v2108_v55 = vpop.xlane.xlu0 %2107  ;;  %v2297_v9 = vmul.f32 %v5130_v39, %v6793_v15  ;;  %v1926_v15 = vsub.f32 %v6632_v6, %v6876_v51 }
 0x4eb   : > { %v6969_v7 = vpop.eup %5131  ;;  %5147 = vrcp.f32 %v2110_v54  ;;  %v2063_v54 = vmul.f32 1.442695, %v1940_v28 }
 0x4ec   : > { %v5134_v36 = vpop.eup %5133  ;;  %5149 = vrcp.f32 %v2108_v55  ;;  %v2035_v51 = vmul.f32 1.442695, %v1926_v15 }
 0x4ed   : > { %2179 = vadd.xlane.f32.xlu0 %v6969_v7  ;;  %v2298_v25 = vmul.f32 %v5134_v36, %v6798_v20  ;;  %5151 = vpow2.f32 %v2031_v43  ;;  %v5136_v60 = vpop.eup %5135  ;;  %v1944_v43 = vsub.f32 %v6759_v37, %v6939_v18 }
 0x4ee   : > { %v2120_v62 = vpop.xlane.xlu1 %2119  ;;  %v2150_v17 = vpop.xlane.xlu0 %2149  ;;  %5153 = vpow2.f32 %v2059_v30  ;;  %v6984_v20 = vmul.f32 %v5136_v60, %v6783_v61  ;;  %v7861_v60 = vld [vmem:[#allocation35_spill] sm:$0xff] }
 0x4ef   : > { %v2345_v42 = vpack.c.bf16 %v2298_v25, %v2297_v9  ;;  %v6976_v21 = vpop.eup %5137  ;;  %5155 = vrcp.f32 %v2114_v45  ;;  %v7858_v45 = vld [vmem:[#allocation27_spill] sm:$0xff]  ;;  %v7860_v25 = vld [vmem:[#allocation37_spill] sm:$0xff] }
 0x4f0   : > { %5157 = vrcp.f32 %v2120_v62 }
 0x4f1   : > { %v5140_v32 = vpop.eup %5139  ;;  %2153 = vadd.xlane.f32.xlu0 %v6976_v21  ;;  %4561 = vmatprep.mubr.bf16.mxu0 %v2345_v42  ;;  %5159 = vrcp.f32 %v2118_v35 }
 0x4f2   : > { %v6979_v58 = vpop.eup %5141  ;;  %v6987_v12 = vmul.f32 %v5140_v32, %v6808_v49  ;;  %v2116_v19 = vpop.xlane.xlu1 %2115  ;;  %v2071_v32 = vmul.f32 1.442695, %v1944_v43 }
 0x4f3   : > { %v2146_v26 = vpop.xlane.xlu0 %2145  ;;  %v5144_v11 = vpop.eup %5143  ;;  %5161 = vrcp.f32 %v2116_v19  ;;  %v7863_v19 = vld [vmem:[#allocation39_spill] sm:$0xff] }
 0x4f4   : > { %v5146_v59 = vpop.eup %5145  ;;  %5163 = vpow2.f32 %v2063_v54  ;;  %v2346_v44 = vpack.c.bf16 %v6987_v12, %v6984_v20  ;;  %v2284_v49 = vmul.f32 %v5144_v11, %v6800_v63  ;;  %v7864_v11 = vld [vmem:[#allocation41_spill] sm:$0xff] }
 0x4f5   : > { %v5148_v6 = vpop.eup %5147  ;;  %5165 = vrcp.f32 %v2146_v26  ;;  %2157 = vadd.xlane.f32.xlu0 %v6979_v58  ;;  %v2281_v46 = vmul.f32 %v5146_v59, %v6787_v27  ;;  %v1942_v27 = vsub.f32 %v6769_v1, %v6943_v16  ;;  %v7859_v16 = vld [vmem:[#allocation47_spill] sm:$0xff]  ;;  %v7865_v59 = vld [vmem:[#allocation34_spill] sm:$0xff] }
 0x4f6   : > { %v5150_v61 = vpop.eup %5149  ;;  %5167 = vrcp.f32 %v2150_v17  ;;  %v2148_v41 = vpop.xlane.xlu1 %2147  ;;  %v2283_v2 = vmul.f32 %v5148_v6, %v6773_v57 }
 0x4f7   : > { %v2152_v47 = vpop.xlane.xlu0 %2151  ;;  %5169 = vrcp.f32 %v2148_v41  ;;  %v2282_v48 = vmul.f32 %v5150_v61, %v6816_v10  ;;  %v6997_v29 = vpop.eup %5151  ;;  %v2067_v1 = vmul.f32 1.442695, %v1942_v27  ;;  %v7866_v61 = vld [vmem:[#allocation36_spill] sm:$0xff]  ;;  %v7869_v27 = vld [vmem:[#allocation61_spill] sm:$0xff] }
 0x4f8   : > { %5171 = vrcp.f32 %v2152_v47  ;;  %1059 = vrot.lane.b32.xlu1 %v7853_v5, %s5575_s21  ;;  %v7002_v33 = vpop.eup %5153  ;;  %v2338_v40 = vpack.c.bf16 %v2284_v49, %v2283_v2 }
 0x4f9   : > { %2159 = vadd.xlane.f32.xlu0 %v6997_v29  ;;  %v2337_v63 = vpack.c.bf16 %v2282_v48, %v2281_v46  ;;  %v5156_v35 = vpop.eup %5155  ;;  %5173 = vpow2.f32 %v2035_v51  ;;  %v7867_v48 = vld [vmem:[#allocation32_spill] sm:$0xff] }
 0x4fa   : > { %v2128_v53 = vpop.xlane.xlu1 %2127  ;;  %v5158_v39 = vpop.eup %5157  ;;  %5175 = vpow2.f32 %v2039_v38  ;;  %v2285_v28 = vmul.f32 %v5156_v35, %v6818_v3  ;;  %v7862_v3 = vld [vmem:[#allocation30_spill] sm:$0xff]  ;;  %v7868_v35 = vld [vmem:[#allocation40_spill] sm:$0xff] }
 0x4fb   : > { %v2126_v10 = vpop.xlane.xlu0 %2125  ;;  %4529 = vmatprep.mubr.bf16.mxu1 %v2337_v63  ;;  %v5160_v57 = vpop.eup %5159  ;;  %5177 = vrcp.f32 %v2128_v53  ;;  %v2288_v62 = vmul.f32 %v5158_v39, %v7860_v25  ;;  %v1922_v53 = vsub.f32 %v7869_v27, %v7868_v35  ;;  %v7881_v27 = vld [vmem:[#allocation54_spill] sm:$0xff] }
 0x4fc   : > { %4530 = vmatmul.mubr.bf16.vlgmr.msra.gmra.mrb[48].mxu1 %v2338_v40  ;;  %5179 = vrcp.f32 %v2126_v10  ;;  %v2287_v42 = vmul.f32 %v5160_v57, %v7861_v60  ;;  %v7870_v40 = vld [vmem:[#allocation67_spill] sm:$0xff]  ;;  %v7871_v57 = vld [vmem:[#allocation52_spill] sm:$0xff] }
 0x4fd   : > { %v5162_v5 = vpop.eup %5161  ;;  %4578 = vmatpush3.bf16.msra.mxu1 %v7858_v45  ;;  %2187 = vadd.xlane.f32.xlu0 %v7002_v33  ;;  %v1937_v39 = vsub.f32 %v7870_v40, %v6941_v56  ;;  %v7873_v45 = vld [vmem:[#allocation38_spill] sm:$0xff]  ;;  %v2027_v25 = vmul.f32 1.442695, %v1922_v53  ;;  %v1941_v53 = vsub.f32 %v7881_v27, %v6951_v31 }
 0x4fe   : > { %v7011_v55 = vpop.eup %5163  ;;  %4579 = vmatprep.subr.bf16.mxu1 %v7859_v16  ;;  %v2124_v30 = vpop.xlane.xlu1 %2123  ;;  %v2286_v9 = vmul.f32 %v5162_v5, %v6834_v24  ;;  %v2340_v24 = vpack.c.bf16 %v2288_v62, %v2287_v42  ;;  %v7872_v5 = vld [vmem:[#allocation45_spill] sm:$0xff]  ;;  %v7876_v42 = vld [vmem:[#allocation66_spill] sm:$0xff] }
 0x4ff   : > { %v2122_v36 = vpop.xlane.xlu0 %2121  ;;  %v5166_v17 = vpop.eup %5165  ;;  %5181 = vrcp.f32 %v2124_v30 }
 0x500   : > { %v5168_v37 = vpop.eup %5167  ;;  %5183 = vrcp.f32 %v2122_v36  ;;  %v2339_v18 = vpack.c.bf16 %v2286_v9, %v2285_v28  ;;  %v7022_v26 = vmul.f32 %v5166_v17, %v7863_v19  ;;  %v7875_v36 = vld [vmem:[#allocation43_spill] sm:$0xff]  ;;  %v2057_v17 = vmul.f32 1.442695, %v1937_v39 }
 0x501   : > { %v5170_v54 = vpop.eup %5169  ;;  %4580 = vmatpush3.bf16.msra.mxu1 %v7859_v16  ;;  %2191 = vadd.xlane.f32.xlu0 %v7011_v55  ;;  %5185 = vpow2.f32 %v2067_v1  ;;  %v7028_v6 = vmul.f32 %v5168_v37, %v7865_v59  ;;  %v7874_v16 = vld [vmem:[#allocation42_spill] sm:$0xff] }
 0x502   : > { %v5172_v15 = vpop.eup %5171  ;;  %4581 = vmatprep.subr.bf16.mxu1 %v7862_v3  ;;  %4533 = vmatprep.mubr.bf16.mxu1 %v2339_v18  ;;  %v7025_v14 = vmul.f32 %v5170_v54, %v7864_v11  ;;  %5187 = vpow2.f32 %v2071_v32  ;;  %v1939_v54 = vsub.f32 %v7876_v42, %v6937_v4  ;;  %v7879_v59 = vld [vmem:[#allocation46_spill] sm:$0xff] }
 0x503   : > { %v7031_v51 = vmul.f32 %v5172_v15, %v7866_v61  ;;  %v7033_v49 = vpop.eup %5173  ;;  %v2134_v37 = vpop.xlane.xlu0 %2133  ;;  %5189 = vpow2.f32 %v2027_v25  ;;  %v7877_v15 = vld [vmem:[#allocation49_spill] sm:$0xff]  ;;  %v7880_v61 = vld [vmem:[#allocation64_spill] sm:$0xff] }
 0x504   : > { %4534 = vmatmul.mubr.bf16.gmra.mrb[52].mxu1 %v2340_v24  ;;  %v2347_v41 = vpack.c.bf16 %v7025_v14, %v7022_v26  ;;  %v7037_v47 = vpop.eup %5175  ;;  %v2136_v60 = vpop.xlane.xlu1 %2135  ;;  %5191 = vpow2.f32 %v2057_v17  ;;  %v2061_v19 = vmul.f32 1.442695, %v1939_v54  ;;  %v7886_v25 = vld [vmem:[#allocation48_spill] sm:$0xff] }
 0x505   : > { %4582 = vmatpush3.bf16.msra.mxu1 %v7862_v3  ;;  %2163 = vadd.xlane.f32.xlu0 %v7033_v49  ;;  %v2348_v38 = vpack.c.bf16 %v7031_v51, %v7028_v6  ;;  %v5178_v46 = vpop.eup %5177  ;;  %5193 = vrcp.f32 %v2136_v60  ;;  %v7878_v3 = vld [vmem:[#allocation65_spill] sm:$0xff] }
 0x506   : > { %4583 = vmatprep.subr.bf16.mxu1 %v7867_v48  ;;  %v5180_v2 = vpop.eup %5179  ;;  %v2292_v30 = vmul.f32 %v5178_v46, %v7874_v16  ;;  %v1925_v24 = vsub.f32 %v7878_v3, %v7877_v15  ;;  %v1927_v46 = vsub.f32 %v7880_v61, %v7879_v59  ;;  %v7884_v16 = vld [vmem:[#allocation50_spill] sm:$0xff] }
 0x507   : > { %v2291_v1 = vmul.f32 %v5180_v2, %v7873_v45 }
 0x509   : > { %v5182_v63 = vpop.eup %5181  ;;  %4584 = vmatpush3.bf16.msra.mxu1 %v7867_v48  ;;  %2167 = vadd.xlane.f32.xlu0 %v7037_v47  ;;  %v2342_v56 = vpack.c.bf16 %v2292_v30, %v2291_v1  ;;  %v2033_v48 = vmul.f32 1.442695, %v1925_v24  ;;  %v2065_v1 = vmul.f32 1.442695, %v1941_v53 }
 0x50a   : > { %v5184_v10 = vpop.eup %5183  ;;  %4585 = vmatprep.subr.bf16.mxu1 %v7871_v57  ;;  %v2290_v43 = vmul.f32 %v5182_v63, %v7872_v5  ;;  %v2037_v63 = vmul.f32 1.442695, %v1927_v46 }
 0x50b   : > { %v2289_v28 = vmul.f32 %v5184_v10, %v7875_v36  ;;  %v7055_v9 = vpop.eup %5185  ;;  %v7885_v36 = vld [vmem:[#allocation53_spill] sm:$0xff] }
 0x50c   : > { %v7059_v18 = vpop.eup %5187 }
 0x50d   : > { %4586 = vmatpush3.bf16.msra.mxu1 %v7871_v57  ;;  %2195 = vadd.xlane.f32.xlu0 %v7055_v9  ;;  %v2341_v62 = vpack.c.bf16 %v2290_v43, %v2289_v28  ;;  %v7068_v2 = vpop.eup %5189  ;;  %v7882_v57 = vld [vmem:[#allocation44_spill] sm:$0xff]  ;;  %v7883_v43 = vld [vmem:[#allocation33_spill] sm:$0xff] }
 0x50e   : > { %v7070_v4 = vpop.eup %5191  ;;  %v1943_v45 = vsub.f32 %v7883_v43, %v6946_v50 }
 0x50f   : > { %4537 = vmatprep.mubr.bf16.mxu1 %v2341_v62  ;;  %v5194_v35 = vpop.eup %5193 }
 0x510   : > { %4538 = vmatmul.mubr.bf16.gmra.mrb[56].mxu1 %v2342_v56  ;;  %v2296_v5 = vmul.f32 %v5194_v35, %v7882_v57 }
 0x511   : > { %2199 = vadd.xlane.f32.xlu0 %v7059_v18 }
 0x513   : > { %v2130_v32 = vpop.xlane.xlu0 %2129 }
 0x514   : > { %5195 = vrcp.f32 %v2130_v32 }
 0x515   : > { %5197 = vrcp.f32 %v2134_v37  ;;  %v2132_v11 = vpop.xlane.xlu1 %2131  ;;  %v2069_v37 = vmul.f32 1.442695, %v1943_v45 }
 0x516   : > { %5199 = vrcp.f32 %v2132_v11 }
 0x517   : > { %5201 = vpow2.f32 %v2061_v19 }
 0x518   : > { %5203 = vpow2.f32 %v2033_v48 }
 0x519   : > { %5205 = vpow2.f32 %v2037_v63 }
 0x51a   : > { %5207 = vpow2.f32 %v2065_v1 }
 0x51b   : > { %5209 = vpow2.f32 %v2069_v37 }
 0x51c   : > { %2155 = vadd.xlane.f32.xlu1 %v7068_v2 }
 0x51e   : > { %v5196_v10 = vpop.eup %5195 }
 0x51f   : > { %v5198_v40 = vpop.eup %5197  ;;  %v2293_v30 = vmul.f32 %v5196_v10, %v7884_v16 }
 0x520   : > { %v5200_v39 = vpop.eup %5199  ;;  %2185 = vadd.xlane.f32.xlu1 %v7070_v4  ;;  %v2295_v62 = vmul.f32 %v5198_v40, %v7886_v25 }
 0x521   : > { %v2294_v28 = vmul.f32 %v5200_v39, %v7885_v36  ;;  %v7082_v17 = vpop.eup %5201 }
 0x522   : > { %v2344_v56 = vpack.c.bf16 %v2296_v5, %v2295_v62  ;;  %v7085_v60 = vpop.eup %5203 }
 0x523   : > { %v2343_v31 = vpack.c.bf16 %v2294_v28, %v2293_v30  ;;  %v7088_v50 = vpop.eup %5205 }
 0x524   : > { %2189 = vadd.xlane.f32.xlu1 %v7082_v17  ;;  %v7091_v42 = vpop.eup %5207 }
 0x525   : > { %4541 = vmatprep.mubr.bf16.mxu1 %v2343_v31  ;;  %v7094_v54 = vpop.eup %5209 }
 0x526   : > { %4542 = vmatmul.mubr.bf16.gmra.mrb[60].mxu1 %v2344_v56 }
 0x528   : > { %2161 = vadd.xlane.f32.xlu1 %v7085_v60 }
 0x52c   : > { %2165 = vadd.xlane.f32.xlu1 %v7088_v50 }
 0x530   : > { %2193 = vadd.xlane.f32.xlu1 %v7091_v42 }
 0x533   : > { %v2174_v32 = vpop.xlane.xlu0 %2173 }
 0x534   : > { %2197 = vadd.xlane.f32.xlu1 %v7094_v54 }
 0x537   : > { %v2170_v15 = vpop.xlane.xlu1 %2169 }
 0x538   : > { %v2176_v3 = vpop.xlane.xlu0 %2175  ;;  %5211 = vrcp.f32 %v2170_v15 }
 0x53b   : > { %v1034_v24 = vpop.permute.xlu1 %1033 }
 0x53c   : > { %4557 = vmatprep.subr.bf16.mxu0 %v1034_v24 }
 0x53d   : > { %4558 = vmatpush3.bf16.msra.mxu0 %v1034_v24  ;;  %v2172_v19 = vpop.xlane.xlu0 %2171 }
 0x53e   : > { %5213 = vrcp.f32 %v2172_v19 }
 0x53f   : > { %v1058_v11 = vpop.permute.xlu1 %1057  ;;  %5215 = vrcp.f32 %v2176_v3 }
 0x540   : > { %5217 = vrcp.f32 %v2174_v32 }
 0x541   : > { %v1056_v59 = vpop.permute.xlu0 %1055 }
 0x542   : > { %4587 = vmatprep.subr.bf16.mxu1 %v1056_v59  ;;  %v5212_v46 = vpop.eup %5211 }
 0x543   : > { %v1036_v61 = vpop.permute.xlu1 %1035  ;;  %4588 = vmatpush3.bf16.msra.mxu1 %v1056_v59  ;;  %v2313_v63 = vmul.f32 %v5212_v46, %v6908_v34 }
 0x544   : > { %4559 = vmatprep.subr.bf16.mxu0 %v1036_v61  ;;  %4589 = vmatprep.subr.bf16.mxu1 %v1058_v11 }
 0x545   : > { %4560 = vmatpush3.bf16.msra.mxu0 %v1036_v61 }
 0x547   : > { %4590 = vmatpush3.bf16.msra.mxu1 %v1058_v11 }
 0x548   : > { %v5214_v48 = vpop.eup %5213  ;;  %4562 = vmatmul.mubr.bf16.vlgmr.msra.gmra.mrb[80].mxu0 %v2346_v44 }
 0x549   : > { %4565 = vmatprep.mubr.bf16.mxu0 %v2347_v41  ;;  %v2314_v35 = vmul.f32 %v5214_v48, %v6918_v8  ;;  %v5216_v34 = vpop.eup %5215 }
 0x54a   : > { %v5218_v8 = vpop.eup %5217  ;;  %v2316_v10 = vmul.f32 %v5216_v34, %v6911_v0 }
 0x54b   : > { %v2353_v27 = vpack.c.bf16 %v2314_v35, %v2313_v63 }
 0x54d   : > { %4593 = vmatprep.mubr.bf16.mxu1 %v2353_v27 }
 0x550   : > { %4566 = vmatmul.mubr.bf16.gmra.mrb[84].mxu0 %v2348_v38  ;;  %v2315_v38 = vmul.f32 %v5218_v8, %v6902_v22 }
 0x552   : > { %v2354_v43 = vpack.c.bf16 %v2316_v10, %v2315_v38 }
 0x570   : > { %v7108_v53 = vpop.f32.mrb[64].mxu0 }
 0x571   : > { %v7110_v20 = vpop.f32.mrb[65].mxu0 }
 0x572   : > { %v7112_v12 = vpop.f32.mrb[66].mxu0  ;;  %v2182_v44 = vpop.xlane.xlu0 %2181 }
 0x573   : > { %v7114_v26 = vpop.f32.mrb[67].mxu0 }
 0x574   : > { %v2178_v14 = vpop.xlane.xlu1 %2177 }
 0x576   : > { %v2184_v41 = vpop.xlane.xlu0 %2183 }
 0x577   : > { %5219 = vrcp.f32 %v2184_v41 }
 0x578   : > { %v1060_v6 = vpop.permute.xlu1 %1059  ;;  %v7117_v51 = vpop.f32.mrb[68].mxu0  ;;  %5221 = vrcp.f32 %v2178_v14 }
 0x579   : > { %v7120_v40 = vpop.f32.mrb[69].mxu0  ;;  %4591 = vmatprep.subr.bf16.mxu1 %v1060_v6  ;;  %5223 = vrcp.f32 %v2182_v44 }
 0x57a   : > { %v7122_v39 = vpop.f32.mrb[70].mxu0  ;;  %4592 = vmatpush3.bf16.msra.mxu1 %v1060_v6  ;;  %v2180_v57 = vpop.xlane.xlu0 %2179 }
 0x57b   : > { %5225 = vrcp.f32 %v2180_v57  ;;  %v7124_v5 = vpop.f32.mrb[71].mxu0 }
 0x57d   : > { %4594 = vmatmul.mubr.bf16.vlgmr.msra.gmra.mrb[64].mxu1 %v2354_v43 }
 0x57e   : > { %v2154_v11 = vpop.xlane.xlu0 %2153 }
 0x580   : > { %v7126_v0 = vpop.f32.mrb[72].mxu0 }
 0x581   : > { %v7128_v45 = vpop.f32.mrb[73].mxu0  ;;  %v5220_v1 = vpop.eup %5219 }
 0x582   : > { %v7130_v22 = vpop.f32.mrb[74].mxu0  ;;  %v5222_v16 = vpop.eup %5221  ;;  %v2320_v25 = vmul.f32 %v5220_v1, %v6966_v13 }
 0x583   : > { %v7132_v30 = vpop.f32.mrb[75].mxu0  ;;  %v5224_v36 = vpop.eup %5223  ;;  %v2317_v62 = vmul.f32 %v5222_v16, %v6960_v23 }
 0x584   : > { %v2319_v56 = vmul.f32 %v5224_v36, %v6957_v52  ;;  %v2158_v13 = vpop.xlane.xlu0 %2157 }
 0x585   : > { %v5226_v28 = vpop.eup %5225 }
 0x586   : > { %v2318_v31 = vmul.f32 %v5226_v28, %v6969_v7  ;;  %v2356_v15 = vpack.c.bf16 %v2320_v25, %v2319_v56 }
 0x588   : > { %v2355_v37 = vpack.c.bf16 %v2318_v31, %v2317_v62  ;;  %v2160_v59 = vpop.xlane.xlu0 %2159 }
 0x589   : > { %v7138_v32 = vpop.f32.mrb[76].mxu0  ;;  %5227 = vrcp.f32 %v2160_v59 }
 0x58a   : > { %v7140_v3 = vpop.f32.mrb[77].mxu0  ;;  %4597 = vmatprep.mubr.bf16.mxu1 %v2355_v37  ;;  %5229 = vrcp.f32 %v2154_v11 }
 0x58b   : > { %v7142_v24 = vpop.f32.mrb[78].mxu0  ;;  %4598 = vmatmul.mubr.bf16.gmra.mrb[68].mxu1 %v2356_v15  ;;  %5231 = vrcp.f32 %v2158_v13 }
 0x58c   : > { %v7144_v19 = vpop.f32.mrb[79].mxu0  ;;  %v2188_v23 = vpop.xlane.xlu0 %2187 }
 0x590   : > { %v2192_v61 = vpop.xlane.xlu0 %2191 }
 0x593   : > { %v5228_v48 = vpop.eup %5227 }
 0x594   : > { %v2164_v7 = vpop.xlane.xlu0 %2163  ;;  %v5230_v27 = vpop.eup %5229  ;;  %v2308_v14 = vmul.f32 %v5228_v48, %v6997_v29 }
 0x595   : > { %v5232_v44 = vpop.eup %5231  ;;  %v2305_v41 = vmul.f32 %v5230_v27, %v6976_v21 }
 0x596   : > { %v2307_v38 = vmul.f32 %v5232_v44, %v6979_v58 }
 0x598   : > { %v2168_v63 = vpop.xlane.xlu0 %2167  ;;  %v2350_v16 = vpack.c.bf16 %v2308_v14, %v2307_v38 }
 0x59c   : > { %v2196_v57 = vpop.xlane.xlu0 %2195 }
 0x5a0   : > { %v2200_v62 = vpop.xlane.xlu0 %2199 }
 0x5a9   : > { %v2156_v52 = vpop.xlane.xlu1 %2155 }
 0x5aa   : > { %5233 = vrcp.f32 %v2156_v52 }
 0x5ab   : > { %5235 = vrcp.f32 %v2188_v23 }
 0x5ad   : > { %v2186_v46 = vpop.xlane.xlu1 %2185 }
 0x5ae   : > { %5237 = vrcp.f32 %v2186_v46 }
 0x5af   : > { %5239 = vrcp.f32 %v2192_v61 }
 0x5b1   : > { %v2190_v35 = vpop.xlane.xlu1 %2189 }
 0x5b2   : > { %5241 = vrcp.f32 %v2190_v35 }
 0x5b3   : > { %5243 = vrcp.f32 %v2164_v7 }
 0x5b4   : > { %v5234_v34 = vpop.eup %5233 }
 0x5b5   : > { %v2162_v8 = vpop.xlane.xlu1 %2161  ;;  %v2306_v10 = vmul.f32 %v5234_v34, %v7068_v2  ;;  %v5236_v6 = vpop.eup %5235 }
 0x5b6   : > { %5245 = vrcp.f32 %v2162_v8  ;;  %v2322_v29 = vmul.f32 %v5236_v6, %v7002_v33 }
 0x5b7   : > { %v2349_v43 = vpack.c.bf16 %v2306_v10, %v2305_v41  ;;  %5247 = vrcp.f32 %v2168_v63  ;;  %v7887_v10 = vmov 0  }
 0x5b8   : > { %v5238_v1 = vpop.eup %5237 }
 0x5b9   : > { %v2166_v36 = vpop.xlane.xlu1 %2165  ;;  %4569 = vmatprep.mubr.bf16.mxu0 %v2349_v43  ;;  %v2321_v28 = vmul.f32 %v5238_v1, %v7070_v4  ;;  %v5240_v25 = vpop.eup %5239 }
 0x5ba   : > { %5249 = vrcp.f32 %v2166_v36  ;;  %4570 = vmatmul.mubr.bf16.gmra.mrb[88].mxu0 %v2350_v16  ;;  %v2324_v56 = vmul.f32 %v5240_v25, %v7011_v55 }
 0x5bb   : > { %v2357_v21 = vpack.c.bf16 %v2322_v29, %v2321_v28  ;;  %5251 = vrcp.f32 %v2196_v57 }
 0x5bc   : > { %v5242_v2 = vpop.eup %5241 }
 0x5bd   : > { %v2194_v31 = vpop.xlane.xlu1 %2193  ;;  %4601 = vmatprep.mubr.bf16.mxu1 %v2357_v21  ;;  %v2323_v58 = vmul.f32 %v5242_v2, %v7082_v17  ;;  %v5244_v37 = vpop.eup %5243 }
 0x5be   : > { %5253 = vrcp.f32 %v2194_v31  ;;  %v2310_v13 = vmul.f32 %v5244_v37, %v7033_v49 }
 0x5bf   : > { %v2358_v15 = vpack.c.bf16 %v2324_v56, %v2323_v58  ;;  %5255 = vrcp.f32 %v2200_v62 }
 0x5c0   : > { %v5246_v11 = vpop.eup %5245 }
 0x5c1   : > { %v2198_v4 = vpop.xlane.xlu1 %2197  ;;  %4602 = vmatmul.mubr.bf16.gmra.mrb[72].mxu1 %v2358_v15  ;;  %v2309_v33 = vmul.f32 %v5246_v11, %v7085_v60  ;;  %v5248_v59 = vpop.eup %5247 }
 0x5c2   : > { %5257 = vrcp.f32 %v2198_v4  ;;  %v2312_v55 = vmul.f32 %v5248_v59, %v7037_v47 }
 0x5c3   : > { %v2351_v23 = vpack.c.bf16 %v2310_v13, %v2309_v33 }
 0x5c4   : > { %v5250_v61 = vpop.eup %5249 }
 0x5c5   : > { %4573 = vmatprep.mubr.bf16.mxu0 %v2351_v23  ;;  %v2311_v17 = vmul.f32 %v5250_v61, %v7088_v50  ;;  %v5252_v52 = vpop.eup %5251 }
 0x5c6   : > { %v2326_v63 = vmul.f32 %v5252_v52, %v7055_v9  ;;  %v4955_v52 = vld [vmem:[#allocation10] sm:$0xff]  }
 0x5c7   : > { %v2352_v7 = vpack.c.bf16 %v2312_v55, %v2311_v17  ;;  %4609 = vmatprep.subr.bf16.mxu0 %v4955_v52 }
 0x5c8   : > { %v5254_v46 = vpop.eup %5253  ;;  %4610 = vmatpush3.bf16.msra.mxu0 %v4955_v52  ;;  %v4968_v52 = vld [vmem:[#allocation11 + $0x14] ss:$8 sps:$4 sm:$0xff]  }
 0x5c9   : > { %4574 = vmatmul.mubr.bf16.gmra.mrb[92].mxu0 %v2352_v7  ;;  %v2325_v48 = vmul.f32 %v5254_v46, %v7091_v42  ;;  %v5256_v60 = vpop.eup %5255  ;;  %v4956_v7 = vld [vmem:[#allocation10 + $0x8] sm:$0xff]   ;;  %v4957_v46 = vld [vmem:[#allocation10 + $0x10] sm:$0xff]  }
 0x5ca   : > { %v2328_v44 = vmul.f32 %v5256_v60, %v7059_v18  ;;  %4611 = vmatprep.subr.bf16.mxu0 %v4956_v7  ;;  %v4960_v60 = vld [vmem:[#allocation10 + $0x28] sm:$0xff]  }
 0x5cb   : > { %v2359_v35 = vpack.c.bf16 %v2326_v63, %v2325_v48  ;;  %v4958_v48 = vld [vmem:[#allocation10 + $0x18] sm:$0xff]   ;;  %v4959_v63 = vld [vmem:[#allocation10 + $0x20] sm:$0xff]  }
 0x5cc   : > { %v5258_v49 = vpop.eup %5257  ;;  %4612 = vmatpush3.bf16.msra.mxu0 %v4956_v7 }
 0x5cd   : > { %4605 = vmatprep.mubr.bf16.mxu1 %v2359_v35  ;;  %v2327_v27 = vmul.f32 %v5258_v49, %v7094_v54  ;;  %4613 = vmatprep.subr.bf16.mxu0 %v4957_v46  ;;  %v4961_v35 = vld [vmem:[#allocation10 + $0x30] sm:$0xff]   ;;  %v4962_v49 = vld [vmem:[#allocation10 + $0x38] sm:$0xff]  }
 0x5cf   : > { %v4531_v34 = vpop.f32.mrb[48].mxu1  ;;  %v2360_v50 = vpack.c.bf16 %v2328_v44, %v2327_v27 }
 0x5d0   : > { %v2492_v14 = vpop.f32.mrb[49].mxu1  ;;  %4614 = vmatpush3.bf16.msra.mxu0 %v4957_v46  ;;  %v4969_v46 = vld [vmem:[#allocation11 + $0x20] ss:$8 sps:$4 sm:$0xff]  }
 0x5d1   : > { %v4532_v47 = vpop.f32.mrb[50].mxu1  ;;  %4606 = vmatmul.mubr.bf16.gmra.mrb[76].mxu1 %v2360_v50  ;;  %4615 = vmatprep.subr.bf16.mxu0 %v4958_v48 }
 0x5d2   : > { %v4803_v8 = vpack.i.bf16 %v4532_v47, %v4531_v34  ;;  %v2495_v41 = vpop.f32.mrb[51].mxu1  ;;  %3373 = vmatprep.mubr.bf16.mxu1 %v7887_v10 }
 0x5d3   : > { %v4813_v42 = vpack.i.bf16 %v2495_v41, %v2492_v14 }
 0x5d4   : > { %4804 = vrot.lane.b32.xlu0 %v4803_v8, %s5575_s21  ;;  %4616 = vmatpush3.bf16.msra.mxu0 %v4958_v48  ;;  %v4974_v48 = vld [vmem:[#allocation11 + $0x34] ss:$8 sps:$4 sm:$0xff]  }
 0x5d5   : > { %4617 = vmatprep.subr.bf16.mxu0 %v4959_v63 }
 0x5d7   : > { %v7164_v9 = vpop.f32.mrb[52].mxu1 }
 0x5d8   : > { %v7166_v6 = vpop.f32.mrb[53].mxu1  ;;  %4618 = vmatpush3.bf16.msra.mxu0 %v4959_v63  ;;  %v4972_v63 = vld [vmem:[#allocation11 + $0x30] ss:$8 sps:$4 sm:$0xff]  }
 0x5d9   : > { %v7168_v38 = vpop.f32.mrb[54].mxu1  ;;  %4619 = vmatprep.subr.bf16.mxu0 %v4960_v60 }
 0x5da   : > { %v4838_v18 = vpack.i.bf16 %v7168_v38, %v7164_v9  ;;  %v2511_v54 = vpop.f32.mrb[55].mxu1 }
 0x5db   : > { %v4833_v57 = vpack.i.bf16 %v2511_v54, %v7166_v6 }
 0x5dc   : > { %4620 = vmatpush3.bf16.msra.mxu0 %v4960_v60  ;;  %v4977_v60 = vld [vmem:[#allocation11 + $0x44] ss:$8 sps:$4 sm:$0xff]  }
 0x5dd   : > { %4621 = vmatprep.subr.bf16.mxu0 %v4961_v35 }
 0x5e0   : > { %4622 = vmatpush3.bf16.msra.mxu0 %v4961_v35  ;;  %v4975_v35 = vld [vmem:[#allocation11 + $0x40] ss:$8 sps:$4 sm:$0xff]  }
 0x5e1   : > { %4623 = vmatprep.subr.bf16.mxu0 %v4962_v49 }
 0x5e3   : > { %v7173_v43 = vpop.f32.mrb[56].mxu1 }
 0x5e4   : > { %v7175_v1 = vpop.f32.mrb[57].mxu1  ;;  %4624 = vmatpush3.bf16.msra.mxu0 %v4962_v49 }
 0x5e5   : > { %v7177_v16 = vpop.f32.mrb[58].mxu1 }
 0x5e6   : > { %v4868_v36 = vpack.i.bf16 %v7177_v16, %v7173_v43  ;;  %v7181_v28 = vpop.f32.mrb[59].mxu1 }
 0x5e7   : > { %v4863_v29 = vpack.i.bf16 %v7181_v28, %v7175_v1 }
 0x5f9   : > { %v7185_v25 = vpop.f32.mrb[60].mxu1 }
 0x5fa   : > { %v7187_v21 = vpop.f32.mrb[61].mxu1 }
 0x5fb   : > { %v7189_v2 = vpop.f32.mrb[62].mxu1 }
 0x5fc   : > { %v4898_v62 = vpack.i.bf16 %v7189_v2, %v7185_v25  ;;  %v7193_v31 = vpop.f32.mrb[63].mxu1 }
 0x5fd   : > { %v4893_v58 = vpack.i.bf16 %v7193_v31, %v7187_v21  ;;  %v4971_v31 = vld [vmem:[#allocation11 + $0x24] ss:$8 sps:$4 sm:$0xff]  }
 0x61b   : > { %v4563_v56 = vpop.f32.mrb[80].mxu0 }
 0x61c   : > { %v2589_v37 = vpop.f32.mrb[81].mxu0 }
 0x61d   : > { %v4564_v15 = vpop.f32.mrb[82].mxu0 }
 0x61e   : > { %v4808_v11 = vpack.i.bf16 %v4564_v15, %v4563_v56  ;;  %v2592_v4 = vpop.f32.mrb[83].mxu0 }
 0x61f   : > { %v4818_v33 = vpack.i.bf16 %v2592_v4, %v2589_v37 }
 0x620   : > { %4809 = vrot.lane.b32.xlu1 %v4808_v11, %s5574_s20 }
 0x623   : > { %v4567_v13 = vpop.f32.mrb[84].mxu0 }
 0x624   : > { %4814 = vrot.lane.b32.xlu1 %v4813_v42, %s5575_s21  ;;  %v2605_v59 = vpop.f32.mrb[85].mxu0 }
 0x625   : > { %v4568_v23 = vpop.f32.mrb[86].mxu0 }
 0x626   : > { %v4848_v61 = vpack.i.bf16 %v4568_v23, %v4567_v13  ;;  %v2608_v17 = vpop.f32.mrb[87].mxu0 }
 0x627   : > { %v4843_v55 = vpack.i.bf16 %v2608_v17, %v2605_v59  ;;  %v4965_v17 = vld [vmem:[#allocation11 + $0x4] ss:$8 sps:$4 sm:$0xff]  }
 0x628   : > { %4819 = vrot.lane.b32.xlu1 %v4818_v33, %s5574_s20  ;;  %3341 = vmatprep.subr.bf16.mxu1 %v4965_v17 }
 0x650   : > { %v4595_v27 = vpop.f32.mrb[64].mxu1 }
 0x651   : > { %v2686_v44 = vpop.f32.mrb[65].mxu1 }
 0x652   : > { %v4596_v34 = vpop.f32.mrb[66].mxu1 }
 0x653   : > { %v4828_v50 = vpack.i.bf16 %v4596_v34, %v4595_v27  ;;  %v2689_v14 = vpop.f32.mrb[67].mxu1 }
 0x654   : > { %v4823_v47 = vpack.i.bf16 %v2689_v14, %v2686_v44  ;;  %v4805_v44 = vpop.permute.xlu0 %4804 }
 0x655   : > { %4829 = vrot.lane.b32.xlu1 %v4828_v50, %s5573_s17  ;;  %v4807_v34 = vunpack.i.h.bf16 %v4805_v44  ;;  %v4806_v50 = vunpack.i.l.bf16 %v4805_v44 }
 0x656   : > { %4824 = vrot.lane.b32.xlu0 %v4823_v47, %s5573_s17 }
 0x659   : > { %4839 = vrot.lane.b32.xlu1 %v4838_v18, %s5575_s21 }
 0x65a   : > { %4834 = vrot.lane.b32.xlu0 %v4833_v57, %s5575_s21 }
 0x65d   : > { %4849 = vrot.lane.b32.xlu1 %v4848_v61, %s5574_s20  ;;  %v4963_v61 = vld [vmem:[#allocation11] ss:$8 sps:$4 sm:$0xff]  }
 0x65e   : > { %4844 = vrot.lane.b32.xlu0 %v4843_v55, %s5574_s20  ;;  %v4599_v8 = vpop.f32.mrb[68].mxu1  ;;  %3342 = vmatpush1.bf16.msra.mxu1 %v4963_v61 }
 0x65f   : > { %v2702_v41 = vpop.f32.mrb[69].mxu1  ;;  %3343 = vmatprep.subr.bf16.mxu1 %v4968_v52 }
 0x660   : > { %v4600_v42 = vpop.f32.mrb[70].mxu1 }
 0x661   : > { %v4858_v9 = vpack.i.bf16 %v4600_v42, %v4599_v8  ;;  %v2705_v6 = vpop.f32.mrb[71].mxu1 }
 0x662   : > { %v4853_v38 = vpack.i.bf16 %v2705_v6, %v2702_v41 }
 0x663   : > { %4859 = vrot.lane.b32.xlu1 %v4858_v9, %s5573_s17 }
 0x664   : > { %4854 = vrot.lane.b32.xlu0 %v4853_v38, %s5573_s17  ;;  %v2944_v38 = vsel %vm1108_vm0, %v7112_v12, %v4807_v34 }
 0x667   : > { %4869 = vrot.lane.b32.xlu1 %v4868_v36, %s5575_s21 }
 0x668   : > { %4864 = vrot.lane.b32.xlu0 %v4863_v29, %s5575_s21 }
 0x68d   : > { %v4571_v18 = vpop.f32.mrb[88].mxu0 }
 0x68e   : > { %v2621_v54 = vpop.f32.mrb[89].mxu0 }
 0x68f   : > { %v4572_v57 = vpop.f32.mrb[90].mxu0 }
 0x690   : > { %v4878_v56 = vpack.i.bf16 %v4572_v57, %v4571_v18  ;;  %v2624_v37 = vpop.f32.mrb[91].mxu0  ;;  %v2943_v18 = vsel %vm1108_vm0, %v7108_v53, %v4806_v50 }
 0x691   : > { %v4873_v15 = vpack.i.bf16 %v2624_v37, %v2621_v54 }
 0x692   : > { %4879 = vrot.lane.b32.xlu1 %v4878_v56, %s5574_s20  ;;  %v4810_v49 = vpop.permute.xlu1 %4809 }
 0x693   : > { %4874 = vrot.lane.b32.xlu0 %v4873_v15, %s5574_s20  ;;  %v4812_v47 = vunpack.i.h.bf16 %v4810_v49  ;;  %v4811_v8 = vunpack.i.l.bf16 %v4810_v49 }
 0x694   : > { %v4603_v11 = vpop.f32.mrb[72].mxu1 }
 0x695   : > { %v2718_v4 = vpop.f32.mrb[73].mxu1  ;;  %v2960_v57 = vsel %vm2957_vm1, %v2943_v18, %v4811_v8  ;;  %v2961_v56 = vsel %vm2957_vm1, %v2944_v38, %v4812_v47 }
 0x696   : > { %v4604_v33 = vpop.f32.mrb[74].mxu1  ;;  %v4815_v27 = vpop.permute.xlu1 %4814 }
 0x697   : > { %v4888_v43 = vpack.i.bf16 %v4604_v33, %v4603_v11  ;;  %v2721_v16 = vpop.f32.mrb[75].mxu1  ;;  %v4817_v41 = vunpack.i.h.bf16 %v4815_v27  ;;  %v4816_v42 = vunpack.i.l.bf16 %v4815_v27 }
 0x698   : > { %v4883_v36 = vpack.i.bf16 %v2721_v16, %v2718_v4 }
 0x699   : > { %4889 = vrot.lane.b32.xlu1 %v4888_v43, %s5573_s17  ;;  %v2942_v4 = vsel %vm1108_vm0, %v7114_v26, %v4817_v41  ;;  %v2941_v33 = vsel %vm1108_vm0, %v7110_v20, %v4816_v42 }
 0x69a   : > { %4884 = vrot.lane.b32.xlu0 %v4883_v36, %s5573_s17  ;;  %v4820_v14 = vpop.permute.xlu1 %4819 }
 0x69b   : > { %v4822_v9 = vunpack.i.h.bf16 %v4820_v14  ;;  %v4821_v6 = vunpack.i.l.bf16 %v4820_v14 }
 0x69c   : > { %v4575_v1 = vpop.f32.mrb[92].mxu0 }
 0x69d   : > { %4899 = vrot.lane.b32.xlu1 %v4898_v62, %s5575_s21  ;;  %v2637_v28 = vpop.f32.mrb[93].mxu0  ;;  %v4966_v62 = vld [vmem:[#allocation11 + $0x10] ss:$8 sps:$4 sm:$0xff]   ;;  %v2958_v16 = vsel %vm2957_vm1, %v2941_v33, %v4821_v6  ;;  %v2959_v53 = vsel %vm2957_vm1, %v2942_v4, %v4822_v9 }
 0x69e   : > { %4894 = vrot.lane.b32.xlu0 %v4893_v58, %s5575_s21  ;;  %v4576_v29 = vpop.f32.mrb[94].mxu0  ;;  %3344 = vmatpush1.bf16.msra.mxu1 %v4966_v62 }
 0x69f   : > { %v4908_v13 = vpack.i.bf16 %v4576_v29, %v4575_v1  ;;  %v2640_v59 = vpop.f32.mrb[95].mxu0  ;;  %3345 = vmatprep.subr.bf16.mxu1 %v4971_v31 }
 0x6a0   : > { %v4903_v23 = vpack.i.bf16 %v2640_v59, %v2637_v28 }
 0x6a1   : > { %4909 = vrot.lane.b32.xlu1 %v4908_v13, %s5574_s20 }
 0x6a2   : > { %4904 = vrot.lane.b32.xlu0 %v4903_v23, %s5574_s20  ;;  %3346 = vmatpush1.bf16.msra.mxu1 %v4969_v46  ;;  %s7520_s20 = scalar_lea.vmem [#allocation14], %s3978_s23  ;;  %s4096_s23 = sshll.u32 %s5645_s11, 11 }
 0x6a3   : > { %3347 = vmatprep.subr.bf16.mxu1 %v4974_v48  ;;  %s3824_s21 = sshll.u32 %s7520_s20, 4  ;;  %s7597_s0 = scalar_lea.hbm %s7653_s8, %s4096_s23  ;;  %s7599_s21 = int_to_ptr.vmem [resolvable:$true] %s3824_s21 }
 0x6a4   : > { %v4607_v55 = vpop.f32.mrb[76].mxu1  ;;  %s3810_s11 = scalar_lea.sflag [#allocation4], %s5891_s5  ;;  %s5475_s24 = scalar_lea.vmem %s7599_s21, 2048 }
 0x6a5   : > { %v2734_v25 = vpop.f32.mrb[77].mxu1  ;;  %p5476_p12 = scmp.ne.s32.totalorder %s7599_s21, %s5475_s24  ;;  %p5482_p0 = scmp.lt.s32.totalorder %s7599_s21, %s5480_s18 }
 0x6a6   : > { %v4608_v2 = vpop.f32.mrb[78].mxu1  ;;  %3348 = vmatpush1.bf16.msra.mxu1 %v4972_v63  ;;  %p5483_p4 = scmp.lt.s32.totalorder %s5481_s10, %s5475_s24 }
 0x6a7   : > { %v4918_v7 = vpack.i.bf16 %v4608_v2, %v4607_v55  ;;  %v2737_v21 = vpop.f32.mrb[79].mxu1  ;;  %3349 = vmatprep.subr.bf16.mxu1 %v4977_v60  ;;  %p5477_p5 = pnand %p5476_p12, %p7891_p13 }
 0x6a8   : > { %v4913_v58 = vpack.i.bf16 %v2737_v21, %v2734_v25  ;;  %p5484_p3 = por %p5483_p4, %p5482_p0 }
 0x6a9   : > { %4919 = vrot.lane.b32.xlu1 %v4918_v7, %s5573_s17  ;;  %p5478_p8 = pneg %p5477_p5 }
 0x6aa   : > { %4914 = vrot.lane.b32.xlu0 %v4913_v58, %s5573_s17  ;;  %3350 = vmatpush1.bf16.msra.mxu1 %v4975_v35 }
 0x6ab   : > { %p5485_p2 = pnand %p5484_p3, %p5478_p8 }
 0x6c7   : > { %v4830_v54 = vpop.permute.xlu1 %4829 }
 0x6c8   : > { %v4832_v37 = vunpack.i.h.bf16 %v4830_v54  ;;  %v4831_v15 = vunpack.i.l.bf16 %v4830_v54  ;;  %v4825_v11 = vpop.permute.xlu0 %4824 }
 0x6c9   : > { %v4827_v43 = vunpack.i.h.bf16 %v4825_v11  ;;  %v4826_v12 = vunpack.i.l.bf16 %v4825_v11 }
 0x6ca   : > { %v2977_v36 = vsel %vm2974_vm2, %v2960_v57, %v4831_v15  ;;  %v2978_v1 = vsel %vm2974_vm2, %v2961_v56, %v4832_v37 }
 0x6cb   : > { %v2992_v28 = vpack.c.bf16 %v2978_v1, %v2977_v36  ;;  %v4840_v29 = vpop.permute.xlu1 %4839  ;;  %v2975_v13 = vsel %vm2974_vm2, %v2958_v16, %v4826_v12  ;;  %v2976_v59 = vsel %vm2974_vm2, %v2959_v53, %v4827_v43 }
 0x6cc   : > { %v4835_v26 = vpop.permute.xlu0 %4834  ;;  %v2991_v23 = vpack.c.bf16 %v2976_v59, %v2975_v13  ;;  %v4842_v61 = vunpack.i.h.bf16 %v4840_v29  ;;  %v4841_v17 = vunpack.i.l.bf16 %v4840_v29 }
 0x6cd   : > { %v4837_v52 = vunpack.i.h.bf16 %v4835_v26  ;;  %v4836_v25 = vunpack.i.l.bf16 %v4835_v26 }
 0x6ce   : > { %4625 = vmatprep.mubr.bf16.mxu0 %v2991_v23  ;;  %v2948_v31 = vsel %vm1108_vm0, %v7122_v39, %v4842_v61  ;;  %v2947_v58 = vsel %vm1108_vm0, %v7117_v51, %v4841_v17 }
 0x6cf   : > { %4626 = vmatmul.mubr.bf16.vlgmr.msra.gmra.mrb[96].mxu0 %v2992_v28  ;;  %v4850_v20 = vpop.permute.xlu1 %4849  ;;  %v2946_v48 = vsel %vm1108_vm0, %v7124_v5, %v4837_v52  ;;  %v2945_v63 = vsel %vm1108_vm0, %v7120_v40, %v4836_v25 }
 0x6d0   : > { %v4845_v55 = vpop.permute.xlu0 %4844  ;;  %v4852_v2 = vunpack.i.h.bf16 %v4850_v20  ;;  %v4851_v62 = vunpack.i.l.bf16 %v4850_v20 }
 0x6d1   : > { %v4847_v7 = vunpack.i.h.bf16 %v4845_v55  ;;  %v4846_v21 = vunpack.i.l.bf16 %v4845_v55 }
 0x6d2   : > { %v2964_v27 = vsel %vm2957_vm1, %v2947_v58, %v4851_v62  ;;  %v2965_v44 = vsel %vm2957_vm1, %v2948_v31, %v4852_v2 }
 0x6d3   : > { %v2962_v39 = vsel %vm2957_vm1, %v2945_v63, %v4846_v21  ;;  %v2963_v51 = vsel %vm2957_vm1, %v2946_v48, %v4847_v7 }
 0x6d5   : > { %v4860_v46 = vpop.permute.xlu1 %4859 }
 0x6d6   : > { %v4862_v60 = vunpack.i.h.bf16 %v4860_v46  ;;  %v4861_v35 = vunpack.i.l.bf16 %v4860_v46  ;;  %v4855_v49 = vpop.permute.xlu0 %4854 }
 0x6d7   : > { %v4857_v34 = vunpack.i.h.bf16 %v4855_v49  ;;  %v4856_v50 = vunpack.i.l.bf16 %v4855_v49 }
 0x6d8   : > { %v2981_v14 = vsel %vm2974_vm2, %v2964_v27, %v4861_v35  ;;  %v2982_v5 = vsel %vm2974_vm2, %v2965_v44, %v4862_v60 }
 0x6d9   : > { %v2979_v47 = vsel %vm2974_vm2, %v2962_v39, %v4856_v50  ;;  %v2980_v40 = vsel %vm2974_vm2, %v2963_v51, %v4857_v34  ;;  %v2994_v8 = vpack.c.bf16 %v2982_v5, %v2981_v14  ;;  %v4870_v42 = vpop.permute.xlu1 %4869 }
 0x6da   : > { %v2993_v41 = vpack.c.bf16 %v2980_v40, %v2979_v47  ;;  %v4865_v9 = vpop.permute.xlu0 %4864  ;;  %v4872_v38 = vunpack.i.h.bf16 %v4870_v42  ;;  %v4871_v18 = vunpack.i.l.bf16 %v4870_v42 }
 0x6db   : > { %v4867_v57 = vunpack.i.h.bf16 %v4865_v9  ;;  %v4866_v56 = vunpack.i.l.bf16 %v4865_v9  ;;  %v4980_v9 = vld [vmem:[#allocation11 + $0x54] ss:$8 sps:$4 sm:$0xff]  }
 0x6dc   : > { %4629 = vmatprep.mubr.bf16.mxu0 %v2993_v41  ;;  %v2952_v33 = vsel %vm1108_vm0, %v7130_v22, %v4872_v38  ;;  %v2951_v43 = vsel %vm1108_vm0, %v7126_v0, %v4871_v18  ;;  %3351 = vmatprep.subr.bf16.mxu1 %v4980_v9  ;;  %v4983_v38 = vld [vmem:[#allocation11 + $0x64] ss:$8 sps:$4 sm:$0xff]   ;;  %v4981_v18 = vld [vmem:[#allocation11 + $0x60] ss:$8 sps:$4 sm:$0xff]  }
 0x6dd   : > { %4630 = vmatmul.mubr.bf16.gmra.mrb[100].mxu0 %v2994_v8  ;;  %v2950_v16 = vsel %vm1108_vm0, %v7132_v30, %v4867_v57  ;;  %v2949_v53 = vsel %vm1108_vm0, %v7128_v45, %v4866_v56  ;;  %v4984_v57 = vld [vmem:[#allocation11 + $0x70] ss:$8 sps:$4 sm:$0xff]   ;;  %v4987_v56 = vld [vmem:[#allocation13 + $0x40] sm:$0xff]  }
 0x6de   : > { %4257 = vmatprep.subr.bf16.mxu0 %v4987_v56  ;;  %v5266_v9 = vld [vmem:[%s5897_s14 + $0x30] sm:$0xff] }
 0x704   : > { %v4880_v6 = vpop.permute.xlu1 %4879 }
 0x705   : > { %v4875_v54 = vpop.permute.xlu0 %4874  ;;  %v4882_v37 = vunpack.i.h.bf16 %v4880_v6  ;;  %v4881_v15 = vunpack.i.l.bf16 %v4880_v6  ;;  %v4978_v6 = vld [vmem:[#allocation11 + $0x50] ss:$8 sps:$4 sm:$0xff]  }
 0x706   : > { %v4877_v11 = vunpack.i.h.bf16 %v4875_v54  ;;  %v4876_v4 = vunpack.i.l.bf16 %v4875_v54  ;;  %3352 = vmatpush1.bf16.msra.mxu1 %v4978_v6  ;;  %v4986_v54 = vld [vmem:[#allocation11 + $0x74] ss:$8 sps:$4 sm:$0xff]  }
 0x707   : > { %v2969_v29 = vsel %vm2957_vm1, %v2952_v33, %v4882_v37  ;;  %v2968_v13 = vsel %vm2957_vm1, %v2951_v43, %v4881_v15  ;;  %3353 = vmatprep.subr.bf16.mxu1 %v4983_v38  ;;  %v4988_v37 = vld [vmem:[#allocation13] sm:$0xff]   ;;  %v4989_v15 = vld [vmem:[#allocation13 + $0x48] sm:$0xff]   ;;  %v7296_v33 = vld [vmem:[#allocation13 + $0x10] sm:$0xff]  }
 0x708   : > { %v2966_v22 = vsel %vm2957_vm1, %v2949_v53, %v4876_v4  ;;  %v2967_v0 = vsel %vm2957_vm1, %v2950_v16, %v4877_v11  ;;  %4258 = vmatpush3.bf16.msra.mxu0 %v4988_v37  ;;  %v4990_v11 = vld [vmem:[#allocation13 + $0x8] sm:$0xff]   ;;  %v4991_v4 = vld [vmem:[#allocation13 + $0x50] sm:$0xff]   ;;  %v7298_v43 = vld [vmem:[#allocation13 + $0x58] sm:$0xff]  }
 0x709   : > { %4259 = vmatprep.subr.bf16.mxu0 %v4989_v15  ;;  %v7304_v16 = vld [vmem:[#allocation13 + $0x60] sm:$0xff]  }
 0x70a   : > { %3354 = vmatpush1.bf16.msra.mxu1 %v4981_v18  ;;  %v7307_v53 = vld [vmem:[#allocation13 + $0x20] sm:$0xff]  }
 0x70b   : > { %v4890_v12 = vpop.permute.xlu1 %4889  ;;  %3355 = vmatprep.subr.bf16.mxu1 %v4986_v54 }
 0x70c   : > { %v4892_v36 = vunpack.i.h.bf16 %v4890_v12  ;;  %v4891_v1 = vunpack.i.l.bf16 %v4890_v12  ;;  %v4885_v28 = vpop.permute.xlu0 %4884  ;;  %4260 = vmatpush3.bf16.msra.mxu0 %v4990_v11  ;;  %v7301_v12 = vld [vmem:[#allocation13 + $0x18] sm:$0xff]  }
 0x70d   : > { %v4887_v59 = vunpack.i.h.bf16 %v4885_v28  ;;  %v4886_v26 = vunpack.i.l.bf16 %v4885_v28  ;;  %4261 = vmatprep.subr.bf16.mxu0 %v4991_v4 }
 0x70e   : > { %v2985_v23 = vsel %vm2974_vm2, %v2968_v13, %v4891_v1  ;;  %v2986_v30 = vsel %vm2974_vm2, %v2969_v29, %v4892_v36  ;;  %3356 = vmatpush1.bf16.msra.mxu1 %v4984_v57  ;;  %v7310_v36 = vld [vmem:[#allocation13 + $0x68] sm:$0xff]   ;;  %v7317_v1 = vld [vmem:[%s7652_s7 + $0x3] ss:$0 sm:$0xff] }
 0x70f   : > { %v2983_v20 = vsel %vm2974_vm2, %v2966_v22, %v4886_v26  ;;  %v2984_v45 = vsel %vm2974_vm2, %v2967_v0, %v4887_v59  ;;  %v2996_v61 = vpack.c.bf16 %v2986_v30, %v2985_v23  ;;  %v4900_v17 = vpop.permute.xlu1 %4899  ;;  %4641 = vmatprep.subr.bf16.mxu1 %v4987_v56  ;;  %v7323_v26 = vld [vmem:[%s7652_s7 + $0x7] ss:$0 sm:$0xff] }
 0x710   : > { %v2995_v55 = vpack.c.bf16 %v2984_v45, %v2983_v20  ;;  %v4895_v52 = vpop.permute.xlu0 %4894  ;;  %v4902_v2 = vunpack.i.h.bf16 %v4900_v17  ;;  %v4901_v62 = vunpack.i.l.bf16 %v4900_v17  ;;  %4262 = vmatpush3.bf16.msra.mxu0 %v7296_v33  ;;  %v5259_v0 = vld [vmem:[%s5897_s14] sm:$0xff]  ;;  %v5260_v17 = vld [vmem:[%s5897_s14 + $0x8] sm:$0xff] }
 0x711   : > { %v4897_v21 = vunpack.i.h.bf16 %v4895_v52  ;;  %v4896_v31 = vunpack.i.l.bf16 %v4895_v52  ;;  %4263 = vmatprep.subr.bf16.mxu0 %v7298_v43  ;;  %v7334_v52 = vld [vmem:[%s7652_s7 + $0x8] ss:$0 sm:$0xff] }
 0x712   : > { %4633 = vmatprep.mubr.bf16.mxu0 %v2995_v55  ;;  %v2956_v60 = vsel %vm1108_vm0, %v7142_v24, %v4902_v2  ;;  %v2955_v35 = vsel %vm1108_vm0, %v7138_v32, %v4901_v62 }
 0x713   : > { %4634 = vmatmul.mubr.bf16.gmra.mrb[104].mxu0 %v2996_v61  ;;  %v4910_v25 = vpop.permute.xlu1 %4909  ;;  %v2954_v27 = vsel %vm1108_vm0, %v7144_v19, %v4897_v21  ;;  %v2953_v44 = vsel %vm1108_vm0, %v7140_v3, %v4896_v31 }
 0x714   : > { %v4905_v7 = vpop.permute.xlu0 %4904  ;;  %v4912_v58 = vunpack.i.h.bf16 %v4910_v25  ;;  %v4911_v46 = vunpack.i.l.bf16 %v4910_v25  ;;  %4264 = vmatpush3.bf16.msra.mxu0 %v7301_v12  ;;  %v5261_v25 = vld [vmem:[%s5897_s14 + $0x18] sm:$0xff] }
 0x715   : > { %v4907_v48 = vunpack.i.h.bf16 %v4905_v7  ;;  %v4906_v63 = vunpack.i.l.bf16 %v4905_v7  ;;  %4265 = vmatprep.subr.bf16.mxu0 %v7304_v16  ;;  %v5262_v7 = vld [vmem:[%s5897_s14 + $0x10] sm:$0xff] }
 0x716   : > { %v2973_v51 = vsel %vm2957_vm1, %v2956_v60, %v4912_v58  ;;  %v2972_v14 = vsel %vm2957_vm1, %v2955_v35, %v4911_v46 }
 0x717   : > { %v2970_v24 = vsel %vm2957_vm1, %v2953_v44, %v4906_v63  ;;  %v2971_v32 = vsel %vm2957_vm1, %v2954_v27, %v4907_v48 }
 0x718   : > { %4266 = vmatpush3.bf16.msra.mxu0 %v7307_v53 }
 0x719   : > { %4267 = vmatprep.subr.bf16.mxu0 %v7310_v36 }
 0x71b   : > { %v4920_v49 = vpop.permute.xlu1 %4919 }
 0x71c   : > { %v4922_v34 = vunpack.i.h.bf16 %v4920_v49  ;;  %v4921_v50 = vunpack.i.l.bf16 %v4920_v49  ;;  %v4915_v39 = vpop.permute.xlu0 %4914 }
 0x71d   : > { %v4917_v5 = vunpack.i.h.bf16 %v4915_v39  ;;  %v4916_v47 = vunpack.i.l.bf16 %v4915_v39 }
 0x71e   : > { %v2989_v40 = vsel %vm2974_vm2, %v2972_v14, %v4921_v50  ;;  %v2990_v19 = vsel %vm2974_vm2, %v2973_v51, %v4922_v34  ;;  %v5263_v50 = vld [vmem:[%s5897_s14 + $0x20] sm:$0xff] }
 0x71f   : > { %v2987_v8 = vsel %vm2974_vm2, %v2970_v24, %v4916_v47  ;;  %v2988_v3 = vsel %vm2974_vm2, %v2971_v32, %v4917_v5  ;;  %v2998_v41 = vpack.c.bf16 %v2990_v19, %v2989_v40  ;;  %v5264_v47 = vld [vmem:[%s5897_s14 + $0x28] sm:$0xff] }
 0x720   : > { %v2997_v42 = vpack.c.bf16 %v2988_v3, %v2987_v8  ;;  %v5265_v3 = vld [vmem:[%s5897_s14 + $0x38] sm:$0xff] }
 0x722   : > { %4637 = vmatprep.mubr.bf16.mxu0 %v2997_v42 }
 0x723   : > { %4638 = vmatmul.mubr.bf16.gmra.mrb[108].mxu0 %v2998_v41 }
 0x7a2   : > { %v4627_v28 = vpop.f32.mrb[96].mxu0 }
 0x7a3   : > { %v3103_v29 = vpop.f32.mrb[97].mxu0  ;;  %v3112_v45 = vadd.f32 %v4627_v28, %v7317_v1 }
 0x7a4   : > { %v3104_v13 = vadd.f32 %v7317_v1, %v3103_v29  ;;  %v4628_v59 = vpop.f32.mrb[98].mxu0 }
 0x7a5   : > { %v3106_v22 = vpop.f32.mrb[99].mxu0  ;;  %v3115_v30 = vadd.f32 %v4628_v59, %v7317_v1  ;;  %v3168_v21 = vadd.f32 %v5262_v7, %v3112_v45  ;;  %v5268_v59 = vld [vmem:[%s5897_s14 + $0x48] sm:$0xff] }
 0x7a6   : > { %v3166_v23 = vadd.f32 %v5259_v0, %v3104_v13  ;;  %v3107_v20 = vadd.f32 %v7317_v1, %v3106_v22  ;;  %v5269_v0 = vld [vmem:[%s5897_s14 + $0x58] sm:$0xff] }
 0x7a7   : > { %v3169_v2 = vadd.f32 %v5261_v25, %v3115_v30  ;;  %v3190_v63 = vmul.f32 %v7323_v26, %v3168_v21 }
 0x7a8   : > { %v3188_v61 = vmul.f32 %v7323_v26, %v3166_v23  ;;  %v3167_v55 = vadd.f32 %v5260_v17, %v3107_v20  ;;  %v5270_v20 = vld [vmem:[%s5897_s14 + $0x50] sm:$0xff] }
 0x7a9   : > { %v3191_v46 = vmul.f32 %v7323_v26, %v3169_v2  ;;  %v7357_v14 = vadd.f32 %v7334_v52, %v3190_v63 }
 0x7aa   : > { %v3189_v62 = vmul.f32 %v7323_v26, %v3167_v55  ;;  %v7340_v31 = vadd.f32 %v7334_v52, %v3188_v61 }
 0x7ab   : > { %v7352_v44 = vadd.f32 %v7334_v52, %v3191_v46 }
 0x7ac   : > { %v7343_v58 = vadd.f32 %v7334_v52, %v3189_v62 }
 0x7ad   : > { %v3227_v32 = vpack.c.bf16 %v7352_v44, %v7357_v14 }
 0x7ae   : > { %v3226_v48 = vpack.c.bf16 %v7343_v58, %v7340_v31 }
 0x7b0   : > { %v4631_v60 = vpop.f32.mrb[100].mxu0  ;;  %3374 = vmatmul.mubr.bf16.vlgmr.msra.gmra.mrb[80].mxu1 %v3226_v48 }
 0x7b1   : > { %v3119_v35 = vpop.f32.mrb[101].mxu0  ;;  %3383 = vmatprep.mubr.bf16.mxu1 %v7887_v10  ;;  %4649 = vmatpush3.bf16.msra.mxu1 %v4988_v37  ;;  %v3128_v40 = vadd.f32 %v4631_v60, %v7317_v1 }
 0x7b2   : > { %v3120_v49 = vadd.f32 %v7317_v1, %v3119_v35  ;;  %v4632_v27 = vpop.f32.mrb[102].mxu0  ;;  %4642 = vmatprep.subr.bf16.mxu1 %v4989_v15  ;;  %v5271_v35 = vld [vmem:[%s5897_s14 + $0x60] sm:$0xff] }
 0x7b3   : > { %v3122_v34 = vpop.f32.mrb[103].mxu0  ;;  %v3131_v5 = vadd.f32 %v4632_v27, %v7317_v1  ;;  %v3172_v6 = vadd.f32 %v5266_v9, %v3128_v40 }
 0x7b4   : > { %v3170_v39 = vadd.f32 %v5263_v50, %v3120_v49  ;;  %v3123_v51 = vadd.f32 %v7317_v1, %v3122_v34 }
 0x7b5   : > { %4650 = vmatpush3.bf16.msra.mxu1 %v4990_v11  ;;  %v3173_v41 = vadd.f32 %v5265_v3, %v3131_v5  ;;  %v3194_v57 = vmul.f32 %v7323_v26, %v3172_v6  ;;  %v5272_v5 = vld [vmem:[%s5897_s14 + $0x68] sm:$0xff] }
 0x7b6   : > { %v3171_v24 = vadd.f32 %v5264_v47, %v3123_v51  ;;  %4643 = vmatprep.subr.bf16.mxu1 %v4991_v4  ;;  %v3192_v19 = vmul.f32 %v7323_v26, %v3170_v39  ;;  %v4998_v6 = vld [vmem:[#allocation13 + $0x28] sm:$0xff]  }
 0x7b7   : > { %v3195_v18 = vmul.f32 %v7323_v26, %v3173_v41  ;;  %v7390_v37 = vadd.f32 %v7334_v52, %v3194_v57  ;;  %4268 = vmatpush3.bf16.msra.mxu0 %v4998_v6 }
 0x7b8   : > { %v3193_v8 = vmul.f32 %v7323_v26, %v3171_v24  ;;  %3384 = vmatmul.mubr.bf16.gmra.mrb[84].mxu1 %v3227_v32  ;;  %v7375_v38 = vadd.f32 %v7334_v52, %v3192_v19  ;;  %v5273_v24 = vld [vmem:[%s5897_s14 + $0x78] sm:$0xff]  ;;  %v5274_v19 = vld [vmem:[%s5897_s14 + $0x70] sm:$0xff] }
 0x7b9   : > { %3393 = vmatprep.mubr.bf16.mxu1 %v7887_v10  ;;  %4651 = vmatpush3.bf16.msra.mxu1 %v7296_v33  ;;  %v7386_v56 = vadd.f32 %v7334_v52, %v3195_v18 }
 0x7ba   : > { %v7370_v42 = vadd.f32 %v7334_v52, %v3193_v8  ;;  %4644 = vmatprep.subr.bf16.mxu1 %v7298_v43 }
 0x7bb   : > { %v3229_v15 = vpack.c.bf16 %v7386_v56, %v7390_v37 }
 0x7bc   : > { %v3228_v54 = vpack.c.bf16 %v7370_v42, %v7375_v38 }
 0x7bd   : > { %4652 = vmatpush3.bf16.msra.mxu1 %v7301_v12 }
 0x7be   : > { %4645 = vmatprep.subr.bf16.mxu1 %v7304_v16  ;;  %v5267_v16 = vld [vmem:[%s5897_s14 + $0x40] sm:$0xff] }
 0x7c0   : > { %3394 = vmatmul.mubr.bf16.gmra.mrb[88].mxu1 %v3228_v54  ;;  %v4999_v54 = vld [vmem:[#allocation13 + $0x70] sm:$0xff]  }
 0x7c1   : > { %3403 = vmatprep.mubr.bf16.mxu1 %v7887_v10  ;;  %4653 = vmatpush3.bf16.msra.mxu1 %v7307_v53 }
 0x7c2   : > { %4646 = vmatprep.subr.bf16.mxu1 %v7310_v36  ;;  %4269 = vmatprep.subr.bf16.mxu0 %v4999_v54 }
 0x7c5   : > { %4654 = vmatpush3.bf16.msra.mxu1 %v4998_v6 }
 0x7c6   : > { %4647 = vmatprep.subr.bf16.mxu1 %v4999_v54 }
 0x7c8   : > { %3404 = vmatmul.mubr.bf16.gmra.mrb[92].mxu1 %v3229_v15  ;;  %v5000_v15 = vld [vmem:[#allocation13 + $0x30] sm:$0xff]  }
 0x7c9   : > { %3413 = vmatprep.mubr.bf16.mxu1 %v7887_v10  ;;  %4270 = vmatpush3.bf16.msra.mxu0 %v5000_v15 }
 0x7ca   : > { %4655 = vmatpush3.bf16.msra.mxu1 %v5000_v15 }
 0x7e6   : > { %v4635_v11 = vpop.f32.mrb[104].mxu0 }
 0x7e7   : > { %v3135_v4 = vpop.f32.mrb[105].mxu0  ;;  %v3144_v29 = vadd.f32 %v4635_v11, %v7317_v1 }
 0x7e8   : > { %v3136_v33 = vadd.f32 %v7317_v1, %v3135_v4  ;;  %v4636_v43 = vpop.f32.mrb[106].mxu0  ;;  %v5001_v4 = vld [vmem:[#allocation13 + $0x78] sm:$0xff]  }
 0x7e9   : > { %v3138_v12 = vpop.f32.mrb[107].mxu0  ;;  %v3147_v36 = vadd.f32 %v4636_v43, %v7317_v1  ;;  %v3176_v45 = vadd.f32 %v5270_v20, %v3144_v29  ;;  %4271 = vmatprep.subr.bf16.mxu0 %v5001_v4  ;;  %4648 = vmatprep.subr.bf16.mxu1 %v5001_v4  ;;  %v7888_v43 = vld [vmem:[#allocation22_spill] sm:$0xff] }
 0x7ea   : > { %v3174_v53 = vadd.f32 %v5267_v16, %v3136_v33  ;;  %v3139_v28 = vadd.f32 %v7317_v1, %v3138_v12  ;;  %v5002_v33 = vld [vmem:[#allocation13 + $0x38] sm:$0xff]  }
 0x7eb   : > { %v3177_v23 = vadd.f32 %v5269_v0, %v3147_v36  ;;  %v3198_v2 = vmul.f32 %v7323_v26, %v3176_v45  ;;  %4272 = vmatpush3.bf16.msra.mxu0 %v5002_v33  ;;  %4656 = vmatpush3.bf16.msra.mxu1 %v5002_v33 }
 0x7ec   : > { %v3196_v13 = vmul.f32 %v7323_v26, %v3174_v53  ;;  %v3175_v22 = vadd.f32 %v5268_v59, %v3139_v28 }
 0x7ed   : > { %v3199_v55 = vmul.f32 %v7323_v26, %v3177_v23  ;;  %v7421_v63 = vadd.f32 %v7334_v52, %v3198_v2 }
 0x7ee   : > { %v3197_v30 = vmul.f32 %v7323_v26, %v3175_v22  ;;  %v7406_v61 = vadd.f32 %v7334_v52, %v3196_v13 }
 0x7ef   : > { %v7417_v7 = vadd.f32 %v7334_v52, %v3199_v55 }
 0x7f0   : > { %v7409_v17 = vadd.f32 %v7334_v52, %v3197_v30 }
 0x7f1   : > { %v3231_v50 = vpack.c.bf16 %v7417_v7, %v7421_v63 }
 0x7f2   : > { %v3230_v25 = vpack.c.bf16 %v7409_v17, %v7406_v61 }
 0x7f4   : > { %3414 = vmatmul.mubr.bf16.gmra.mrb[96].mxu1 %v3230_v25 }
 0x7f5   : > { %3423 = vmatprep.mubr.bf16.mxu1 %v7887_v10 }
 0x7f6   : > { %v4639_v62 = vpop.f32.mrb[108].mxu0 }
 0x7f7   : > { %v3151_v21 = vpop.f32.mrb[109].mxu0  ;;  %v3160_v39 = vadd.f32 %v4639_v62, %v7317_v1 }
 0x7f8   : > { %v3152_v46 = vadd.f32 %v7317_v1, %v3151_v21  ;;  %v4640_v48 = vpop.f32.mrb[110].mxu0 }
 0x7f9   : > { %v3154_v60 = vpop.f32.mrb[111].mxu0  ;;  %v3163_v27 = vadd.f32 %v4640_v48, %v7317_v1  ;;  %v3180_v8 = vadd.f32 %v5274_v19, %v3160_v39 }
 0x7fa   : > { %v3178_v49 = vadd.f32 %v5271_v35, %v3152_v46  ;;  %v3155_v34 = vadd.f32 %v7317_v1, %v3154_v60 }
 0x7fb   : > { %v3181_v32 = vadd.f32 %v5273_v24, %v3163_v27  ;;  %v3202_v18 = vmul.f32 %v7323_v26, %v3180_v8 }
 0x7fc   : > { %v3200_v51 = vmul.f32 %v7323_v26, %v3178_v49  ;;  %v3179_v47 = vadd.f32 %v5272_v5, %v3155_v34  ;;  %3424 = vmatmul.mubr.bf16.gmra.mrb[100].mxu1 %v3231_v50 }
 0x7fd   : > { %3433 = vmatprep.mubr.bf16.mxu1 %v7887_v10  ;;  %v3203_v1 = vmul.f32 %v7323_v26, %v3181_v32  ;;  %v7450_v11 = vadd.f32 %v7334_v52, %v3202_v18 }
 0x7fe   : > { %v3201_v40 = vmul.f32 %v7323_v26, %v3179_v47  ;;  %v7436_v3 = vadd.f32 %v7334_v52, %v3200_v51 }
 0x7ff   : > { %v7447_v57 = vadd.f32 %v7334_v52, %v3203_v1 }
 0x800   : > { %v7439_v41 = vadd.f32 %v7334_v52, %v3201_v40  ;;  %v7889_v52 = vld [vmem:[#allocation21_spill] sm:$0xff] }
 0x801   : > { %v3233_v26 = vpack.c.bf16 %v7447_v57, %v7450_v11  ;;  %v7890_v16 = vsub.s32 1, %v7889_v52 }
 0x802   : > { %v3232_v9 = vpack.c.bf16 %v7439_v41, %v7436_v3 }
 0x804   : > { %3434 = vmatmul.mubr.bf16.gmra.mrb[104].mxu1 %v3232_v9 }
 0x805   : > { %3443 = vmatprep.mubr.bf16.mxu1 %v7887_v10  ;;  %v461_v10 = vld [vmem:[%s7652_s7 + $0x4] sm:$0x3] }
 0x806   : > { %v7458_v12 = vrot.slane %v461_v10, %v7888_v43  ;;  %v7462_v53 = vrot.slane %v461_v10, %v7890_v16 }
 0x80c   : > { %3444 = vmatmul.mubr.bf16.gmra.mrb[108].mxu1 %v3233_v26 }
 0x883   : > { %v3375_v36 = vpop.f32.mrb[80].mxu1 }
 0x884   : > { %v3376_v28 = vadd.f32 %v3375_v36, %v7458_v12  ;;  %v3377_v29 = vpop.f32.mrb[81].mxu1 }
 0x885   : > { %v3378_v13 = vadd.f32 %v3377_v29, %v7462_v53  ;;  %v3379_v59 = vpop.f32.mrb[82].mxu1 }
 0x886   : > { %v3380_v22 = vadd.f32 %v3379_v59, %v7458_v12  ;;  %v3381_v0 = vpop.f32.mrb[83].mxu1  ;;  %v3454_v30 = vmax.f32 %v3376_v28, 0.0 }
 0x887   : > { %v3382_v23 = vadd.f32 %v3381_v0, %v7462_v53  ;;  %v3455_v45 = vmax.f32 %v3378_v13, 0.0 }
 0x888   : > { %v3456_v20 = vmax.f32 %v3380_v22, 0.0 }
 0x889   : > { %v3457_v55 = vmax.f32 %v3382_v23, 0.0 }
 0x88a   : > { %v3486_v25 = vpack.c.bf16 %v3456_v20, %v3454_v30 }
 0x88b   : > { %v3487_v2 = vpack.c.bf16 %v3457_v55, %v3455_v45  ;;  %v3385_v62 = vpop.f32.mrb[84].mxu1 }
 0x88c   : > { %v3386_v21 = vadd.f32 %v3385_v62, %v7458_v12  ;;  %v3387_v46 = vpop.f32.mrb[85].mxu1 }
 0x88d   : > { %v3388_v48 = vadd.f32 %v3387_v46, %v7462_v53  ;;  %v3389_v60 = vpop.f32.mrb[86].mxu1  ;;  %3668 = vmatprep.mubr.bf16.mxu0 %v3487_v2 }
 0x88e   : > { %v3390_v35 = vadd.f32 %v3389_v60, %v7458_v12  ;;  %v3391_v49 = vpop.f32.mrb[87].mxu1  ;;  %3669 = vmatmul.mubr.bf16.vlgmr.msra.gmra.mrb[112].mxu0 %v3486_v25  ;;  %v3458_v34 = vmax.f32 %v3386_v21, 0.0 }
 0x88f   : > { %v3392_v27 = vadd.f32 %v3391_v49, %v7462_v53  ;;  %v3459_v39 = vmax.f32 %v3388_v48, 0.0 }
 0x890   : > { %v3460_v50 = vmax.f32 %v3390_v35, 0.0 }
 0x891   : > { %v3461_v51 = vmax.f32 %v3392_v27, 0.0 }
 0x892   : > { %v3488_v5 = vpack.c.bf16 %v3460_v50, %v3458_v34 }
 0x893   : > { %v3489_v47 = vpack.c.bf16 %v3461_v51, %v3459_v39  ;;  %v3395_v24 = vpop.f32.mrb[88].mxu1 }
 0x894   : > { %v3396_v32 = vadd.f32 %v3395_v24, %v7458_v12  ;;  %v3397_v40 = vpop.f32.mrb[89].mxu1 }
 0x895   : > { %v3398_v19 = vadd.f32 %v3397_v40, %v7462_v53  ;;  %v3399_v8 = vpop.f32.mrb[90].mxu1  ;;  %3676 = vmatprep.mubr.bf16.mxu0 %v3489_v47 }
 0x896   : > { %v3400_v1 = vadd.f32 %v3399_v8, %v7458_v12  ;;  %v3401_v9 = vpop.f32.mrb[91].mxu1  ;;  %3677 = vmatmul.mubr.bf16.gmra.mrb[116].mxu0 %v3488_v5  ;;  %v3462_v18 = vmax.f32 %v3396_v32, 0.0 }
 0x897   : > { %v3402_v6 = vadd.f32 %v3401_v9, %v7462_v53  ;;  %v3463_v15 = vmax.f32 %v3398_v19, 0.0 }
 0x898   : > { %v3464_v54 = vmax.f32 %v3400_v1, 0.0 }
 0x899   : > { %v3465_v4 = vmax.f32 %v3402_v6, 0.0 }
 0x89a   : > { %v3490_v26 = vpack.c.bf16 %v3464_v54, %v3462_v18 }
 0x89b   : > { %v3491_v33 = vpack.c.bf16 %v3465_v4, %v3463_v15  ;;  %v3405_v10 = vpop.f32.mrb[92].mxu1 }
 0x89c   : > { %v3406_v43 = vadd.f32 %v3405_v10, %v7458_v12  ;;  %v3407_v52 = vpop.f32.mrb[93].mxu1 }
 0x89d   : > { %v3408_v16 = vadd.f32 %v3407_v52, %v7462_v53  ;;  %v3409_v36 = vpop.f32.mrb[94].mxu1  ;;  %3684 = vmatprep.mubr.bf16.mxu0 %v3491_v33 }
 0x89e   : > { %v3410_v28 = vadd.f32 %v3409_v36, %v7458_v12  ;;  %v3411_v29 = vpop.f32.mrb[95].mxu1  ;;  %3685 = vmatmul.mubr.bf16.gmra.mrb[120].mxu0 %v3490_v26  ;;  %v3466_v59 = vmax.f32 %v3406_v43, 0.0 }
 0x89f   : > { %v3412_v13 = vadd.f32 %v3411_v29, %v7462_v53  ;;  %v3467_v0 = vmax.f32 %v3408_v16, 0.0 }
 0x8a0   : > { %v3468_v22 = vmax.f32 %v3410_v28, 0.0 }
 0x8a1   : > { %v3469_v23 = vmax.f32 %v3412_v13, 0.0 }
 0x8a2   : > { %v3492_v30 = vpack.c.bf16 %v3468_v22, %v3466_v59 }
 0x8a3   : > { %v3493_v20 = vpack.c.bf16 %v3469_v23, %v3467_v0 }
 0x8a5   : > { %3692 = vmatprep.mubr.bf16.mxu0 %v3493_v20 }
 0x8a6   : > { %3693 = vmatmul.mubr.bf16.gmra.mrb[124].mxu0 %v3492_v30 }
 0x8c7   : > { %v3415_v45 = vpop.f32.mrb[96].mxu1 }
 0x8c8   : > { %v3416_v55 = vadd.f32 %v3415_v45, %v7458_v12  ;;  %v3417_v25 = vpop.f32.mrb[97].mxu1 }
 0x8c9   : > { %v3418_v2 = vadd.f32 %v3417_v25, %v7462_v53  ;;  %v3419_v62 = vpop.f32.mrb[98].mxu1 }
 0x8ca   : > { %v3420_v21 = vadd.f32 %v3419_v62, %v7458_v12  ;;  %v3421_v46 = vpop.f32.mrb[99].mxu1  ;;  %v3470_v60 = vmax.f32 %v3416_v55, 0.0 }
 0x8cb   : > { %v3422_v48 = vadd.f32 %v3421_v46, %v7462_v53  ;;  %v3471_v49 = vmax.f32 %v3418_v2, 0.0 }
 0x8cc   : > { %v3472_v35 = vmax.f32 %v3420_v21, 0.0 }
 0x8cd   : > { %v3473_v27 = vmax.f32 %v3422_v48, 0.0 }
 0x8ce   : > { %v3494_v34 = vpack.c.bf16 %v3472_v35, %v3470_v60 }
 0x8cf   : > { %v3495_v50 = vpack.c.bf16 %v3473_v27, %v3471_v49  ;;  %v3425_v39 = vpop.f32.mrb[100].mxu1  ;;  %v7499_v27 = vld [vmem:[%s7652_s7 + $0x6] ss:$0 sm:$0xff] }
 0x8d0   : > { %v3426_v51 = vadd.f32 %v3425_v39, %v7458_v12  ;;  %v3427_v5 = vpop.f32.mrb[101].mxu1 }
 0x8d1   : > { %v3428_v47 = vadd.f32 %v3427_v5, %v7462_v53  ;;  %v3429_v24 = vpop.f32.mrb[102].mxu1  ;;  %3700 = vmatprep.mubr.bf16.mxu0 %v3495_v50  ;;  %v7505_v5 = vld [vmem:[%s7652_s7 + $0x9] ss:$0 sm:$0xff] }
 0x8d2   : > { %v3430_v32 = vadd.f32 %v3429_v24, %v7458_v12  ;;  %v3431_v40 = vpop.f32.mrb[103].mxu1  ;;  %3701 = vmatmul.mubr.bf16.gmra.mrb[128].mxu0 %v3494_v34  ;;  %v3474_v8 = vmax.f32 %v3426_v51, 0.0 }
 0x8d3   : > { %v3432_v19 = vadd.f32 %v3431_v40, %v7462_v53  ;;  %v3475_v9 = vmax.f32 %v3428_v47, 0.0 }
 0x8d4   : > { %v3476_v1 = vmax.f32 %v3430_v32, 0.0  ;;  %v7512_v32 = vld [vmem:[%s7652_s7 + $0xa] ss:$0 sm:$0xff] }
 0x8d5   : > { %v3477_v6 = vmax.f32 %v3432_v19, 0.0 }
 0x8d6   : > { %v3496_v18 = vpack.c.bf16 %v3476_v1, %v3474_v8 }
 0x8d7   : > { %v3497_v54 = vpack.c.bf16 %v3477_v6, %v3475_v9  ;;  %v3435_v15 = vpop.f32.mrb[104].mxu1 }
 0x8d8   : > { %v3436_v4 = vadd.f32 %v3435_v15, %v7458_v12  ;;  %v3437_v26 = vpop.f32.mrb[105].mxu1 }
 0x8d9   : > { %v3438_v33 = vadd.f32 %v3437_v26, %v7462_v53  ;;  %v3439_v10 = vpop.f32.mrb[106].mxu1  ;;  %3708 = vmatprep.mubr.bf16.mxu0 %v3497_v54 }
 0x8da   : > { %v3440_v43 = vadd.f32 %v3439_v10, %v7458_v12  ;;  %v3441_v52 = vpop.f32.mrb[107].mxu1  ;;  %3709 = vmatmul.mubr.bf16.gmra.mrb[132].mxu0 %v3496_v18  ;;  %v3478_v36 = vmax.f32 %v3436_v4, 0.0 }
 0x8db   : > { %v3442_v16 = vadd.f32 %v3441_v52, %v7462_v53  ;;  %v3479_v29 = vmax.f32 %v3438_v33, 0.0 }
 0x8dc   : > { %v3480_v28 = vmax.f32 %v3440_v43, 0.0 }
 0x8dd   : > { %v3481_v13 = vmax.f32 %v3442_v16, 0.0 }
 0x8de   : > { %v3498_v59 = vpack.c.bf16 %v3480_v28, %v3478_v36 }
 0x8df   : > { %v3499_v22 = vpack.c.bf16 %v3481_v13, %v3479_v29  ;;  %v3445_v0 = vpop.f32.mrb[108].mxu1 }
 0x8e0   : > { %v3446_v23 = vadd.f32 %v3445_v0, %v7458_v12  ;;  %v3447_v30 = vpop.f32.mrb[109].mxu1 }
 0x8e1   : > { %v3448_v20 = vadd.f32 %v3447_v30, %v7462_v53  ;;  %v3449_v45 = vpop.f32.mrb[110].mxu1  ;;  %3716 = vmatprep.mubr.bf16.mxu1 %v3499_v22 }
 0x8e2   : > { %v3450_v55 = vadd.f32 %v3449_v45, %v7458_v12  ;;  %v3451_v25 = vpop.f32.mrb[111].mxu1  ;;  %3717 = vmatmul.mubr.bf16.vlgmr.msra.gmra.mrb[112].mxu1 %v3498_v59  ;;  %v3482_v62 = vmax.f32 %v3446_v23, 0.0 }
 0x8e3   : > { %v3452_v2 = vadd.f32 %v3451_v25, %v7462_v53  ;;  %v3483_v46 = vmax.f32 %v3448_v20, 0.0 }
 0x8e4   : > { %v3484_v21 = vmax.f32 %v3450_v55, 0.0 }
 0x8e5   : > { %v3485_v48 = vmax.f32 %v3452_v2, 0.0 }
 0x8e6   : > { %v3500_v60 = vpack.c.bf16 %v3484_v21, %v3482_v62 }
 0x8e7   : > { %v3501_v35 = vpack.c.bf16 %v3485_v48, %v3483_v46 }
 0x8e9   : > { %3724 = vmatprep.mubr.bf16.mxu1 %v3501_v35 }
 0x8ea   : > { %3725 = vmatmul.mubr.bf16.gmra.mrb[116].mxu1 %v3500_v60 }
 0x961   : > { %v4273_v49 = vpop.f32.mrb[112].mxu0 }
 0x962   : > { %v4274_v34 = vpop.f32.mrb[113].mxu0 }
 0x963   : > { %v4275_v12 = vadd.f32 %v4274_v34, %v4273_v49  ;;  %v4276_v50 = vpop.f32.mrb[114].mxu0 }
 0x964   : > { %v4277_v39 = vpop.f32.mrb[115].mxu0 }
 0x965   : > { %v3671_v53 = vadd.f32 %v4275_v12, %v7499_v27  ;;  %v4278_v51 = vadd.f32 %v4277_v39, %v4276_v50 }
 0x967   : > { %v3733_v47 = vadd.f32 %v3671_v53, %v7340_v31  ;;  %v3674_v24 = vadd.f32 %v4278_v51, %v7499_v27 }
 0x969   : > { %v3755_v40 = vmul.f32 %v7505_v5, %v3733_v47  ;;  %v3734_v19 = vadd.f32 %v3674_v24, %v7343_v58  ;;  %v4279_v8 = vpop.f32.mrb[116].mxu0 }
 0x96a   : > { %v4280_v1 = vpop.f32.mrb[117].mxu0 }
 0x96b   : > { %v3777_v9 = vadd.f32 %v7512_v32, %v3755_v40  ;;  %v3756_v6 = vmul.f32 %v7505_v5, %v3734_v19  ;;  %v4281_v18 = vadd.f32 %v4280_v1, %v4279_v8  ;;  %v4282_v54 = vpop.f32.mrb[118].mxu0 }
 0x96c   : > { %v4283_v31 = vpop.f32.mrb[119].mxu0 }
 0x96d   : > { %3793 = vst [vmem:[%s7520_s20] sm:$0xff] %v3777_v9  ;;  %v3778_v15 = vadd.f32 %v7512_v32, %v3756_v6  ;;  %v3679_v58 = vadd.f32 %v4281_v18, %v7499_v27  ;;  %v4284_v4 = vadd.f32 %v4283_v31, %v4282_v54 }
 0x96f   : > { %3794 = vst [vmem:[%s7520_s20 + $0x8] sm:$0xff] %v3778_v15  ;;  %v3735_v26 = vadd.f32 %v3679_v58, %v7357_v14  ;;  %v3682_v33 = vadd.f32 %v4284_v4, %v7499_v27 }
 0x971   : > { %v3757_v10 = vmul.f32 %v7505_v5, %v3735_v26  ;;  %v3736_v43 = vadd.f32 %v3682_v33, %v7352_v44  ;;  %v4285_v52 = vpop.f32.mrb[120].mxu0 }
 0x972   : > { %v4286_v16 = vpop.f32.mrb[121].mxu0 }
 0x973   : > { %v3779_v36 = vadd.f32 %v7512_v32, %v3757_v10  ;;  %v3758_v28 = vmul.f32 %v7505_v5, %v3736_v43  ;;  %v4287_v29 = vadd.f32 %v4286_v16, %v4285_v52  ;;  %v4288_v13 = vpop.f32.mrb[122].mxu0 }
 0x974   : > { %v4289_v59 = vpop.f32.mrb[123].mxu0 }
 0x975   : > { %3795 = vst [vmem:[%s7520_s20 + $0x10] sm:$0xff] %v3779_v36  ;;  %v3780_v22 = vadd.f32 %v7512_v32, %v3758_v28  ;;  %v3687_v14 = vadd.f32 %v4287_v29, %v7499_v27  ;;  %v4290_v0 = vadd.f32 %v4289_v59, %v4288_v13 }
 0x977   : > { %3796 = vst [vmem:[%s7520_s20 + $0x18] sm:$0xff] %v3780_v22  ;;  %v3737_v44 = vadd.f32 %v3687_v14, %v7375_v38  ;;  %v3690_v23 = vadd.f32 %v4290_v0, %v7499_v27 }
 0x979   : > { %v3759_v30 = vmul.f32 %v7505_v5, %v3737_v44  ;;  %v3738_v20 = vadd.f32 %v3690_v23, %v7370_v42  ;;  %v4291_v45 = vpop.f32.mrb[124].mxu0 }
 0x97a   : > { %v4292_v55 = vpop.f32.mrb[125].mxu0 }
 0x97b   : > { %v3781_v25 = vadd.f32 %v7512_v32, %v3759_v30  ;;  %v3760_v2 = vmul.f32 %v7505_v5, %v3738_v20  ;;  %v4293_v62 = vadd.f32 %v4292_v55, %v4291_v45  ;;  %v4294_v21 = vpop.f32.mrb[126].mxu0 }
 0x97c   : > { %v4295_v46 = vpop.f32.mrb[127].mxu0 }
 0x97d   : > { %3797 = vst [vmem:[%s7520_s20 + $0x20] sm:$0xff] %v3781_v25  ;;  %v3782_v38 = vadd.f32 %v7512_v32, %v3760_v2  ;;  %v3695_v48 = vadd.f32 %v4293_v62, %v7499_v27  ;;  %v4296_v60 = vadd.f32 %v4295_v46, %v4294_v21 }
 0x97f   : > { %3798 = vst [vmem:[%s7520_s20 + $0x28] sm:$0xff] %v3782_v38  ;;  %v3739_v42 = vadd.f32 %v3695_v48, %v7390_v37  ;;  %v3698_v35 = vadd.f32 %v4296_v60, %v7499_v27 }
 0x981   : > { %v3761_v49 = vmul.f32 %v7505_v5, %v3739_v42  ;;  %v3740_v34 = vadd.f32 %v3698_v35, %v7386_v56 }
 0x983   : > { %v3783_v12 = vadd.f32 %v7512_v32, %v3761_v49  ;;  %v3762_v50 = vmul.f32 %v7505_v5, %v3740_v34 }
 0x985   : > { %3799 = vst [vmem:[%s7520_s20 + $0x30] sm:$0xff] %v3783_v12  ;;  %v3784_v39 = vadd.f32 %v7512_v32, %v3762_v50 }
 0x987   : > { %3800 = vst [vmem:[%s7520_s20 + $0x38] sm:$0xff] %v3784_v39 }
 0x9a5   : > { %v4297_v53 = vpop.f32.mrb[128].mxu0 }
 0x9a6   : > { %v4298_v51 = vpop.f32.mrb[129].mxu0 }
 0x9a7   : > { %v4299_v47 = vadd.f32 %v4298_v51, %v4297_v53  ;;  %v4300_v24 = vpop.f32.mrb[130].mxu0 }
 0x9a8   : > { %v4301_v37 = vpop.f32.mrb[131].mxu0 }
 0x9a9   : > { %v3703_v40 = vadd.f32 %v4299_v47, %v7499_v27  ;;  %v4302_v19 = vadd.f32 %v4301_v37, %v4300_v24 }
 0x9ab   : > { %v3741_v56 = vadd.f32 %v3703_v40, %v7406_v61  ;;  %v3706_v8 = vadd.f32 %v4302_v19, %v7499_v27 }
 0x9ad   : > { %v3763_v1 = vmul.f32 %v7505_v5, %v3741_v56  ;;  %v3742_v9 = vadd.f32 %v3706_v8, %v7409_v17  ;;  %v4303_v6 = vpop.f32.mrb[132].mxu0 }
 0x9ae   : > { %v4304_v18 = vpop.f32.mrb[133].mxu0 }
 0x9af   : > { %v3785_v54 = vadd.f32 %v7512_v32, %v3763_v1  ;;  %v3764_v31 = vmul.f32 %v7505_v5, %v3742_v9  ;;  %v4305_v15 = vadd.f32 %v4304_v18, %v4303_v6  ;;  %v4306_v58 = vpop.f32.mrb[134].mxu0 }
 0x9b0   : > { %v4307_v4 = vpop.f32.mrb[135].mxu0 }
 0x9b1   : > { %3801 = vst [vmem:[%s7520_s20 + $0x40] sm:$0xff] %v3785_v54  ;;  %v3786_v26 = vadd.f32 %v7512_v32, %v3764_v31  ;;  %v3711_v61 = vadd.f32 %v4305_v15, %v7499_v27  ;;  %v4308_v33 = vadd.f32 %v4307_v4, %v4306_v58 }
 0x9b3   : > { %3802 = vst [vmem:[%s7520_s20 + $0x48] sm:$0xff] %v3786_v26  ;;  %v3743_v17 = vadd.f32 %v3711_v61, %v7421_v63  ;;  %v3714_v10 = vadd.f32 %v4308_v33, %v7499_v27 }
 0x9b5   : > { %v3765_v43 = vmul.f32 %v7505_v5, %v3743_v17  ;;  %v3744_v52 = vadd.f32 %v3714_v10, %v7417_v7  ;;  %v4309_v16 = vpop.f32.mrb[112].mxu1 }
 0x9b6   : > { %v4310_v36 = vpop.f32.mrb[113].mxu1 }
 0x9b7   : > { %v3787_v28 = vadd.f32 %v7512_v32, %v3765_v43  ;;  %v3766_v29 = vmul.f32 %v7505_v5, %v3744_v52  ;;  %v4311_v13 = vadd.f32 %v4310_v36, %v4309_v16  ;;  %v4312_v59 = vpop.f32.mrb[114].mxu1 }
 0x9b8   : > { %v4313_v22 = vpop.f32.mrb[115].mxu1 }
 0x9b9   : > { %3803 = vst [vmem:[%s7520_s20 + $0x50] sm:$0xff] %v3787_v28  ;;  %v3788_v14 = vadd.f32 %v7512_v32, %v3766_v29  ;;  %v3719_v63 = vadd.f32 %v4311_v13, %v7499_v27  ;;  %v4314_v0 = vadd.f32 %v4313_v22, %v4312_v59 }
 0x9bb   : > { %3804 = vst [vmem:[%s7520_s20 + $0x58] sm:$0xff] %v3788_v14  ;;  %v3745_v7 = vadd.f32 %v3719_v63, %v7436_v3  ;;  %v3722_v44 = vadd.f32 %v4314_v0, %v7499_v27 }
 0x9bd   : > { %v3767_v23 = vmul.f32 %v7505_v5, %v3745_v7  ;;  %v3746_v30 = vadd.f32 %v3722_v44, %v7439_v41  ;;  %v4315_v20 = vpop.f32.mrb[116].mxu1 }
 0x9be   : > { %v4316_v45 = vpop.f32.mrb[117].mxu1 }
 0x9bf   : > { %v3789_v55 = vadd.f32 %v7512_v32, %v3767_v23  ;;  %v3768_v25 = vmul.f32 %v7505_v5, %v3746_v30  ;;  %v4317_v2 = vadd.f32 %v4316_v45, %v4315_v20  ;;  %v4318_v62 = vpop.f32.mrb[118].mxu1 }
 0x9c0   : > { %v4319_v21 = vpop.f32.mrb[119].mxu1 }
 0x9c1   : > { %3805 = vst [vmem:[%s7520_s20 + $0x60] sm:$0xff] %v3789_v55  ;;  %v3790_v3 = vadd.f32 %v7512_v32, %v3768_v25  ;;  %v3727_v46 = vadd.f32 %v4317_v2, %v7499_v27  ;;  %v4320_v41 = vadd.f32 %v4319_v21, %v4318_v62 }
 0x9c3   : > { %3806 = vst [vmem:[%s7520_s20 + $0x68] sm:$0xff] %v3790_v3  ;;  %v3747_v38 = vadd.f32 %v3727_v46, %v7450_v11  ;;  %v3730_v48 = vadd.f32 %v4320_v41, %v7499_v27 }
 0x9c5   : > { %v3769_v60 = vmul.f32 %v7505_v5, %v3747_v38  ;;  %v3748_v42 = vadd.f32 %v3730_v48, %v7447_v57 }
 0x9c7   : > { %v3791_v35 = vadd.f32 %v7512_v32, %v3769_v60  ;;  %v3770_v49 = vmul.f32 %v7505_v5, %v3748_v42 }
 0x9c9   : > { %3807 = vst [vmem:[%s7520_s20 + $0x70] sm:$0xff] %v3791_v35  ;;  %v3792_v11 = vadd.f32 %v7512_v32, %v3770_v49 }
 0x9cb   : > { %3808 = vst [vmem:[%s7520_s20 + $0x78] sm:$0xff] %v3792_v11 }
 0x9cc   : > { %5488 = shalt.err (!%p5485_p2)
}
 0x9cd   : > { %s5489_s14 = scalar_lea.hbm %s7597_s0, 2048  ;;  %s5493_s2 = scalar_lea.hbm %s7653_s8, 8192 }
 0x9ce   : > { %p5490_p9 = scmp.ne.s32.totalorder %s7597_s0, %s5489_s14  ;;  %p5494_p10 = scmp.lt.u32.totalorder %s7597_s0, %s7653_s8 }
 0x9cf   : > { %p5495_p1 = scmp.lt.u32.totalorder %s5493_s2, %s5489_s14  ;;  %p5497_p12 = scmp.lt.u32.totalorder %s5489_s14, %s7597_s0 }
 0x9d0   : > { %p5491_p7 = pnand %p5490_p9, %p7891_p13 }
 0x9d1   : > { %p5496_p11 = por %p5495_p1, %p5494_p10 }
 0x9d2   : > { %p5492_p6 = pneg %p5491_p7 }
 0x9d3   : > { %p5498_p5 = por %p5497_p12, %p5496_p11 }
 0x9d5   : > { %p5499_p8 = pnand %p5498_p5, %p5492_p6 }
 0x9d7   : > { %5502 = shalt.err (!%p5499_p8)
}
 0x9d8   : > { %s5577_s17 = smov 128   ;;  %s5578_s20 = smov 8  }
 0x9d9   : > { %4713 = dma.vmem_to_hbm [thread:$0]  (%p7891_p13), %s7599_s21, 2048, %s7597_s0, %s3810_s11, %s5577_s17, %s5577_s17, %s5578_s20  }
 0x9da PF: > { %p4753_p0 = scmp.ge.s32.totalorder %s5557_s30, 2  ;;  %s3839_s23 = sand.u32 1, %s5545_s27  }
 0x9db   : > { %p7892_p4 = scmp.ne.s32.totalorder %s7744_s25, 0  ;;  %s3840_s13 = scalar_lea.sflag [#allocation4], %s3839_s23 }
 0x9dd   : > { %p4739_p3 = pnand %p4753_p0, %p7892_p4 }
 0x9df   : > { %5540 = dma.done.wait (!%p4739_p3), %s3840_s13, 2048  }
 0x9e0   : > { %5542 = vsyncadd (!%p4739_p3), %s3840_s13, 4294965248  ;;  %p26_p2 = scmp.ge.s32.totalorder %s5783_s15, 6   ;;  %s7893_s27 = smov %s5549_s28 }
 0x9e1   : > { %s7894_s28 = smov %s5553_s29  ;;  %s7895_s29 = smov %s5795_s22 }
 0x9e2   : > { %s7896_s30 = smov %s5783_s15  ;;  %28 = sbr.rel (!%p26_p2) target bundleno = 15 (0xf), region = 130 }
 0x9e9   :  { %3845 = vsyncpa [#allocation3], 1 }
 0x9ea   :  { %3847 = vsyncpa [#allocation3 + $0x1], 1 }
 0x9eb   :  { %3848 = vsyncpa [#allocation6], 1 }
 0x9ec   :  { %3850 = vsyncpa [#allocation6 + $0x1], 1 }
 0x9ed   :  { %3851 = vsyncpa [#allocation9], 1 }
 0x9ee   :  { %3852 = vsyncpa [#allocation12], 1 }
 0x9ef   :  { %3853 = vsyncpa [#allocation4], 1 }
 0x9f0   :  { %3855 = vsyncpa [#allocation4 + $0x1], 1 }

</bundles_post_ra>
